<compile_context>
chip_gen: v6e
topology: v6e:2x2x1
jax: 0.10.0
libtpu: 0.0.40
codegen_flags: <defaults>
</compile_context>

<pallas_src>
import jax
import jax.numpy as jnp
from jax.experimental import pallas as pl
from jax.experimental.pallas import tpu as pltpu

# Layer sizes (matches the PyTorch module)
ENC_DIMS = [784, 256, 128, 64, 10]
DEC_DIMS = [10, 64, 128, 256, 784]
ALL_LAYERS = list(zip(ENC_DIMS[:-1], ENC_DIMS[1:])) + list(zip(DEC_DIMS[:-1], DEC_DIMS[1:]))
N_LAYERS = len(ALL_LAYERS)      # 8 original Linear layers
N_FUSED = N_LAYERS - 1          # 7 after folding the activation-free 64->10->64 bottleneck
LANE = 128


def _round_up(n, m):
    return ((n + m - 1) // m) * m


def _pad_dim(d):
    # Pad the tiny bottleneck dims up to one full 128-lane vreg.
    return LANE if d < LANE else d


def ae_kernel(x_ref, *refs):
    """refs = (w1, b1, ..., w7, b7, o_ref); w* bf16, b* f32, o_ref bf16."""
    o_ref = refs[-1]
    wb = refs[:-1]
    h = x_ref[...]                                       # (bm, 784) bf16
    for li in range(N_FUSED):
        w = wb[2 * li][...]                              # (in_pad, out_pad) bf16
        b = wb[2 * li + 1][...]                          # (1, out_pad) f32, broadcasts
        z = jnp.dot(h, w, preferred_element_type=jnp.float32) + b
        if li == N_FUSED - 1:
            # Final Sigmoid: exp and the approx reciprocal both run on the EUP slot.
            h = pl.reciprocal(1.0 + jnp.exp(-z), approx=True)
        else:
            # ReLU in f32, then carry the activation in bf16 (one cast per layer).
            h = jnp.maximum(z, 0.0).astype(jnp.bfloat16)
    o_ref[...] = h.astype(o_ref.dtype)


def fold_and_pad_params(params):
    """Fold the activation-free 64->10->64 bottleneck into one 64x64 layer, then
    zero-pad every layer to lane-aligned (>=128) shapes.  W -> bf16, b stays f32."""
    (w0, b0), (w1, b1), (w2, b2), (w3, b3), (w4, b4), (w5, b5), (w6, b6), (w7, b7) = params
    w34 = w3 @ w4                    # (64, 64), rank-10; exact fold in f32
    b34 = b3 @ w4 + b4               # (1, 64)
    fused = [(w0, b0), (w1, b1), (w2, b2), (w34, b34), (w5, b5), (w6, b6), (w7, b7)]
    padded = []
    for w, b in fused:
        fi, fo = w.shape
        fi_p, fo_p = _pad_dim(fi), _pad_dim(fo)
        w_p = jnp.zeros((fi_p, fo_p), jnp.float32).at[:fi, :fo].set(w).astype(jnp.bfloat16)
        b_p = jnp.zeros((1, fo_p), jnp.float32).at[:, :fo].set(b.reshape(1, fo))
        padded.append((w_p, b_p))
    return padded


def _pick_bm(B, bm=None):
    if bm is None:
        # Aim for >= 4 grid steps so both v7x TCs each get >= 2 overlapped pipeline
        # steps; cap at 512 rows (big DMAs / saturated MXU M on v5e/v6e).
        bm = _round_up(-(-B // 4), 8)
    bm = max(8, min(int(bm), 512))
    return min(bm, _round_up(B, 8))


def deep_autoencoder(x, padded_params, *, bm=None):
    """x: (B, 784) float or bfloat16. padded_params: output of fold_and_pad_params()."""
    B, D = x.shape
    assert D == 784
    x = x.astype(jnp.bfloat16)            # stream activations in bf16 (halves HBM traffic)
    bm_eff = _pick_bm(B, bm)
    grid = pl.cdiv(B, bm_eff)             # ragged tail tiles are handled row-wise

    in_specs = [pl.BlockSpec((bm_eff, D), lambda i: (i, 0))]
    flat_params = []
    for w, b in padded_params:
        # Constant index_map -> each weight/bias is DMA'd once and stays VMEM-resident.
        in_specs.append(pl.BlockSpec(w.shape, lambda i: (0, 0)))
        in_specs.append(pl.BlockSpec(b.shape, lambda i: (0, 0)))
        flat_params.extend([w, b])

    out_spec = pl.BlockSpec((bm_eff, D), lambda i: (i, 0))

    return pl.pallas_call(
        ae_kernel,
        out_shape=jax.ShapeDtypeStruct((B, D), jnp.bfloat16),   # bf16 output stream
        grid_spec=pltpu.PrefetchScalarGridSpec(
            num_scalar_prefetch=0,
            grid=(grid,),
            in_specs=in_specs,
            out_specs=out_spec,
        ),
        compiler_params=pltpu.CompilerParams(
            dimension_semantics=("parallel",),    # batch tiles shard across v7x's 2 TCs
            vmem_limit_bytes=32 * 1024 * 1024,    # actual footprint < 8 MiB even at bm=512
        ),
    )(x, *flat_params)


def init_params(key):
    """Deterministic init matching PyTorch nn.Linear default ranges (uniform +-1/sqrt(fan_in))."""
    params = []
    for (fan_in, fan_out) in ALL_LAYERS:
        key, kw, kb = jax.random.split(key, 3)
        bound = 1.0 / (fan_in ** 0.5)
        w = jax.random.uniform(kw, (fan_in, fan_out), jnp.float32, -bound, bound)
        b = jax.random.uniform(kb, (1, fan_out), jnp.float32, -bound, bound)
        params.append((w, b))
    return params


def reference_forward(x, padded_params):
    """Pure-JAX reference following the same folded / bf16-activation / f32-accumulate path."""
    h = x.astype(jnp.bfloat16)
    for li, (w, b) in enumerate(padded_params):
        z = jnp.dot(h, w, preferred_element_type=jnp.float32) + b
        if li == len(padded_params) - 1:
            h = 1.0 / (1.0 + jnp.exp(-z))
        else:
            h = jnp.maximum(z, 0.0).astype(jnp.bfloat16)
    return h  # (B, 784) float32


if __name__ == "__main__":
    key = jax.random.PRNGKey(0)
    kx, kp = jax.random.split(key)
    B = 512  # bm auto-picks 128 -> grid of 4 parallel steps (>=2 per v7x TensorCore)
    x = jax.random.normal(kx, (B, 784), jnp.float32)
    params = init_params(kp)
    padded_params = fold_and_pad_params(params)

    out = deep_autoencoder(x, padded_params)
    out = jax.block_until_ready(out)

    ref = reference_forward(x, padded_params)
    assert out.shape == (B, 784)
    assert out.dtype == jnp.bfloat16
    # Tolerance covers the bf16 output cast (<= 1 ulp ~ 4e-3 near 1.0) plus the
    # ~2^-12 relative error of the approx reciprocal used for the final Sigmoid.
    assert jnp.allclose(out.astype(jnp.float32), ref.astype(jnp.float32),
                        atol=1e-2, rtol=0.0), "mismatch vs reference"
    print("KERNEL_OK")
</pallas_src>

<mosaic_0001>
module attributes {stable_mosaic.version = 11 : i64} {
  func.func @ae_kernel(%arg0: i32, %arg1: memref<128x784xbf16, #tpu.memory_space<vmem>>, %arg2: memref<784x256xbf16, #tpu.memory_space<vmem>>, %arg3: memref<1x256xf32, #tpu.memory_space<vmem>>, %arg4: memref<256x128xbf16, #tpu.memory_space<vmem>>, %arg5: memref<1x128xf32, #tpu.memory_space<vmem>>, %arg6: memref<128x128xbf16, #tpu.memory_space<vmem>>, %arg7: memref<1x128xf32, #tpu.memory_space<vmem>>, %arg8: memref<128x128xbf16, #tpu.memory_space<vmem>>, %arg9: memref<1x128xf32, #tpu.memory_space<vmem>>, %arg10: memref<128x128xbf16, #tpu.memory_space<vmem>>, %arg11: memref<1x128xf32, #tpu.memory_space<vmem>>, %arg12: memref<128x256xbf16, #tpu.memory_space<vmem>>, %arg13: memref<1x256xf32, #tpu.memory_space<vmem>>, %arg14: memref<256x784xbf16, #tpu.memory_space<vmem>>, %arg15: memref<1x784xf32, #tpu.memory_space<vmem>>, %arg16: memref<128x784xbf16, #tpu.memory_space<vmem>>) attributes {dimension_semantics = [#tpu.dimension_semantics<parallel>], iteration_bounds = array<i64: 4>, scalar_prefetch = 0 : i64, scratch_operands = 0 : i64, tpu.core_type = #tpu.core_type<tc>, window_params = [{transform_indices = @transform_0, window_bounds = array<i64: 128, 784>}, {pipeline_mode = #tpu.pipeline_mode<synchronous>, transform_indices = @transform_1, window_bounds = array<i64: 784, 256>}, {pipeline_mode = #tpu.pipeline_mode<synchronous>, transform_indices = @transform_2, window_bounds = array<i64: 1, 256>}, {pipeline_mode = #tpu.pipeline_mode<synchronous>, transform_indices = @transform_3, window_bounds = array<i64: 256, 128>}, {pipeline_mode = #tpu.pipeline_mode<synchronous>, transform_indices = @transform_4, window_bounds = array<i64: 1, 128>}, {pipeline_mode = #tpu.pipeline_mode<synchronous>, transform_indices = @transform_5, window_bounds = array<i64: 128, 128>}, {pipeline_mode = #tpu.pipeline_mode<synchronous>, transform_indices = @transform_6, window_bounds = array<i64: 1, 128>}, {pipeline_mode = #tpu.pipeline_mode<synchronous>, transform_indices = @transform_7, window_bounds = array<i64: 128, 128>}, {pipeline_mode = #tpu.pipeline_mode<synchronous>, transform_indices = @transform_8, window_bounds = array<i64: 1, 128>}, {pipeline_mode = #tpu.pipeline_mode<synchronous>, transform_indices = @transform_9, window_bounds = array<i64: 128, 128>}, {pipeline_mode = #tpu.pipeline_mode<synchronous>, transform_indices = @transform_10, window_bounds = array<i64: 1, 128>}, {pipeline_mode = #tpu.pipeline_mode<synchronous>, transform_indices = @transform_11, window_bounds = array<i64: 128, 256>}, {pipeline_mode = #tpu.pipeline_mode<synchronous>, transform_indices = @transform_12, window_bounds = array<i64: 1, 256>}, {pipeline_mode = #tpu.pipeline_mode<synchronous>, transform_indices = @transform_13, window_bounds = array<i64: 256, 784>}, {pipeline_mode = #tpu.pipeline_mode<synchronous>, transform_indices = @transform_14, window_bounds = array<i64: 1, 784>}, {transform_indices = @transform_15, window_bounds = array<i64: 128, 784>}]} {
    %c0 = arith.constant 0 : index
    %c0_0 = arith.constant 0 : index
    %0 = vector.load %arg1[%c0, %c0_0] : memref<128x784xbf16, #tpu.memory_space<vmem>>, vector<128x784xbf16>
    %c0_1 = arith.constant 0 : index
    %c0_2 = arith.constant 0 : index
    %1 = vector.load %arg2[%c0_1, %c0_2] : memref<784x256xbf16, #tpu.memory_space<vmem>>, vector<784x256xbf16>
    %c0_3 = arith.constant 0 : index
    %c0_4 = arith.constant 0 : index
    %2 = vector.load %arg3[%c0_3, %c0_4] : memref<1x256xf32, #tpu.memory_space<vmem>>, vector<1x256xf32>
    %cst = arith.constant dense<0.000000e+00> : vector<128x256xf32>
    %3 = tpu.matmul %0, %1, %cst {dimension_numbers = #tpu.dot_dimension_numbers<[1], [0], [0], [1], [0, 0, 1, 1], [], []>} : vector<128x784xbf16>, vector<784x256xbf16>, vector<128x256xf32> -> vector<128x256xf32>
    %4 = vector.broadcast %2 : vector<1x256xf32> to vector<128x256xf32>
    %5 = arith.addf %3, %4 : vector<128x256xf32>
    %cst_5 = arith.constant 0.000000e+00 : f32
    %6 = vector.broadcast %cst_5 : f32 to vector<128x256xf32>
    %7 = arith.maximumf %5, %6 : vector<128x256xf32>
    %8 = arith.truncf %7 : vector<128x256xf32> to vector<128x256xbf16>
    %c0_6 = arith.constant 0 : index
    %c0_7 = arith.constant 0 : index
    %9 = vector.load %arg4[%c0_6, %c0_7] : memref<256x128xbf16, #tpu.memory_space<vmem>>, vector<256x128xbf16>
    %c0_8 = arith.constant 0 : index
    %c0_9 = arith.constant 0 : index
    %10 = vector.load %arg5[%c0_8, %c0_9] : memref<1x128xf32, #tpu.memory_space<vmem>>, vector<1x128xf32>
    %cst_10 = arith.constant dense<0.000000e+00> : vector<128x128xf32>
    %11 = tpu.matmul %8, %9, %cst_10 {dimension_numbers = #tpu.dot_dimension_numbers<[1], [0], [0], [1], [0, 0, 1, 1], [], []>} : vector<128x256xbf16>, vector<256x128xbf16>, vector<128x128xf32> -> vector<128x128xf32>
    %12 = vector.broadcast %10 : vector<1x128xf32> to vector<128x128xf32>
    %13 = arith.addf %11, %12 : vector<128x128xf32>
    %cst_11 = arith.constant 0.000000e+00 : f32
    %14 = vector.broadcast %cst_11 : f32 to vector<128x128xf32>
    %15 = arith.maximumf %13, %14 : vector<128x128xf32>
    %16 = arith.truncf %15 : vector<128x128xf32> to vector<128x128xbf16>
    %c0_12 = arith.constant 0 : index
    %c0_13 = arith.constant 0 : index
    %17 = vector.load %arg6[%c0_12, %c0_13] : memref<128x128xbf16, #tpu.memory_space<vmem>>, vector<128x128xbf16>
    %c0_14 = arith.constant 0 : index
    %c0_15 = arith.constant 0 : index
    %18 = vector.load %arg7[%c0_14, %c0_15] : memref<1x128xf32, #tpu.memory_space<vmem>>, vector<1x128xf32>
    %cst_16 = arith.constant dense<0.000000e+00> : vector<128x128xf32>
    %19 = tpu.matmul %16, %17, %cst_16 {dimension_numbers = #tpu.dot_dimension_numbers<[1], [0], [0], [1], [0, 0, 1, 1], [], []>} : vector<128x128xbf16>, vector<128x128xbf16>, vector<128x128xf32> -> vector<128x128xf32>
    %20 = vector.broadcast %18 : vector<1x128xf32> to vector<128x128xf32>
    %21 = arith.addf %19, %20 : vector<128x128xf32>
    %cst_17 = arith.constant 0.000000e+00 : f32
    %22 = vector.broadcast %cst_17 : f32 to vector<128x128xf32>
    %23 = arith.maximumf %21, %22 : vector<128x128xf32>
    %24 = arith.truncf %23 : vector<128x128xf32> to vector<128x128xbf16>
    %c0_18 = arith.constant 0 : index
    %c0_19 = arith.constant 0 : index
    %25 = vector.load %arg8[%c0_18, %c0_19] : memref<128x128xbf16, #tpu.memory_space<vmem>>, vector<128x128xbf16>
    %c0_20 = arith.constant 0 : index
    %c0_21 = arith.constant 0 : index
    %26 = vector.load %arg9[%c0_20, %c0_21] : memref<1x128xf32, #tpu.memory_space<vmem>>, vector<1x128xf32>
    %cst_22 = arith.constant dense<0.000000e+00> : vector<128x128xf32>
    %27 = tpu.matmul %24, %25, %cst_22 {dimension_numbers = #tpu.dot_dimension_numbers<[1], [0], [0], [1], [0, 0, 1, 1], [], []>} : vector<128x128xbf16>, vector<128x128xbf16>, vector<128x128xf32> -> vector<128x128xf32>
    %28 = vector.broadcast %26 : vector<1x128xf32> to vector<128x128xf32>
    %29 = arith.addf %27, %28 : vector<128x128xf32>
    %cst_23 = arith.constant 0.000000e+00 : f32
    %30 = vector.broadcast %cst_23 : f32 to vector<128x128xf32>
    %31 = arith.maximumf %29, %30 : vector<128x128xf32>
    %32 = arith.truncf %31 : vector<128x128xf32> to vector<128x128xbf16>
    %c0_24 = arith.constant 0 : index
    %c0_25 = arith.constant 0 : index
    %33 = vector.load %arg10[%c0_24, %c0_25] : memref<128x128xbf16, #tpu.memory_space<vmem>>, vector<128x128xbf16>
    %c0_26 = arith.constant 0 : index
    %c0_27 = arith.constant 0 : index
    %34 = vector.load %arg11[%c0_26, %c0_27] : memref<1x128xf32, #tpu.memory_space<vmem>>, vector<1x128xf32>
    %cst_28 = arith.constant dense<0.000000e+00> : vector<128x128xf32>
    %35 = tpu.matmul %32, %33, %cst_28 {dimension_numbers = #tpu.dot_dimension_numbers<[1], [0], [0], [1], [0, 0, 1, 1], [], []>} : vector<128x128xbf16>, vector<128x128xbf16>, vector<128x128xf32> -> vector<128x128xf32>
    %36 = vector.broadcast %34 : vector<1x128xf32> to vector<128x128xf32>
    %37 = arith.addf %35, %36 : vector<128x128xf32>
    %cst_29 = arith.constant 0.000000e+00 : f32
    %38 = vector.broadcast %cst_29 : f32 to vector<128x128xf32>
    %39 = arith.maximumf %37, %38 : vector<128x128xf32>
    %40 = arith.truncf %39 : vector<128x128xf32> to vector<128x128xbf16>
    %c0_30 = arith.constant 0 : index
    %c0_31 = arith.constant 0 : index
    %41 = vector.load %arg12[%c0_30, %c0_31] : memref<128x256xbf16, #tpu.memory_space<vmem>>, vector<128x256xbf16>
    %c0_32 = arith.constant 0 : index
    %c0_33 = arith.constant 0 : index
    %42 = vector.load %arg13[%c0_32, %c0_33] : memref<1x256xf32, #tpu.memory_space<vmem>>, vector<1x256xf32>
    %cst_34 = arith.constant dense<0.000000e+00> : vector<128x256xf32>
    %43 = tpu.matmul %40, %41, %cst_34 {dimension_numbers = #tpu.dot_dimension_numbers<[1], [0], [0], [1], [0, 0, 1, 1], [], []>} : vector<128x128xbf16>, vector<128x256xbf16>, vector<128x256xf32> -> vector<128x256xf32>
    %44 = vector.broadcast %42 : vector<1x256xf32> to vector<128x256xf32>
    %45 = arith.addf %43, %44 : vector<128x256xf32>
    %cst_35 = arith.constant 0.000000e+00 : f32
    %46 = vector.broadcast %cst_35 : f32 to vector<128x256xf32>
    %47 = arith.maximumf %45, %46 : vector<128x256xf32>
    %48 = arith.truncf %47 : vector<128x256xf32> to vector<128x256xbf16>
    %c0_36 = arith.constant 0 : index
    %c0_37 = arith.constant 0 : index
    %49 = vector.load %arg14[%c0_36, %c0_37] : memref<256x784xbf16, #tpu.memory_space<vmem>>, vector<256x784xbf16>
    %c0_38 = arith.constant 0 : index
    %c0_39 = arith.constant 0 : index
    %50 = vector.load %arg15[%c0_38, %c0_39] : memref<1x784xf32, #tpu.memory_space<vmem>>, vector<1x784xf32>
    %cst_40 = arith.constant dense<0.000000e+00> : vector<128x784xf32>
    %51 = tpu.matmul %48, %49, %cst_40 {dimension_numbers = #tpu.dot_dimension_numbers<[1], [0], [0], [1], [0, 0, 1, 1], [], []>} : vector<128x256xbf16>, vector<256x784xbf16>, vector<128x784xf32> -> vector<128x784xf32>
    %52 = vector.broadcast %50 : vector<1x784xf32> to vector<128x784xf32>
    %53 = arith.addf %51, %52 : vector<128x784xf32>
    %cst_41 = arith.constant 0.000000e+00 : f32
    %54 = vector.broadcast %cst_41 : f32 to vector<128x784xf32>
    %55 = arith.subf %54, %53 : vector<128x784xf32>
    %56 = math.exp %55 : vector<128x784xf32>
    %cst_42 = arith.constant 1.000000e+00 : f32
    %57 = vector.broadcast %cst_42 : f32 to vector<128x784xf32>
    %58 = arith.addf %57, %56 : vector<128x784xf32>
    %59 = tpu.reciprocal %58 {approx = true} : vector<128x784xf32> -> vector<128x784xf32>
    %60 = arith.truncf %59 : vector<128x784xf32> to vector<128x784xbf16>
    %c0_43 = arith.constant 0 : index
    %c0_44 = arith.constant 0 : index
    %61 = vector.load %arg16[%c0_43, %c0_44] : memref<128x784xbf16, #tpu.memory_space<vmem>>, vector<128x784xbf16>
    tpu.vector_store %arg16[%c0_43, %c0_44], %60 {strides = array<i32>} : memref<128x784xbf16, #tpu.memory_space<vmem>>, vector<128x784xbf16>,
    return
  }
  func.func @transform_0(%arg0: i32) -> (i32, i32) {
    %c0_i32 = arith.constant 0 : i32
    %c0_i32_0 = arith.constant 0 : i32
    return %arg0, %c0_i32 : i32, i32
  }
  func.func @transform_1(%arg0: i32) -> (i32, i32) {
    %c0_i32 = arith.constant 0 : i32
    %c0_i32_0 = arith.constant 0 : i32
    %c0_i32_1 = arith.constant 0 : i32
    return %c0_i32, %c0_i32_0 : i32, i32
  }
  func.func @transform_2(%arg0: i32) -> (i32, i32) {
    %c0_i32 = arith.constant 0 : i32
    %c0_i32_0 = arith.constant 0 : i32
    %c0_i32_1 = arith.constant 0 : i32
    return %c0_i32, %c0_i32_0 : i32, i32
  }
  func.func @transform_3(%arg0: i32) -> (i32, i32) {
    %c0_i32 = arith.constant 0 : i32
    %c0_i32_0 = arith.constant 0 : i32
    %c0_i32_1 = arith.constant 0 : i32
    return %c0_i32, %c0_i32_0 : i32, i32
  }
  func.func @transform_4(%arg0: i32) -> (i32, i32) {
    %c0_i32 = arith.constant 0 : i32
    %c0_i32_0 = arith.constant 0 : i32
    %c0_i32_1 = arith.constant 0 : i32
    return %c0_i32, %c0_i32_0 : i32, i32
  }
  func.func @transform_5(%arg0: i32) -> (i32, i32) {
    %c0_i32 = arith.constant 0 : i32
    %c0_i32_0 = arith.constant 0 : i32
    %c0_i32_1 = arith.constant 0 : i32
    return %c0_i32, %c0_i32_0 : i32, i32
  }
  func.func @transform_6(%arg0: i32) -> (i32, i32) {
    %c0_i32 = arith.constant 0 : i32
    %c0_i32_0 = arith.constant 0 : i32
    %c0_i32_1 = arith.constant 0 : i32
    return %c0_i32, %c0_i32_0 : i32, i32
  }
  func.func @transform_7(%arg0: i32) -> (i32, i32) {
    %c0_i32 = arith.constant 0 : i32
    %c0_i32_0 = arith.constant 0 : i32
    %c0_i32_1 = arith.constant 0 : i32
    return %c0_i32, %c0_i32_0 : i32, i32
  }
  func.func @transform_8(%arg0: i32) -> (i32, i32) {
    %c0_i32 = arith.constant 0 : i32
    %c0_i32_0 = arith.constant 0 : i32
    %c0_i32_1 = arith.constant 0 : i32
    return %c0_i32, %c0_i32_0 : i32, i32
  }
  func.func @transform_9(%arg0: i32) -> (i32, i32) {
    %c0_i32 = arith.constant 0 : i32
    %c0_i32_0 = arith.constant 0 : i32
    %c0_i32_1 = arith.constant 0 : i32
    return %c0_i32, %c0_i32_0 : i32, i32
  }
  func.func @transform_10(%arg0: i32) -> (i32, i32) {
    %c0_i32 = arith.constant 0 : i32
    %c0_i32_0 = arith.constant 0 : i32
    %c0_i32_1 = arith.constant 0 : i32
    return %c0_i32, %c0_i32_0 : i32, i32
  }
  func.func @transform_11(%arg0: i32) -> (i32, i32) {
    %c0_i32 = arith.constant 0 : i32
    %c0_i32_0 = arith.constant 0 : i32
    %c0_i32_1 = arith.constant 0 : i32
    return %c0_i32, %c0_i32_0 : i32, i32
  }
  func.func @transform_12(%arg0: i32) -> (i32, i32) {
    %c0_i32 = arith.constant 0 : i32
    %c0_i32_0 = arith.constant 0 : i32
    %c0_i32_1 = arith.constant 0 : i32
    return %c0_i32, %c0_i32_0 : i32, i32
  }
  func.func @transform_13(%arg0: i32) -> (i32, i32) {
    %c0_i32 = arith.constant 0 : i32
    %c0_i32_0 = arith.constant 0 : i32
    %c0_i32_1 = arith.constant 0 : i32
    return %c0_i32, %c0_i32_0 : i32, i32
  }
  func.func @transform_14(%arg0: i32) -> (i32, i32) {
    %c0_i32 = arith.constant 0 : i32
    %c0_i32_0 = arith.constant 0 : i32
    %c0_i32_1 = arith.constant 0 : i32
    return %c0_i32, %c0_i32_0 : i32, i32
  }
  func.func @transform_15(%arg0: i32) -> (i32, i32) {
    %c0_i32 = arith.constant 0 : i32
    %c0_i32_0 = arith.constant 0 : i32
    return %arg0, %c0_i32 : i32, i32
  }
}

</mosaic_0001>

<bundles_post_ra>
// kernel: tpu_custom_call.1
= control target key start
LH: loop header
LB: loop body
LE: loop exit
PB: predicated region body
PF: predicated region fallthrough
CT: control target
= control target key end

     0   :  { %s7030_s18 = smov 0   ;;  %s8796_s0 = inlined_call_operand.vmem [shape: bf16[512,784], index: 0, kind: input, shape index: {}]   ;;  %s8797_s1 = inlined_call_operand.vmem [shape: bf16[784,256], index: 1, kind: input, shape index: {}]   ;;  %s8798_s2 = inlined_call_operand.vmem [shape: f32[1,256], index: 2, kind: input, shape index: {}]   ;;  %s8799_s3 = inlined_call_operand.vmem [shape: bf16[256,128], index: 3, kind: input, shape index: {}]   ;;  %s8800_s4 = inlined_call_operand.vmem [shape: f32[1,128], index: 4, kind: input, shape index: {}]   ;;  %s8801_s5 = inlined_call_operand.vmem [shape: bf16[128,128], index: 5, kind: input, shape index: {}]   ;;  %s8802_s6 = inlined_call_operand.vmem [shape: f32[1,128], index: 6, kind: input, shape index: {}]   ;;  %s8803_s7 = inlined_call_operand.vmem [shape: bf16[128,128], index: 7, kind: input, shape index: {}]   ;;  %s8804_s8 = inlined_call_operand.vmem [shape: f32[1,128], index: 8, kind: input, shape index: {}]   ;;  %s8805_s9 = inlined_call_operand.vmem [shape: bf16[128,128], index: 9, kind: input, shape index: {}]   ;;  %s8806_s10 = inlined_call_operand.vmem [shape: f32[1,128], index: 10, kind: input, shape index: {}]   ;;  %s8807_s11 = inlined_call_operand.vmem [shape: bf16[128,256], index: 11, kind: input, shape index: {}]   ;;  %s8808_s12 = inlined_call_operand.vmem [shape: f32[1,256], index: 12, kind: input, shape index: {}]   ;;  %s8809_s13 = inlined_call_operand.vmem [shape: bf16[256,784], index: 13, kind: input, shape index: {}]   ;;  %s8810_s14 = inlined_call_operand.vmem [shape: f32[1,784], index: 14, kind: input, shape index: {}]   ;;  %s8811_s15 = inlined_call_operand.vmem [shape: bf16[512,784], index: 15, kind: output, shape index: {}]  }
   0x1 LB: > { %s5286_s19 = sadd.s32 4294967295, %s6947_s18   ;;  %p5290_p0 = scmp.ge.s32.totalorder %s6947_s18, 1  ;;  %s6947_s18 = sphi %s7030_s18, %s25_s18  }
   0x2   : > { %p439_p1 = scmp.lt.s32.totalorder %s6947_s18, 5 }
   0x4   : > { %p440_p2 = pnand %p5290_p0, %p439_p1 }
   0x6   : > { %443 = sbr.rel (%p440_p2) target bundleno = 1830 (0x726), region = 80 }
   0xb   : > { %v6041_v0 = vld [vmem:[%s8797_s1 + $0x74] ss:$8 sps:$4 sm:$0xff]   ;;  %v6045_v2 = vld [vmem:[%s8797_s1 + $0x70] ss:$8 sps:$4 sm:$0xff]   ;;  %v6047_v4 = vld [vmem:[%s8797_s1 + $0x64] ss:$8 sps:$4 sm:$0xff]  }
   0xc   : > { %v6043_v1 = vld [vmem:[%s8797_s1 + $0x174] ss:$8 sps:$4 sm:$0xff]   ;;  %1473 = vmatprep.subr.bf16.mxu0 %v6041_v0  ;;  %v6046_v3 = vld [vmem:[%s8797_s1 + $0x170] ss:$8 sps:$4 sm:$0xff]   ;;  %v6049_v5 = vld [vmem:[%s8797_s1 + $0x164] ss:$8 sps:$4 sm:$0xff]  }
   0xd   : > { %1586 = vmatprep.subr.bf16.mxu1 %v6043_v1  ;;  %1474 = vmatpush1.bf16.msra.mxu0 %v6045_v2  ;;  %v6051_v6 = vld [vmem:[%s8797_s1 + $0x60] ss:$8 sps:$4 sm:$0xff]   ;;  %v6053_v8 = vld [vmem:[%s8797_s1 + $0x54] ss:$8 sps:$4 sm:$0xff]   ;;  %v6057_v10 = vld [vmem:[%s8797_s1 + $0x50] ss:$8 sps:$4 sm:$0xff]  }
   0xe   : > { %1587 = vmatpush1.bf16.msra.mxu1 %v6046_v3  ;;  %1475 = vmatprep.subr.bf16.mxu0 %v6047_v4  ;;  %v6052_v7 = vld [vmem:[%s8797_s1 + $0x160] ss:$8 sps:$4 sm:$0xff]   ;;  %v6055_v9 = vld [vmem:[%s8797_s1 + $0x154] ss:$8 sps:$4 sm:$0xff]   ;;  %v6058_v11 = vld [vmem:[%s8797_s1 + $0x150] ss:$8 sps:$4 sm:$0xff]  }
   0xf   : > { %1588 = vmatprep.subr.bf16.mxu1 %v6049_v5  ;;  %v6059_v12 = vld [vmem:[%s8797_s1 + $0x44] ss:$8 sps:$4 sm:$0xff]   ;;  %v6063_v14 = vld [vmem:[%s8797_s1 + $0x40] ss:$8 sps:$4 sm:$0xff]   ;;  %v6065_v16 = vld [vmem:[%s8797_s1 + $0x34] ss:$8 sps:$4 sm:$0xff]  }
  0x10   : > { %v6061_v13 = vld [vmem:[%s8797_s1 + $0x144] ss:$8 sps:$4 sm:$0xff]   ;;  %v6064_v15 = vld [vmem:[%s8797_s1 + $0x140] ss:$8 sps:$4 sm:$0xff]   ;;  %v6067_v17 = vld [vmem:[%s8797_s1 + $0x134] ss:$8 sps:$4 sm:$0xff]  }
  0x11   : > { %1476 = vmatpush1.bf16.msra.mxu0 %v6051_v6  ;;  %v6069_v18 = vld [vmem:[%s8797_s1 + $0x30] ss:$8 sps:$4 sm:$0xff]   ;;  %v6071_v20 = vld [vmem:[%s8797_s1 + $0x24] ss:$8 sps:$4 sm:$0xff]   ;;  %v6075_v22 = vld [vmem:[%s8797_s1 + $0x20] ss:$8 sps:$4 sm:$0xff]  }
  0x12   : > { %1589 = vmatpush1.bf16.msra.mxu1 %v6052_v7  ;;  %1477 = vmatprep.subr.bf16.mxu0 %v6053_v8  ;;  %v6070_v19 = vld [vmem:[%s8797_s1 + $0x130] ss:$8 sps:$4 sm:$0xff]   ;;  %v6073_v21 = vld [vmem:[%s8797_s1 + $0x124] ss:$8 sps:$4 sm:$0xff]   ;;  %v6076_v23 = vld [vmem:[%s8797_s1 + $0x120] ss:$8 sps:$4 sm:$0xff]  }
  0x13   : > { %1590 = vmatprep.subr.bf16.mxu1 %v6055_v9  ;;  %v6077_v24 = vld [vmem:[%s8797_s1 + $0x14] ss:$8 sps:$4 sm:$0xff]   ;;  %v6081_v26 = vld [vmem:[%s8797_s1 + $0x10] ss:$8 sps:$4 sm:$0xff]   ;;  %v6083_v28 = vld [vmem:[%s8797_s1 + $0x4] ss:$8 sps:$4 sm:$0xff]  }
  0x14   : > { %v6079_v25 = vld [vmem:[%s8797_s1 + $0x114] ss:$8 sps:$4 sm:$0xff]   ;;  %v6082_v27 = vld [vmem:[%s8797_s1 + $0x110] ss:$8 sps:$4 sm:$0xff]   ;;  %v6085_v29 = vld [vmem:[%s8797_s1 + $0x104] ss:$8 sps:$4 sm:$0xff]  }
  0x15   : > { %1478 = vmatpush1.bf16.msra.mxu0 %v6057_v10  ;;  %s5291_s28 = sshll.u32 %s5286_s19, 4  ;;  %v6087_v30 = vld [vmem:[%s8797_s1] ss:$8 sps:$4 sm:$0xff]   ;;  %v6089_v32 = vld [vmem:[%s8797_s1 + $0xf4] ss:$8 sps:$4 sm:$0xff]   ;;  %vm1448_vm0 = vcmask 130048  }
  0x16   : > { %1591 = vmatpush1.bf16.msra.mxu1 %v6058_v11  ;;  %1479 = vmatprep.subr.bf16.mxu0 %v6059_v12  ;;  %v6088_v31 = vld [vmem:[%s8797_s1 + $0x100] ss:$8 sps:$4 sm:$0xff]   ;;  %p490_p3 = scmp.lt.s32.totalorder %s5291_s28, 63  ;;  %v6091_v33 = vld [vmem:[%s8797_s1 + $0x1f4] ss:$8 sps:$4 sm:$0xff]   ;;  %vm5166_vm1 = vcmask 125952  }
  0x17   : > { %1592 = vmatprep.subr.bf16.mxu1 %v6061_v13  ;;  %v6093_v34 = vld [vmem:[%s8797_s1 + $0xf0] ss:$8 sps:$4 sm:$0xff]   ;;  %v6095_v36 = vld [vmem:[%s8797_s1 + $0xe4] ss:$8 sps:$4 sm:$0xff]   ;;  %v6099_v38 = vld [vmem:[%s8797_s1 + $0xe0] ss:$8 sps:$4 sm:$0xff]  }
  0x18   : > { %v6094_v35 = vld [vmem:[%s8797_s1 + $0x1f0] ss:$8 sps:$4 sm:$0xff]   ;;  %s8838_s28 = smov (!%p490_p3, %s5291_s28), 63  ;;  %v6097_v37 = vld [vmem:[%s8797_s1 + $0x1e4] ss:$8 sps:$4 sm:$0xff]  }
  0x19   : > { %1480 = vmatpush1.bf16.msra.mxu0 %v6063_v14  ;;  %v6100_v39 = vld [vmem:[%s8797_s1 + $0x1e0] ss:$8 sps:$4 sm:$0xff]   ;;  %v6101_v40 = vld [vmem:[%s8797_s1 + $0xd4] ss:$8 sps:$4 sm:$0xff]   ;;  %s6031_s24 = smul.u32 28, %s8838_s28 }
  0x1a   : > { %1593 = vmatpush1.bf16.msra.mxu1 %v6064_v15  ;;  %1481 = vmatprep.subr.bf16.mxu0 %v6065_v16  ;;  %v6103_v41 = vld [vmem:[%s8797_s1 + $0x1d4] ss:$8 sps:$4 sm:$0xff]   ;;  %v6105_v42 = vld [vmem:[%s8797_s1 + $0xd0] ss:$8 sps:$4 sm:$0xff]   ;;  %v6107_v44 = vld [vmem:[%s8797_s1 + $0xc4] ss:$8 sps:$4 sm:$0xff]  }
  0x1b   : > { %1594 = vmatprep.subr.bf16.mxu1 %v6067_v17  ;;  %v6106_v43 = vld [vmem:[%s8797_s1 + $0x1d0] ss:$8 sps:$4 sm:$0xff]   ;;  %s7183_s23 = scalar_lea.vmem %s8796_s0, %s6031_s24  ;;  %v6109_v45 = vld [vmem:[%s8797_s1 + $0x1c4] ss:$8 sps:$4 sm:$0xff]   ;;  %v6111_v46 = vld [vmem:[%s8797_s1 + $0xc0] ss:$8 sps:$4 sm:$0xff]   ;;  %s8361_s25 = scalar_lea.vmem %s8811_s15, %s6031_s24 }
  0x1c   : > { %v6112_v47 = vld [vmem:[%s8797_s1 + $0x1c0] ss:$8 sps:$4 sm:$0xff]   ;;  %v6113_v48 = vld [vmem:[%s8797_s1 + $0xb4] ss:$8 sps:$4 sm:$0xff]   ;;  %v6117_v52 = vld [vmem:[%s8797_s1 + $0xb0] ss:$8 sps:$4 sm:$0xff]  }
  0x1d   : > { %1482 = vmatpush1.bf16.msra.mxu0 %v6069_v18  ;;  %v6139_v49 = vld [vmem:[%s7183_s23 + $0x4] ss:$28 sps:$4 sm:$0xff]   ;;  %v6115_v50 = vld [vmem:[%s8797_s1 + $0x1b4] ss:$8 sps:$4 sm:$0xff]   ;;  %v6142_v51 = vld [vmem:[%s7183_s23 + $0xc] ss:$28 sps:$4 sm:$0xff]  }
  0x1e   : > { %1595 = vmatpush1.bf16.msra.mxu1 %v6070_v19  ;;  %1483 = vmatprep.subr.bf16.mxu0 %v6071_v20  ;;  %v6118_v53 = vld [vmem:[%s8797_s1 + $0x1b0] ss:$8 sps:$4 sm:$0xff]   ;;  %v6119_v54 = vld [vmem:[%s8797_s1 + $0xa4] ss:$8 sps:$4 sm:$0xff]   ;;  %v6123_v56 = vld [vmem:[%s8797_s1 + $0xa0] ss:$8 sps:$4 sm:$0xff]  }
  0x1f   : > { %1596 = vmatprep.subr.bf16.mxu1 %v6073_v21  ;;  %1505 = vmatprep.mubr.bf16.mxu0 %v6139_v49  ;;  %v6121_v55 = vld [vmem:[%s8797_s1 + $0x1a4] ss:$8 sps:$4 sm:$0xff]   ;;  %v6124_v57 = vld [vmem:[%s8797_s1 + $0x1a0] ss:$8 sps:$4 sm:$0xff]   ;;  %v6125_v58 = vld [vmem:[%s8797_s1 + $0x94] ss:$8 sps:$4 sm:$0xff]  }
  0x20   : > { %1618 = vmatprep.mubr.bf16.mxu1 %v6142_v51  ;;  %v6127_v59 = vld [vmem:[%s8797_s1 + $0x194] ss:$8 sps:$4 sm:$0xff]   ;;  %v6129_v60 = vld [vmem:[%s8797_s1 + $0x90] ss:$8 sps:$4 sm:$0xff]   ;;  %v6131_v62 = vld [vmem:[%s8797_s1 + $0x84] ss:$8 sps:$4 sm:$0xff]  }
  0x21   : > { %1484 = vmatpush1.bf16.msra.mxu0 %v6075_v22  ;;  %v6130_v61 = vld [vmem:[%s8797_s1 + $0x190] ss:$8 sps:$4 sm:$0xff]   ;;  %v6133_v63 = vld [vmem:[%s8797_s1 + $0x184] ss:$8 sps:$4 sm:$0xff]   ;;  %v6135_v0 = vld [vmem:[%s8797_s1 + $0x80] ss:$8 sps:$4 sm:$0xff]  }
  0x22   : > { %1597 = vmatpush1.bf16.msra.mxu1 %v6076_v23  ;;  %1485 = vmatprep.subr.bf16.mxu0 %v6077_v24  ;;  %v6136_v1 = vld [vmem:[%s8797_s1 + $0x180] ss:$8 sps:$4 sm:$0xff]   ;;  %v6145_v2 = vld [vmem:[%s8797_s1 + $0x274] ss:$8 sps:$4 sm:$0xff]   ;;  %v6148_v3 = vld [vmem:[%s8797_s1 + $0x304] ss:$8 sps:$4 sm:$0xff]  }
  0x23   : > { %1598 = vmatprep.subr.bf16.mxu1 %v6079_v25  ;;  %v6137_v4 = vld [vmem:[%s7183_s23] ss:$28 sps:$4 sm:$0xff]   ;;  %v6140_v5 = vld [vmem:[%s7183_s23 + $0x8] ss:$28 sps:$4 sm:$0xff]   ;;  %v6143_v6 = vld [vmem:[%s8797_s1 + $0x270] ss:$8 sps:$4 sm:$0xff]  }
  0x24   : > { %v6146_v7 = vld [vmem:[%s8797_s1 + $0x300] ss:$8 sps:$4 sm:$0xff]   ;;  %v6151_v8 = vld [vmem:[%s8797_s1 + $0x264] ss:$8 sps:$4 sm:$0xff]   ;;  %v6152_v9 = vld [vmem:[%s7183_s23 + $0x3c] ss:$28 sps:$4 sm:$0xff]  }
  0x25   : > { %1486 = vmatpush1.bf16.msra.mxu0 %v6081_v26  ;;  %v6154_v10 = vld [vmem:[%s7183_s23 + $0x44] ss:$28 sps:$4 sm:$0xff]   ;;  %v6160_v12 = vld [vmem:[%s8797_s1 + $0x254] ss:$8 sps:$4 sm:$0xff]   ;;  %v6158_v15 = vld [vmem:[%s8797_s1 + $0x250] ss:$8 sps:$4 sm:$0xff]  }
  0x26   : > { %1599 = vmatpush1.bf16.msra.mxu1 %v6082_v27  ;;  %1487 = vmatprep.subr.bf16.mxu0 %v6083_v28  ;;  %v6149_v11 = vld [vmem:[%s8797_s1 + $0x260] ss:$8 sps:$4 sm:$0xff]   ;;  %v6156_v13 = vld [vmem:[%s7183_s23 + $0x38] ss:$28 sps:$4 sm:$0xff]   ;;  %v6163_v16 = vld [vmem:[%s8797_s1 + $0x244] ss:$8 sps:$4 sm:$0xff]  }
  0x27   : > { %1600 = vmatprep.subr.bf16.mxu1 %v6085_v29  ;;  %v6157_v14 = vld [vmem:[%s7183_s23 + $0x40] ss:$28 sps:$4 sm:$0xff]   ;;  %v6164_v17 = vld [vmem:[%s7183_s23 + $0x74] ss:$28 sps:$4 sm:$0xff]   ;;  %v6175_v24 = vld [vmem:[%s8797_s1 + $0x224] ss:$8 sps:$4 sm:$0xff]  }
  0x28   : > { %v6166_v18 = vld [vmem:[%s7183_s23 + $0x7c] ss:$28 sps:$4 sm:$0xff]   ;;  %v6161_v19 = vld [vmem:[%s8797_s1 + $0x240] ss:$8 sps:$4 sm:$0xff]   ;;  %v6168_v21 = vld [vmem:[%s7183_s23 + $0x70] ss:$28 sps:$4 sm:$0xff]  }
  0x29   : > { %1488 = vmatpush1.bf16.msra.mxu0 %v6087_v30  ;;  %v6172_v20 = vld [vmem:[%s8797_s1 + $0x234] ss:$8 sps:$4 sm:$0xff]   ;;  %v6170_v23 = vld [vmem:[%s8797_s1 + $0x230] ss:$8 sps:$4 sm:$0xff]   ;;  %v6176_v25 = vld [vmem:[%s7183_s23 + $0xac] ss:$28 sps:$4 sm:$0xff]  }
  0x2a   : > { %1601 = vmatpush1.bf16.msra.mxu1 %v6088_v31  ;;  %1489 = vmatprep.subr.bf16.mxu0 %v6089_v32  ;;  %v6169_v22 = vld [vmem:[%s7183_s23 + $0x78] ss:$28 sps:$4 sm:$0xff]   ;;  %v6173_v27 = vld [vmem:[%s8797_s1 + $0x220] ss:$8 sps:$4 sm:$0xff]   ;;  %v6181_v30 = vld [vmem:[%s7183_s23 + $0xb0] ss:$28 sps:$4 sm:$0xff]  }
  0x2b   : > { %1602 = vmatprep.subr.bf16.mxu1 %v6091_v33  ;;  %v6178_v26 = vld [vmem:[%s7183_s23 + $0xb4] ss:$28 sps:$4 sm:$0xff]   ;;  %v6180_v29 = vld [vmem:[%s7183_s23 + $0xa8] ss:$28 sps:$4 sm:$0xff]  }
  0x2c   : > { %v6184_v28 = vld [vmem:[%s8797_s1 + $0x214] ss:$8 sps:$4 sm:$0xff]   ;;  %v6182_v31 = vld [vmem:[%s8797_s1 + $0x210] ss:$8 sps:$4 sm:$0xff]   ;;  %v6187_v32 = vld [vmem:[%s8797_s1 + $0x204] ss:$8 sps:$4 sm:$0xff]  }
  0x2d   : > { %1490 = vmatpush2.bf16.msra.mxu0 %v6093_v34  ;;  %v6188_v33 = vld [vmem:[%s7183_s23 + $0xe4] ss:$28 sps:$4 sm:$0xff]   ;;  %v6190_v34 = vld [vmem:[%s7183_s23 + $0xec] ss:$28 sps:$4 sm:$0xff]  }
  0x2e   : > { %1603 = vmatpush2.bf16.msra.mxu1 %v6094_v35  ;;  %1491 = vmatprep.subr.bf16.mxu0 %v6095_v36  ;;  %v6185_v35 = vld [vmem:[%s8797_s1 + $0x200] ss:$8 sps:$4 sm:$0xff]   ;;  %v6211_v49 = vld [vmem:[%s8797_s1 + $0x2c4] ss:$8 sps:$4 sm:$0xff]  }
  0x2f   : > { %1604 = vmatprep.subr.bf16.mxu1 %v6097_v37  ;;  %v6192_v36 = vld [vmem:[%s7183_s23 + $0xe0] ss:$28 sps:$4 sm:$0xff]  }
  0x30   : > { %v6196_v37 = vld [vmem:[%s8797_s1 + $0x2f4] ss:$8 sps:$4 sm:$0xff]   ;;  %v6209_v51 = vld [vmem:[%s8797_s1 + $0x2c0] ss:$8 sps:$4 sm:$0xff]  }
  0x31   : > { %1492 = vmatpush2.bf16.msra.mxu0 %v6099_v38  ;;  %v6193_v38 = vld [vmem:[%s7183_s23 + $0xe8] ss:$28 sps:$4 sm:$0xff]  }
  0x32   : > { %1605 = vmatpush2.bf16.msra.mxu1 %v6100_v39  ;;  %1493 = vmatprep.subr.bf16.mxu0 %v6101_v40  ;;  %v6194_v39 = vld [vmem:[%s8797_s1 + $0x2f0] ss:$8 sps:$4 sm:$0xff]   ;;  %v6199_v40 = vld [vmem:[%s8797_s1 + $0x2e4] ss:$8 sps:$4 sm:$0xff]  }
  0x33   : > { %1606 = vmatprep.subr.bf16.mxu1 %v6103_v41  ;;  %v6200_v41 = vld [vmem:[%s7183_s23 + $0x11c] ss:$28 sps:$4 sm:$0xff]  }
  0x35   : > { %1494 = vmatpush2.bf16.msra.mxu0 %v6105_v42  ;;  %v6202_v42 = vld [vmem:[%s7183_s23 + $0x124] ss:$28 sps:$4 sm:$0xff]  }
  0x36   : > { %1607 = vmatpush2.bf16.msra.mxu1 %v6106_v43  ;;  %1495 = vmatprep.subr.bf16.mxu0 %v6107_v44  ;;  %v6197_v43 = vld [vmem:[%s8797_s1 + $0x2e0] ss:$8 sps:$4 sm:$0xff]   ;;  %v6204_v44 = vld [vmem:[%s7183_s23 + $0x118] ss:$28 sps:$4 sm:$0xff]  }
  0x37   : > { %1608 = vmatprep.subr.bf16.mxu1 %v6109_v45  ;;  %v6208_v45 = vld [vmem:[%s8797_s1 + $0x2d4] ss:$8 sps:$4 sm:$0xff]  }
  0x39   : > { %1496 = vmatpush2.bf16.msra.mxu0 %v6111_v46  ;;  %v6205_v46 = vld [vmem:[%s7183_s23 + $0x120] ss:$28 sps:$4 sm:$0xff]  }
  0x3a   : > { %1609 = vmatpush2.bf16.msra.mxu1 %v6112_v47  ;;  %1497 = vmatprep.subr.bf16.mxu0 %v6113_v48  ;;  %v6206_v47 = vld [vmem:[%s8797_s1 + $0x2d0] ss:$8 sps:$4 sm:$0xff]  }
  0x3b   : > { %1610 = vmatprep.subr.bf16.mxu1 %v6115_v50  ;;  %v6212_v48 = vld [vmem:[%s7183_s23 + $0x154] ss:$28 sps:$4 sm:$0xff]   ;;  %v6214_v50 = vld [vmem:[%s7183_s23 + $0x15c] ss:$28 sps:$4 sm:$0xff]  }
  0x3d   : > { %1498 = vmatpush2.bf16.msra.mxu0 %v6117_v52  ;;  %v6220_v52 = vld [vmem:[%s8797_s1 + $0x2b4] ss:$8 sps:$4 sm:$0xff]  }
  0x3e   : > { %1611 = vmatpush2.bf16.msra.mxu1 %v6118_v53  ;;  %1499 = vmatprep.subr.bf16.mxu0 %v6119_v54  ;;  %v6216_v53 = vld [vmem:[%s7183_s23 + $0x150] ss:$28 sps:$4 sm:$0xff]   ;;  %v6217_v54 = vld [vmem:[%s7183_s23 + $0x158] ss:$28 sps:$4 sm:$0xff]  }
  0x3f   : > { %1612 = vmatprep.subr.bf16.mxu1 %v6121_v55  ;;  %v6218_v55 = vld [vmem:[%s8797_s1 + $0x2b0] ss:$8 sps:$4 sm:$0xff]  }
  0x41   : > { %1500 = vmatpush2.bf16.msra.mxu0 %v6123_v56  ;;  %v6224_v56 = vld [vmem:[%s7183_s23 + $0x18c] ss:$28 sps:$4 sm:$0xff]  }
  0x42   : > { %1613 = vmatpush2.bf16.msra.mxu1 %v6124_v57  ;;  %1501 = vmatprep.subr.bf16.mxu0 %v6125_v58  ;;  %v6223_v57 = vld [vmem:[%s8797_s1 + $0x2a4] ss:$8 sps:$4 sm:$0xff]   ;;  %v6226_v58 = vld [vmem:[%s7183_s23 + $0x194] ss:$28 sps:$4 sm:$0xff]  }
  0x43   : > { %1614 = vmatprep.subr.bf16.mxu1 %v6127_v59  ;;  %v6221_v59 = vld [vmem:[%s8797_s1 + $0x2a0] ss:$8 sps:$4 sm:$0xff]  }
  0x45   : > { %1502 = vmatpush2.bf16.msra.mxu0 %v6129_v60  ;;  %v6232_v60 = vld [vmem:[%s8797_s1 + $0x294] ss:$8 sps:$4 sm:$0xff]  }
  0x46   : > { %1615 = vmatpush2.bf16.msra.mxu1 %v6130_v61  ;;  %1503 = vmatprep.subr.bf16.mxu0 %v6131_v62  ;;  %v6228_v61 = vld [vmem:[%s7183_s23 + $0x188] ss:$28 sps:$4 sm:$0xff]   ;;  %v6229_v62 = vld [vmem:[%s7183_s23 + $0x190] ss:$28 sps:$4 sm:$0xff]  }
  0x47   : > { %1616 = vmatprep.subr.bf16.mxu1 %v6133_v63  ;;  %v6230_v63 = vld [vmem:[%s8797_s1 + $0x290] ss:$8 sps:$4 sm:$0xff]  }
  0x49   : > { %1504 = vmatpush2.bf16.msra.mxu0 %v6135_v0  ;;  %v6238_v0 = vld [vmem:[%s7183_s23 + $0x14] ss:$28 sps:$4 sm:$0xff]  }
  0x4a   : > { %1617 = vmatpush2.bf16.msra.mxu1 %v6136_v1  ;;  %1699 = vmatprep.subr.bf16.mxu0 %v6145_v2  ;;  %v6235_v1 = vld [vmem:[%s8797_s1 + $0x284] ss:$8 sps:$4 sm:$0xff]   ;;  %v6233_v2 = vld [vmem:[%s8797_s1 + $0x280] ss:$8 sps:$4 sm:$0xff]  }
  0x4b   : > { %1826 = vmatprep.subr.bf16.mxu1 %v6148_v3  ;;  %v6236_v3 = vld [vmem:[%s7183_s23 + $0x10] ss:$28 sps:$4 sm:$0xff]  }
  0x4c   : > { %1506 = vmatmul.mubr.bf16.vlgmr.msra.gmra.mxu0 %v6137_v4  ;;  %v8812_v4 = vmov 0  }
  0x4d   : > { %1619 = vmatmul.mubr.bf16.vlgmr.msra.gmra.mxu1 %v6140_v5  ;;  %1700 = vmatpush1.bf16.msra.mxu0 %v6143_v6  ;;  %v6239_v5 = vld [vmem:[%s7183_s23 + $0x18] ss:$28 sps:$4 sm:$0xff]   ;;  %v6240_v6 = vld [vmem:[%s7183_s23 + $0x4c] ss:$28 sps:$4 sm:$0xff]  }
  0x4e   : > { %1827 = vmatpush1.bf16.msra.mxu1 %v6146_v7  ;;  %1701 = vmatprep.subr.bf16.mxu0 %v6151_v8  ;;  %v6242_v7 = vld [vmem:[%s7183_s23 + $0x48] ss:$28 sps:$4 sm:$0xff]   ;;  %v6243_v8 = vld [vmem:[%s7183_s23 + $0x50] ss:$28 sps:$4 sm:$0xff]  }
  0x4f   : > { %1515 = vmatprep.mubr.bf16.mxu0 %v6152_v9  ;;  %1628 = vmatprep.mubr.bf16.mxu1 %v6154_v10  ;;  %v6244_v9 = vld [vmem:[%s7183_s23 + $0x84] ss:$28 sps:$4 sm:$0xff]  }
  0x50   : > { %v6246_v10 = vld [vmem:[%s7183_s23 + $0x80] ss:$28 sps:$4 sm:$0xff]  }
  0x51   : > { %1702 = vmatpush1.bf16.msra.mxu0 %v6149_v11  ;;  %v6247_v11 = vld [vmem:[%s7183_s23 + $0x88] ss:$28 sps:$4 sm:$0xff]  }
  0x52   : > { %1703 = vmatprep.subr.bf16.mxu0 %v6160_v12  ;;  %v6248_v12 = vld [vmem:[%s7183_s23 + $0xbc] ss:$28 sps:$4 sm:$0xff]  }
  0x54   : > { %1516 = vmatmul.mubr.bf16.gmra.mxu0 %v6156_v13  ;;  %v6250_v13 = vld [vmem:[%s7183_s23 + $0xb8] ss:$28 sps:$4 sm:$0xff]  }
  0x55   : > { %1629 = vmatmul.mubr.bf16.gmra.mxu1 %v6157_v14  ;;  %1704 = vmatpush1.bf16.msra.mxu0 %v6158_v15  ;;  %v6251_v14 = vld [vmem:[%s7183_s23 + $0xc0] ss:$28 sps:$4 sm:$0xff]   ;;  %v6252_v15 = vld [vmem:[%s7183_s23 + $0xf4] ss:$28 sps:$4 sm:$0xff]  }
  0x56   : > { %1525 = vmatprep.mubr.bf16.mxu0 %v6164_v17  ;;  %1705 = vmatprep.subr.bf16.mxu0 %v6163_v16  ;;  %v6268_v16 = vld [vmem:[%s8799_s3 + $0x78] sm:$0xff]  }
  0x57   : > { %1638 = vmatprep.mubr.bf16.mxu1 %v6166_v18  ;;  %v6269_v17 = vld [vmem:[%s8799_s3 + $0x38] sm:$0xff]   ;;  %v6254_v18 = vld [vmem:[%s7183_s23 + $0xf0] ss:$28 sps:$4 sm:$0xff]  }
  0x59   : > { %1706 = vmatpush1.bf16.msra.mxu0 %v6161_v19  ;;  %v6255_v19 = vld [vmem:[%s7183_s23 + $0xf8] ss:$28 sps:$4 sm:$0xff]  }
  0x5a   : > { %1707 = vmatprep.subr.bf16.mxu0 %v6172_v20  ;;  %v6256_v20 = vld [vmem:[%s7183_s23 + $0x12c] ss:$28 sps:$4 sm:$0xff]  }
  0x5c   : > { %1526 = vmatmul.mubr.bf16.gmra.mxu0 %v6168_v21  ;;  %v6270_v21 = vld [vmem:[%s8799_s3 + $0x70] sm:$0xff]  }
  0x5d   : > { %1639 = vmatmul.mubr.bf16.gmra.mxu1 %v6169_v22  ;;  %1708 = vmatpush1.bf16.msra.mxu0 %v6170_v23  ;;  %v6271_v22 = vld [vmem:[%s8799_s3 + $0x30] sm:$0xff]   ;;  %v6258_v23 = vld [vmem:[%s7183_s23 + $0x128] ss:$28 sps:$4 sm:$0xff]  }
  0x5e   : > { %1535 = vmatprep.mubr.bf16.mxu0 %v6176_v25  ;;  %1709 = vmatprep.subr.bf16.mxu0 %v6175_v24  ;;  %v6259_v24 = vld [vmem:[%s7183_s23 + $0x130] ss:$28 sps:$4 sm:$0xff]   ;;  %v6260_v25 = vld [vmem:[%s7183_s23 + $0x164] ss:$28 sps:$4 sm:$0xff]  }
  0x5f   : > { %1648 = vmatprep.mubr.bf16.mxu1 %v6178_v26  ;;  %v6272_v26 = vld [vmem:[%s8799_s3 + $0x68] sm:$0xff]  }
  0x61   : > { %1710 = vmatpush1.bf16.msra.mxu0 %v6173_v27  ;;  %v6273_v27 = vld [vmem:[%s8799_s3 + $0x28] sm:$0xff]  }
  0x62   : > { %1711 = vmatprep.subr.bf16.mxu0 %v6184_v28  ;;  %v6262_v28 = vld [vmem:[%s7183_s23 + $0x160] ss:$28 sps:$4 sm:$0xff]  }
  0x64   : > { %1536 = vmatmul.mubr.bf16.gmra.mxu0 %v6180_v29  ;;  %v6263_v29 = vld [vmem:[%s7183_s23 + $0x168] ss:$28 sps:$4 sm:$0xff]  }
  0x65   : > { %1649 = vmatmul.mubr.bf16.gmra.mxu1 %v6181_v30  ;;  %1712 = vmatpush1.bf16.msra.mxu0 %v6182_v31  ;;  %v6264_v30 = vld [vmem:[%s7183_s23 + $0x19c] ss:$28 sps:$4 sm:$0xff]   ;;  %v6274_v31 = vld [vmem:[%s8799_s3 + $0x60] sm:$0xff]  }
  0x66   : > { %1545 = vmatprep.mubr.bf16.mxu0 %v6188_v33  ;;  %1713 = vmatprep.subr.bf16.mxu0 %v6187_v32  ;;  %v6275_v32 = vld [vmem:[%s8799_s3 + $0x20] sm:$0xff]   ;;  %v6266_v33 = vld [vmem:[%s7183_s23 + $0x198] ss:$28 sps:$4 sm:$0xff]  }
  0x67   : > { %1658 = vmatprep.mubr.bf16.mxu1 %v6190_v34  ;;  %v6276_v34 = vld [vmem:[%s8799_s3 + $0x58] sm:$0xff]  }
  0x69   : > { %1714 = vmatpush1.bf16.msra.mxu0 %v6185_v35  ;;  %v6277_v35 = vld [vmem:[%s8799_s3 + $0x18] sm:$0xff]  }
  0x6a   : > { %1715 = vmatprep.subr.bf16.mxu0 %v6196_v37  ;;  %v6278_v37 = vld [vmem:[%s8799_s3 + $0x50] sm:$0xff]  }
  0x6c   : > { %1546 = vmatmul.mubr.bf16.gmra.mxu0 %v6192_v36  ;;  %v6267_v36 = vld [vmem:[%s7183_s23 + $0x1a0] ss:$28 sps:$4 sm:$0xff]  }
  0x6d   : > { %1659 = vmatmul.mubr.bf16.gmra.mxu1 %v6193_v38  ;;  %1716 = vmatpush2.bf16.msra.mxu0 %v6194_v39  ;;  %v6279_v38 = vld [vmem:[%s8799_s3 + $0x10] sm:$0xff]   ;;  %v6280_v39 = vld [vmem:[%s8799_s3 + $0x48] sm:$0xff]  }
  0x6e   : > { %1555 = vmatprep.mubr.bf16.mxu0 %v6200_v41  ;;  %1717 = vmatprep.subr.bf16.mxu0 %v6199_v40  ;;  %v6281_v40 = vld [vmem:[%s8799_s3 + $0x8] sm:$0xff]   ;;  %v6282_v41 = vld [vmem:[%s8799_s3 + $0x40] sm:$0xff]  }
  0x6f   : > { %1668 = vmatprep.mubr.bf16.mxu1 %v6202_v42  ;;  %v6283_v42 = vld [vmem:[%s8799_s3] sm:$0xff]  }
  0x71   : > { %1718 = vmatpush2.bf16.msra.mxu0 %v6197_v43  ;;  %v668_v43 = vlaneseq }
  0x72   : > { %1719 = vmatprep.subr.bf16.mxu0 %v6208_v45 }
  0x74   : > { %1556 = vmatmul.mubr.bf16.gmra.mxu0 %v6204_v44  ;;  %v7464_v44 = vshrl.u32 %v668_v43, 7 }
  0x75   : > { %1669 = vmatmul.mubr.bf16.gmra.mxu1 %v6205_v46  ;;  %1720 = vmatpush2.bf16.msra.mxu0 %v6206_v47  ;;  %v666_v46 = vld [vmem:[%s8798_s2] sm:$0x3] }
  0x76   : > { %1565 = vmatprep.mubr.bf16.mxu0 %v6212_v48  ;;  %1721 = vmatprep.subr.bf16.mxu0 %v6211_v49  ;;  %8820 = vst [vmem:[#allocation2_spill] sm:$0xff] %v7464_v44  ;;  %v7467_v45 = vsub.s32 0, %v7464_v44  ;;  %v7473_v47 = vsub.s32 1, %v7464_v44 }
  0x77   : > { %1678 = vmatprep.mubr.bf16.mxu1 %v6214_v50 }
  0x78   : > { %8821 = vst [vmem:[#allocation3_spill] sm:$0xff] %v7467_v45  ;;  %8822 = vst [vmem:[#allocation4_spill] sm:$0xff] %v7473_v47  ;;  %v7476_v48 = vrot.slane %v666_v46, %v7467_v45  ;;  %v7479_v49 = vrot.slane %v666_v46, %v7473_v47 }
  0x79   : > { %1722 = vmatpush2.bf16.msra.mxu0 %v6209_v51 }
  0x7a   : > { %1723 = vmatprep.subr.bf16.mxu0 %v6220_v52 }
  0x7c   : > { %1566 = vmatmul.mubr.bf16.gmra.mxu0 %v6216_v53 }
  0x7d   : > { %1679 = vmatmul.mubr.bf16.gmra.mxu1 %v6217_v54  ;;  %1724 = vmatpush2.bf16.msra.mxu0 %v6218_v55 }
  0x7e   : > { %1575 = vmatprep.mubr.bf16.mxu0 %v6224_v56  ;;  %1725 = vmatprep.subr.bf16.mxu0 %v6223_v57 }
  0x7f   : > { %1688 = vmatprep.mubr.bf16.mxu1 %v6226_v58 }
  0x81   : > { %1726 = vmatpush2.bf16.msra.mxu0 %v6221_v59 }
  0x82   : > { %1727 = vmatprep.subr.bf16.mxu0 %v6232_v60 }
  0x84   : > { %1576 = vmatmul.mubr.bf16.gmra.mxu0 %v6228_v61 }
  0x85   : > { %1689 = vmatmul.mubr.bf16.gmra.mxu1 %v6229_v62  ;;  %1728 = vmatpush2.bf16.msra.mxu0 %v6230_v63 }
  0x86   : > { %1731 = vmatprep.mubr.bf16.mxu0 %v6238_v0  ;;  %1729 = vmatprep.subr.bf16.mxu0 %v6235_v1  ;;  %v6284_v0 = vld [vmem:[%s8801_s5 + $0x38] sm:$0xff]   ;;  %v6285_v1 = vld [vmem:[%s8801_s5 + $0x30] sm:$0xff]  }
  0x87   : > { %1844 = vmatprep.mubr.bf16.mxu1 %v8812_v4  ;;  %5935 = vmatprep.subr.bf16.mxu1 %v6284_v0 }
  0x89   : > { %1730 = vmatpush2.bf16.msra.mxu0 %v6233_v2 }
  0x8a   : > { %5759 = vmatprep.subr.bf16.mxu0 %v6268_v16  ;;  %v6287_v16 = vld [vmem:[%s8801_s5 + $0x20] sm:$0xff]  }
  0x8c   : > { %1732 = vmatmul.mubr.bf16.vlgmr.msra.gmra.mxu0 %v6236_v3 }
  0x8d   : > { %5449 = vmatmul.mubr.msk.bf16.vlgmr.msra.gmra.mxu1 %vm1448_vm0, %v6239_v5  ;;  %1741 = vmatprep.mubr.bf16.mxu0 %v6240_v6 }
  0x8e   : > { %1854 = vmatprep.mubr.bf16.mxu1 %v8812_v4  ;;  %5760 = vmatpush3.bf16.msra.mxu0 %v6269_v17 }
  0x8f   : > { %5761 = vmatprep.subr.bf16.mxu0 %v6270_v21  ;;  %5936 = vmatpush3.bf16.msra.mxu1 %v6284_v0 }
  0x90   : > { %5937 = vmatprep.subr.bf16.mxu1 %v6285_v1 }
  0x92   : > { %5762 = vmatpush3.bf16.msra.mxu0 %v6271_v22 }
  0x93   : > { %5763 = vmatprep.subr.bf16.mxu0 %v6272_v26  ;;  %5938 = vmatpush3.bf16.msra.mxu1 %v6285_v1 }
  0x94   : > { %1742 = vmatmul.mubr.bf16.gmra.mxu0 %v6242_v7 }
  0x95   : > { %5450 = vmatmul.mubr.msk.bf16.gmra.mxu1 %vm1448_vm0, %v6243_v8  ;;  %1751 = vmatprep.mubr.bf16.mxu0 %v6244_v9 }
  0x96   : > { %1864 = vmatprep.mubr.bf16.mxu1 %v8812_v4  ;;  %5764 = vmatpush3.bf16.msra.mxu0 %v6273_v27 }
  0x97   : > { %5765 = vmatprep.subr.bf16.mxu0 %v6274_v31 }
  0x9a   : > { %5766 = vmatpush3.bf16.msra.mxu0 %v6275_v32 }
  0x9b   : > { %5767 = vmatprep.subr.bf16.mxu0 %v6276_v34 }
  0x9c   : > { %1752 = vmatmul.mubr.bf16.gmra.mxu0 %v6246_v10  ;;  %v6286_v10 = vld [vmem:[%s8801_s5 + $0x28] sm:$0xff]  }
  0x9d   : > { %5451 = vmatmul.mubr.msk.bf16.gmra.mxu1 %vm1448_vm0, %v6247_v11  ;;  %1761 = vmatprep.mubr.bf16.mxu0 %v6248_v12 }
  0x9e   : > { %1874 = vmatprep.mubr.bf16.mxu1 %v8812_v4  ;;  %5768 = vmatpush3.bf16.msra.mxu0 %v6277_v35 }
  0x9f   : > { %5769 = vmatprep.subr.bf16.mxu0 %v6278_v37  ;;  %5939 = vmatprep.subr.bf16.mxu1 %v6286_v10 }
  0xa0   : > { %5940 = vmatpush3.bf16.msra.mxu1 %v6286_v10 }
  0xa1   : > { %5941 = vmatprep.subr.bf16.mxu1 %v6287_v16 }
  0xa2   : > { %5770 = vmatpush3.bf16.msra.mxu0 %v6279_v38 }
  0xa3   : > { %5771 = vmatprep.subr.bf16.mxu0 %v6280_v39 }
  0xa4   : > { %1762 = vmatmul.mubr.bf16.gmra.mxu0 %v6250_v13  ;;  %5942 = vmatpush3.bf16.msra.mxu1 %v6287_v16 }
  0xa5   : > { %5452 = vmatmul.mubr.msk.bf16.gmra.mxu1 %vm1448_vm0, %v6251_v14  ;;  %1771 = vmatprep.mubr.bf16.mxu0 %v6252_v15 }
  0xa6   : > { %1884 = vmatprep.mubr.bf16.mxu1 %v8812_v4  ;;  %5772 = vmatpush3.bf16.msra.mxu0 %v6281_v40 }
  0xa7   : > { %5773 = vmatprep.subr.bf16.mxu0 %v6282_v41 }
  0xaa   : > { %5774 = vmatpush3.bf16.msra.mxu0 %v6283_v42 }
  0xac   : > { %1772 = vmatmul.mubr.bf16.gmra.mxu0 %v6254_v18 }
  0xad   : > { %5453 = vmatmul.mubr.msk.bf16.gmra.mxu1 %vm1448_vm0, %v6255_v19  ;;  %1781 = vmatprep.mubr.bf16.mxu0 %v6256_v20 }
  0xae   : > { %1894 = vmatprep.mubr.bf16.mxu1 %v8812_v4 }
  0xb4   : > { %1782 = vmatmul.mubr.bf16.gmra.mxu0 %v6258_v23 }
  0xb5   : > { %5454 = vmatmul.mubr.msk.bf16.gmra.mxu1 %vm1448_vm0, %v6259_v24  ;;  %1791 = vmatprep.mubr.bf16.mxu0 %v6260_v25  ;;  %v6288_v24 = vld [vmem:[%s8801_s5 + $0x18] sm:$0xff]  }
  0xb6   : > { %1904 = vmatprep.mubr.bf16.mxu1 %v8812_v4  ;;  %5943 = vmatprep.subr.bf16.mxu1 %v6288_v24 }
  0xb7   : > { %5944 = vmatpush3.bf16.msra.mxu1 %v6288_v24 }
  0xbc   : > { %1792 = vmatmul.mubr.bf16.gmra.mxu0 %v6262_v28 }
  0xbd   : > { %5455 = vmatmul.mubr.msk.bf16.gmra.mxu1 %vm1448_vm0, %v6263_v29  ;;  %1801 = vmatprep.mubr.bf16.mxu0 %v6264_v30  ;;  %v6289_v30 = vld [vmem:[%s8801_s5 + $0x10] sm:$0xff]  }
  0xbe   : > { %1914 = vmatprep.mubr.bf16.mxu1 %v8812_v4  ;;  %5945 = vmatprep.subr.bf16.mxu1 %v6289_v30 }
  0xbf   : > { %5946 = vmatpush3.bf16.msra.mxu1 %v6289_v30 }
  0xc4   : > { %1802 = vmatmul.mubr.bf16.gmra.mxu0 %v6266_v33 }
  0xc5   : > { %5456 = vmatmul.mubr.msk.bf16.gmra.mxu1 %vm1448_vm0, %v6267_v36 }
 0x10c   : > { %v1507_v50 = vpop.f32.mrf.mxu0 }
 0x10d   : > { %v1620_v51 = vpop.f32.mrf.mxu1  ;;  %v1508_v52 = vadd.f32 %v1507_v50, %v7476_v48 }
 0x10e   : > { %v1509_v53 = vpop.f32.mrf.mxu0 }
 0x10f   : > { %v1622_v54 = vpop.f32.mrf.mxu1  ;;  %v7482_v55 = vadd.f32 %v1620_v51, %v1508_v52  ;;  %v1510_v56 = vadd.f32 %v1509_v53, %v7479_v49 }
 0x110   : > { %v7485_v57 = vpop.f32.mrf.mxu0 }
 0x111   : > { %v7487_v58 = vpop.f32.mrf.mxu1  ;;  %v7489_v59 = vadd.f32 %v1622_v54, %v1510_v56 }
 0x112   : > { %v7491_v60 = vpop.f32.mrf.mxu0 }
 0x113   : > { %v7493_v61 = vpop.f32.mrf.mxu1 }
 0x114   : > { %v1517_v62 = vpop.f32.mrf.mxu0 }
 0x115   : > { %v1630_v63 = vpop.f32.mrf.mxu1  ;;  %v1518_v2 = vadd.f32 %v1517_v62, %v7476_v48 }
 0x116   : > { %v1519_v3 = vpop.f32.mrf.mxu0 }
 0x117   : > { %v1632_v5 = vpop.f32.mrf.mxu1  ;;  %v7502_v6 = vadd.f32 %v1630_v63, %v1518_v2  ;;  %v1520_v7 = vadd.f32 %v1519_v3, %v7479_v49 }
 0x118   : > { %v7505_v8 = vpop.f32.mrf.mxu0 }
 0x119   : > { %v7507_v9 = vpop.f32.mrf.mxu1  ;;  %v7512_v11 = vadd.f32 %v1632_v5, %v1520_v7 }
 0x11a   : > { %v7514_v12 = vpop.f32.mrf.mxu0 }
 0x11b   : > { %v7516_v13 = vpop.f32.mrf.mxu1 }
 0x11c   : > { %v1527_v14 = vpop.f32.mrf.mxu0 }
 0x11d   : > { %v1640_v15 = vpop.f32.mrf.mxu1  ;;  %v1528_v17 = vadd.f32 %v1527_v14, %v7476_v48 }
 0x11e   : > { %v1529_v18 = vpop.f32.mrf.mxu0 }
 0x11f   : > { %v1642_v19 = vpop.f32.mrf.mxu1  ;;  %v7522_v20 = vadd.f32 %v1640_v15, %v1528_v17  ;;  %v1530_v21 = vadd.f32 %v1529_v18, %v7479_v49 }
 0x120   : > { %v7525_v22 = vpop.f32.mrf.mxu0 }
 0x121   : > { %v7527_v23 = vpop.f32.mrf.mxu1  ;;  %v7532_v25 = vadd.f32 %v1642_v19, %v1530_v21 }
 0x122   : > { %v7534_v26 = vpop.f32.mrf.mxu0 }
 0x123   : > { %v7536_v27 = vpop.f32.mrf.mxu1 }
 0x124   : > { %v1537_v28 = vpop.f32.mrf.mxu0 }
 0x125   : > { %v1650_v29 = vpop.f32.mrf.mxu1  ;;  %v1538_v31 = vadd.f32 %v1537_v28, %v7476_v48 }
 0x126   : > { %v1539_v32 = vpop.f32.mrf.mxu0 }
 0x127   : > { %v1652_v33 = vpop.f32.mrf.mxu1  ;;  %v7542_v34 = vadd.f32 %v1650_v29, %v1538_v31  ;;  %v1540_v35 = vadd.f32 %v1539_v32, %v7479_v49 }
 0x128   : > { %v7545_v36 = vpop.f32.mrf.mxu0 }
 0x129   : > { %v7547_v37 = vpop.f32.mrf.mxu1  ;;  %v7549_v38 = vadd.f32 %v1652_v33, %v1540_v35 }
 0x12a   : > { %v7551_v39 = vpop.f32.mrf.mxu0 }
 0x12b   : > { %v7553_v40 = vpop.f32.mrf.mxu1 }
 0x12c   : > { %v1547_v41 = vpop.f32.mrf.mxu0 }
 0x12d   : > { %v1660_v42 = vpop.f32.mrf.mxu1  ;;  %v1548_v43 = vadd.f32 %v1547_v41, %v7476_v48 }
 0x12e   : > { %v1549_v46 = vpop.f32.mrf.mxu0 }
 0x12f   : > { %v1662_v50 = vpop.f32.mrf.mxu1  ;;  %v7556_v51 = vadd.f32 %v1660_v42, %v1548_v43  ;;  %v1550_v52 = vadd.f32 %v1549_v46, %v7479_v49 }
 0x130   : > { %v7559_v53 = vpop.f32.mrf.mxu0 }
 0x131   : > { %v7561_v54 = vpop.f32.mrf.mxu1  ;;  %v7563_v56 = vadd.f32 %v1662_v50, %v1550_v52 }
 0x132   : > { %v7565_v62 = vpop.f32.mrf.mxu0 }
 0x133   : > { %v7567_v63 = vpop.f32.mrf.mxu1 }
 0x134   : > { %v1557_v0 = vpop.f32.mrf.mxu0 }
 0x135   : > { %v1670_v1 = vpop.f32.mrf.mxu1  ;;  %v1558_v2 = vadd.f32 %v1557_v0, %v7476_v48 }
 0x136   : > { %v1559_v3 = vpop.f32.mrf.mxu0 }
 0x137   : > { %v1672_v5 = vpop.f32.mrf.mxu1  ;;  %v7570_v7 = vadd.f32 %v1670_v1, %v1558_v2  ;;  %v1560_v10 = vadd.f32 %v1559_v3, %v7479_v49 }
 0x138   : > { %v7573_v14 = vpop.f32.mrf.mxu0 }
 0x139   : > { %v7575_v15 = vpop.f32.mrf.mxu1  ;;  %v7577_v16 = vadd.f32 %v1672_v5, %v1560_v10 }
 0x13a   : > { %v7579_v17 = vpop.f32.mrf.mxu0 }
 0x13b   : > { %v7581_v18 = vpop.f32.mrf.mxu1 }
 0x13c   : > { %v1567_v19 = vpop.f32.mrf.mxu0 }
 0x13d   : > { %v1680_v21 = vpop.f32.mrf.mxu1  ;;  %v1568_v24 = vadd.f32 %v1567_v19, %v7476_v48 }
 0x13e   : > { %v1569_v28 = vpop.f32.mrf.mxu0 }
 0x13f   : > { %v1682_v29 = vpop.f32.mrf.mxu1  ;;  %v7584_v30 = vadd.f32 %v1680_v21, %v1568_v24  ;;  %v1570_v31 = vadd.f32 %v1569_v28, %v7479_v49  ;;  %v1512_v24 = vadd.f32 %v7485_v57, %v7476_v48 }
 0x140   : > { %v7587_v32 = vpop.f32.mrf.mxu0 }
 0x141   : > { %v7589_v33 = vpop.f32.mrf.mxu1  ;;  %v7591_v35 = vadd.f32 %v1682_v29, %v1570_v31  ;;  %v1514_v31 = vadd.f32 %v7491_v60, %v7479_v49 }
 0x142   : > { %v7593_v41 = vpop.f32.mrf.mxu0 }
 0x143   : > { %v7595_v42 = vpop.f32.mrf.mxu1  ;;  %v1627_v44 = vadd.f32 %v7493_v61, %v1514_v31 }
 0x144   : > { %v1577_v43 = vpop.f32.mrf.mxu0 }
 0x145   : > { %v1690_v46 = vpop.f32.mrf.mxu1  ;;  %v1578_v50 = vadd.f32 %v1577_v43, %v7476_v48 }
 0x146   : > { %v1579_v52 = vpop.f32.mrf.mxu0 }
 0x147   : > { %v1692_v0 = vpop.f32.mrf.mxu1  ;;  %v7598_v1 = vadd.f32 %v1690_v46, %v1578_v50  ;;  %v1580_v2 = vadd.f32 %v1579_v52, %v7479_v49  ;;  %v1625_v50 = vadd.f32 %v7487_v58, %v1512_v24 }
 0x148   : > { %v7601_v3 = vpop.f32.mrf.mxu0 }
 0x149   : > { %8823 = vst [vmem:[#allocation5_spill] sm:$0xff] %v7598_v1  ;;  %v7603_v5 = vpop.f32.mrf.mxu1  ;;  %v7605_v10 = vadd.f32 %v1692_v0, %v1580_v2 }
 0x14a   : > { %8824 = vst [vmem:[#allocation6_spill] sm:$0xff] %v7603_v5  ;;  %v7607_v19 = vpop.f32.mrf.mxu0 }
 0x14b   : > { %8825 = vst [vmem:[#allocation7_spill] sm:$0xff] %v7605_v10  ;;  %8826 = vst [vmem:[#allocation8_spill] sm:$0xff] %v7607_v19  ;;  %v7609_v21 = vpop.f32.mrf.mxu1 }
 0x14c   : > { %8827 = vst [vmem:[#allocation9_spill] sm:$0xff] %v7609_v21  ;;  %v1733_v28 = vpop.f32.mrf.mxu0  ;;  %v1522_v21 = vadd.f32 %v7505_v8, %v7476_v48 }
 0x14d   : > { %v1846_v29 = vpop.f32.mrf.mxu1  ;;  %v1734_v0 = vadd.f32 %v1733_v28, %v7482_v55 }
 0x14e   : > { %v1735_v43 = vpop.f32.mrf.mxu0  ;;  %v1635_v61 = vadd.f32 %v7507_v9, %v1522_v21 }
 0x14f   : > { %v1848_v46 = vpop.f32.mrf.mxu1  ;;  %v1736_v52 = vadd.f32 %v1735_v43, %v7489_v59  ;;  %v1847_v5 = vadd.f32 %v1846_v29, %v1734_v0  ;;  %v1524_v59 = vadd.f32 %v7514_v12, %v7479_v49  ;;  %v1532_v0 = vadd.f32 %v7525_v22, %v7476_v48 }
 0x150   : > { %v1737_v2 = vpop.f32.mrf.mxu0 }
 0x151   : > { %v1850_v4 = vpop.f32.mrf.mxu1  ;;  %v1738_v45 = vadd.f32 %v1737_v2, %v1625_v50  ;;  %v1849_v1 = vadd.f32 %v1848_v46, %v1736_v52  ;;  %v1925_v8 = vmax.f32 %v1847_v5, 0.0 }
 0x152   : > { %v1739_v47 = vpop.f32.mrf.mxu0 }
 0x153   : > { %v1852_v57 = vpop.f32.mrf.mxu1  ;;  %v1851_v60 = vadd.f32 %v1850_v4, %v1738_v45  ;;  %v1740_v10 = vadd.f32 %v1739_v47, %v1627_v44  ;;  %v1926_v31 = vmax.f32 %v1849_v1, 0.0  ;;  %v1637_v47 = vadd.f32 %v7516_v13, %v1524_v59 }
 0x154   : > { %v1743_v19 = vpop.f32.mrf.mxu0 }
 0x155   : > { %v1856_v58 = vpop.f32.mrf.mxu1  ;;  %v1853_v55 = vadd.f32 %v1852_v57, %v1740_v10  ;;  %v1927_v24 = vmax.f32 %v1851_v60, 0.0  ;;  %v1744_v4 = vadd.f32 %v1743_v19, %v7502_v6  ;;  %v1534_v6 = vadd.f32 %v7534_v26, %v7479_v49 }
 0x156   : > { %v1745_v28 = vpop.f32.mrf.mxu0 }
 0x157   : > { %v1858_v43 = vpop.f32.mrf.mxu1  ;;  %v1928_v50 = vmax.f32 %v1853_v55, 0.0  ;;  %v1746_v2 = vadd.f32 %v1745_v28, %v7512_v11  ;;  %v1957_v12 = vpack.c.bf16 %v1927_v24, %v1925_v8  ;;  %v1857_v11 = vadd.f32 %v1856_v58, %v1744_v4 }
 0x158   : > { %v1747_v44 = vpop.f32.mrf.mxu0  ;;  %v1645_v55 = vadd.f32 %v7527_v23, %v1532_v0 }
 0x159   : > { %v1860_v45 = vpop.f32.mrf.mxu1  ;;  %v1748_v29 = vadd.f32 %v1747_v44, %v1635_v61  ;;  %v1958_v46 = vpack.c.bf16 %v1928_v50, %v1926_v31  ;;  %v1859_v9 = vadd.f32 %v1858_v43, %v1746_v2  ;;  %v1929_v43 = vmax.f32 %v1857_v11, 0.0 }
 0x15a   : > { %v1749_v10 = vpop.f32.mrf.mxu0  ;;  %v1647_v50 = vadd.f32 %v7536_v27, %v1534_v6 }
 0x15b   : > { %v1862_v52 = vpop.f32.mrf.mxu1  ;;  %v1861_v1 = vadd.f32 %v1860_v45, %v1748_v29  ;;  %v1750_v21 = vadd.f32 %v1749_v10, %v1637_v47  ;;  %2140 = vmatprep.mubr.bf16.mxu0 %v1958_v46  ;;  %v1930_v24 = vmax.f32 %v1859_v9, 0.0  ;;  %v1542_v45 = vadd.f32 %v7545_v36, %v7476_v48 }
 0x15c   : > { %v1753_v5 = vpop.f32.mrf.mxu0  ;;  %2141 = vmatmul.mubr.bf16.vlgmr.msra.gmra.mxu0 %v1957_v12 }
 0x15d   : > { %v1866_v57 = vpop.f32.mrf.mxu1  ;;  %v1863_v13 = vadd.f32 %v1862_v52, %v1750_v21  ;;  %v1931_v19 = vmax.f32 %v1861_v1, 0.0  ;;  %v1754_v61 = vadd.f32 %v1753_v5, %v7522_v20  ;;  %v1544_v20 = vadd.f32 %v7551_v39, %v7479_v49 }
 0x15e   : > { %v1755_v60 = vpop.f32.mrf.mxu0  ;;  %v1655_v9 = vadd.f32 %v7547_v37, %v1542_v45 }
 0x15f   : > { %v1868_v59 = vpop.f32.mrf.mxu1  ;;  %v1932_v28 = vmax.f32 %v1863_v13, 0.0  ;;  %v1756_v22 = vadd.f32 %v1755_v60, %v7532_v25  ;;  %v1959_v26 = vpack.c.bf16 %v1931_v19, %v1929_v43  ;;  %v1867_v25 = vadd.f32 %v1866_v57, %v1754_v61 }
 0x160   : > { %v1757_v58 = vpop.f32.mrf.mxu0  ;;  %v1657_v13 = vadd.f32 %v7553_v40, %v1544_v20  ;;  %v1562_v20 = vadd.f32 %v7573_v14, %v7476_v48 }
 0x161   : > { %v1870_v31 = vpop.f32.mrf.mxu1  ;;  %v1758_v2 = vadd.f32 %v1757_v58, %v1645_v55  ;;  %v1960_v8 = vpack.c.bf16 %v1932_v28, %v1930_v24  ;;  %v1869_v23 = vadd.f32 %v1868_v59, %v1756_v22  ;;  %v1933_v11 = vmax.f32 %v1867_v25, 0.0 }
 0x162   : > { %v1759_v4 = vpop.f32.mrf.mxu0  ;;  %v1552_v24 = vadd.f32 %v7559_v53, %v7476_v48 }
 0x163   : > { %v1872_v44 = vpop.f32.mrf.mxu1  ;;  %v1871_v47 = vadd.f32 %v1870_v31, %v1758_v2  ;;  %v1760_v29 = vadd.f32 %v1759_v4, %v1647_v50  ;;  %2148 = vmatprep.mubr.bf16.mxu0 %v1960_v8  ;;  %v1934_v1 = vmax.f32 %v1869_v23, 0.0 }
 0x164   : > { %v1763_v46 = vpop.f32.mrf.mxu0  ;;  %2149 = vmatmul.mubr.bf16.gmra.mxu0 %v1959_v26  ;;  %v1665_v2 = vadd.f32 %v7561_v54, %v1552_v24 }
 0x165   : > { %v1876_v12 = vpop.f32.mrf.mxu1  ;;  %v1873_v27 = vadd.f32 %v1872_v44, %v1760_v29  ;;  %v1935_v10 = vmax.f32 %v1871_v47, 0.0  ;;  %v1764_v5 = vadd.f32 %v1763_v46, %v7542_v34  ;;  %v1554_v34 = vadd.f32 %v7565_v62, %v7479_v49 }
 0x166   : > { %v1765_v52 = vpop.f32.mrf.mxu0 }
 0x167   : > { %v1878_v0 = vpop.f32.mrf.mxu1  ;;  %v1936_v21 = vmax.f32 %v1873_v27, 0.0  ;;  %v1766_v36 = vadd.f32 %v1765_v52, %v7549_v38  ;;  %v1961_v39 = vpack.c.bf16 %v1935_v10, %v1933_v11  ;;  %v1877_v38 = vadd.f32 %v1876_v12, %v1764_v5 }
 0x168   : > { %v1767_v57 = vpop.f32.mrf.mxu0  ;;  %v1667_v47 = vadd.f32 %v7567_v63, %v1554_v34 }
 0x169   : > { %v1880_v6 = vpop.f32.mrf.mxu1  ;;  %v1768_v19 = vadd.f32 %v1767_v57, %v1655_v9  ;;  %v1962_v60 = vpack.c.bf16 %v1936_v21, %v1934_v1  ;;  %v1879_v37 = vadd.f32 %v1878_v0, %v1766_v36  ;;  %v1937_v4 = vmax.f32 %v1877_v38, 0.0 }
 0x16a   : > { %v1769_v59 = vpop.f32.mrf.mxu0  ;;  %v1675_v36 = vadd.f32 %v7575_v15, %v1562_v20 }
 0x16b   : > { %v1882_v55 = vpop.f32.mrf.mxu1  ;;  %v1881_v28 = vadd.f32 %v1880_v6, %v1768_v19  ;;  %v1770_v22 = vadd.f32 %v1769_v59, %v1657_v13  ;;  %2156 = vmatprep.mubr.bf16.mxu0 %v1962_v60  ;;  %v1938_v8 = vmax.f32 %v1879_v37, 0.0  ;;  %v1572_v37 = vadd.f32 %v7587_v32, %v7476_v48 }
 0x16c   : > { %v1773_v43 = vpop.f32.mrf.mxu0  ;;  %2157 = vmatmul.mubr.bf16.gmra.mxu0 %v1961_v39 }
 0x16d   : > { %v1886_v61 = vpop.f32.mrf.mxu1  ;;  %v1883_v40 = vadd.f32 %v1882_v55, %v1770_v22  ;;  %v1939_v58 = vmax.f32 %v1881_v28, 0.0  ;;  %v1774_v44 = vadd.f32 %v1773_v43, %v7556_v51  ;;  %v1564_v51 = vadd.f32 %v7579_v17, %v7479_v49 }
 0x16e   : > { %v1775_v31 = vpop.f32.mrf.mxu0 }
 0x16f   : > { %v1888_v50 = vpop.f32.mrf.mxu1  ;;  %v1940_v26 = vmax.f32 %v1883_v40, 0.0  ;;  %v1776_v53 = vadd.f32 %v1775_v31, %v7563_v56  ;;  %v1963_v62 = vpack.c.bf16 %v1939_v58, %v1937_v4  ;;  %v1887_v56 = vadd.f32 %v1886_v61, %v1774_v44 }
 0x170   : > { %v1777_v45 = vpop.f32.mrf.mxu0  ;;  %v1677_v60 = vadd.f32 %v7581_v18, %v1564_v51  ;;  %v1685_v58 = vadd.f32 %v7589_v33, %v1572_v37 }
 0x171   : > { %v1890_v23 = vpop.f32.mrf.mxu1  ;;  %v1778_v29 = vadd.f32 %v1777_v45, %v1665_v2  ;;  %v1964_v25 = vpack.c.bf16 %v1940_v26, %v1938_v8  ;;  %v1889_v54 = vadd.f32 %v1888_v50, %v1776_v53  ;;  %v1941_v57 = vmax.f32 %v1887_v56, 0.0  ;;  %v8829_v56 = vld [vmem:[#allocation6_spill] sm:$0xff] }
 0x172   : > { %v1779_v46 = vpop.f32.mrf.mxu0 }
 0x173   : > { %v1892_v12 = vpop.f32.mrf.mxu1  ;;  %v1891_v27 = vadd.f32 %v1890_v23, %v1778_v29  ;;  %v1780_v10 = vadd.f32 %v1779_v46, %v1667_v47  ;;  %2164 = vmatprep.mubr.bf16.mxu0 %v1964_v25  ;;  %v1942_v11 = vmax.f32 %v1889_v54, 0.0  ;;  %v1582_v29 = vadd.f32 %v7601_v3, %v7476_v48  ;;  %v8830_v48 = vld [vmem:[#allocation7_spill] sm:$0xff] }
 0x174   : > { %v1783_v52 = vpop.f32.mrf.mxu0  ;;  %2165 = vmatmul.mubr.bf16.gmra.mxu0 %v1963_v62 }
 0x175   : > { %v1896_v0 = vpop.f32.mrf.mxu1  ;;  %v1893_v63 = vadd.f32 %v1892_v12, %v1780_v10  ;;  %v1943_v9 = vmax.f32 %v1891_v27, 0.0  ;;  %v1784_v6 = vadd.f32 %v1783_v52, %v7570_v7  ;;  %v1574_v7 = vadd.f32 %v7593_v41, %v7479_v49 }
 0x176   : > { %v1785_v1 = vpop.f32.mrf.mxu0  ;;  %v1695_v52 = vadd.f32 %v8829_v56, %v1582_v29 }
 0x177   : > { %v1898_v21 = vpop.f32.mrf.mxu1  ;;  %v1944_v5 = vmax.f32 %v1893_v63, 0.0  ;;  %v1786_v14 = vadd.f32 %v1785_v1, %v7577_v16  ;;  %v1965_v17 = vpack.c.bf16 %v1943_v9, %v1941_v57  ;;  %v1897_v16 = vadd.f32 %v1896_v0, %v1784_v6  ;;  %v8831_v9 = vld [vmem:[#allocation5_spill] sm:$0xff] }
 0x178   : > { %v1787_v13 = vpop.f32.mrf.mxu0  ;;  %v1687_v4 = vadd.f32 %v7595_v42, %v1574_v7 }
 0x179   : > { %v1900_v19 = vpop.f32.mrf.mxu1  ;;  %v1788_v39 = vadd.f32 %v1787_v13, %v1675_v36  ;;  %v1966_v59 = vpack.c.bf16 %v1944_v5, %v1942_v11  ;;  %v1899_v15 = vadd.f32 %v1898_v21, %v1786_v14  ;;  %v1945_v2 = vmax.f32 %v1897_v16, 0.0  ;;  %v8832_v11 = vld [vmem:[#allocation9_spill] sm:$0xff]  ;;  %v6290_v16 = vld [vmem:[%s8801_s5 + $0x8] sm:$0xff]  }
 0x17a   : > { %v1789_v55 = vpop.f32.mrf.mxu0  ;;  %5947 = vmatprep.subr.bf16.mxu1 %v6290_v16 }
 0x17b   : > { %v1902_v24 = vpop.f32.mrf.mxu1  ;;  %v1901_v28 = vadd.f32 %v1900_v19, %v1788_v39  ;;  %v1790_v22 = vadd.f32 %v1789_v55, %v1677_v60  ;;  %2172 = vmatprep.mubr.bf16.mxu0 %v1966_v59  ;;  %v1946_v31 = vmax.f32 %v1899_v15, 0.0  ;;  %5948 = vmatpush3.bf16.msra.mxu1 %v6290_v16 }
 0x17c   : > { %v1793_v38 = vpop.f32.mrf.mxu0  ;;  %2173 = vmatmul.mubr.bf16.gmra.mxu0 %v1965_v17 }
 0x17d   : > { %v1906_v43 = vpop.f32.mrf.mxu1  ;;  %v1903_v18 = vadd.f32 %v1902_v24, %v1790_v22  ;;  %v1947_v61 = vmax.f32 %v1901_v28, 0.0  ;;  %v1794_v8 = vadd.f32 %v1793_v38, %v7584_v30  ;;  %v8828_v30 = vld [vmem:[#allocation8_spill] sm:$0xff]  ;;  %v6291_v38 = vld [vmem:[%s8801_s5] sm:$0xff]  }
 0x17e   : > { %v1795_v34 = vpop.f32.mrf.mxu0  ;;  %v1584_v20 = vadd.f32 %v8828_v30, %v7479_v49  ;;  %5949 = vmatprep.subr.bf16.mxu1 %v6291_v38 }
 0x17f   : > { %v1908_v40 = vpop.f32.mrf.mxu1  ;;  %v1948_v50 = vmax.f32 %v1903_v18, 0.0  ;;  %v1796_v32 = vadd.f32 %v1795_v34, %v7591_v35  ;;  %v1967_v41 = vpack.c.bf16 %v1947_v61, %v1945_v2  ;;  %v1907_v35 = vadd.f32 %v1906_v43, %v1794_v8  ;;  %5950 = vmatpush3.bf16.msra.mxu1 %v6291_v38  ;;  %v6292_v43 = vld [vmem:[%s8803_s7 + $0x38] sm:$0xff]   ;;  %v7687_v34 = vld [vmem:[%s8800_s4] ss:$0 sm:$0xff] }
 0x180   : > { %v1797_v26 = vpop.f32.mrf.mxu0  ;;  %v1697_v5 = vadd.f32 %v8832_v11, %v1584_v20  ;;  %5967 = vmatprep.subr.bf16.mxu1 %v6292_v43  ;;  %v6293_v20 = vld [vmem:[%s8803_s7 + $0x30] sm:$0xff]  }
 0x181   : > { %v1910_v53 = vpop.f32.mrf.mxu1  ;;  %v1798_v44 = vadd.f32 %v1797_v26, %v1685_v58  ;;  %v1968_v45 = vpack.c.bf16 %v1948_v50, %v1946_v31  ;;  %v1909_v33 = vadd.f32 %v1908_v40, %v1796_v32  ;;  %v1949_v63 = vmax.f32 %v1907_v35, 0.0 }
 0x182   : > { %v1799_v23 = vpop.f32.mrf.mxu0 }
 0x183   : > { %v1912_v47 = vpop.f32.mrf.mxu1  ;;  %v1911_v25 = vadd.f32 %v1910_v53, %v1798_v44  ;;  %v1800_v62 = vadd.f32 %v1799_v23, %v1687_v4  ;;  %2180 = vmatprep.mubr.bf16.mxu0 %v1968_v45  ;;  %v1950_v0 = vmax.f32 %v1909_v33, 0.0 }
 0x184   : > { %v1803_v46 = vpop.f32.mrf.mxu0  ;;  %2181 = vmatmul.mubr.bf16.gmra.mxu0 %v1967_v41 }
 0x185   : > { %v1916_v12 = vpop.f32.mrf.mxu1  ;;  %v1913_v42 = vadd.f32 %v1912_v47, %v1800_v62  ;;  %v1951_v54 = vmax.f32 %v1911_v25, 0.0  ;;  %v1804_v1 = vadd.f32 %v1803_v46, %v8831_v9 }
 0x186   : > { %v1805_v27 = vpop.f32.mrf.mxu0 }
 0x187   : > { %v1918_v10 = vpop.f32.mrf.mxu1  ;;  %v1952_v51 = vmax.f32 %v1913_v42, 0.0  ;;  %v1806_v3 = vadd.f32 %v1805_v27, %v8830_v48  ;;  %v1969_v49 = vpack.c.bf16 %v1951_v54, %v1949_v63  ;;  %v1917_v39 = vadd.f32 %v1916_v12, %v1804_v1  ;;  %v6295_v1 = vld [vmem:[%s8803_s7 + $0x20] sm:$0xff]  }
 0x188   : > { %v1807_v21 = vpop.f32.mrf.mxu0 }
 0x189   : > { %v1920_v36 = vpop.f32.mrf.mxu1  ;;  %v1808_v14 = vadd.f32 %v1807_v21, %v1695_v52  ;;  %v1970_v57 = vpack.c.bf16 %v1952_v51, %v1950_v0  ;;  %v1919_v13 = vadd.f32 %v1918_v10, %v1806_v3  ;;  %v1953_v15 = vmax.f32 %v1917_v39, 0.0  ;;  %v6294_v52 = vld [vmem:[%s8803_s7 + $0x28] sm:$0xff]  }
 0x18a   : > { %v1809_v6 = vpop.f32.mrf.mxu0 }
 0x18b   : > { %v1921_v19 = vadd.f32 %v1920_v36, %v1808_v14  ;;  %v1810_v60 = vadd.f32 %v1809_v6, %v1697_v5  ;;  %2188 = vmatprep.mubr.bf16.mxu0 %v1970_v57  ;;  %v1922_v59 = vpop.f32.mrf.mxu1  ;;  %v1954_v24 = vmax.f32 %v1919_v13, 0.0  ;;  %v6296_v57 = vld [vmem:[%s8803_s7 + $0x18] sm:$0xff]  }
 0x18c   : > { %2189 = vmatmul.mubr.bf16.gmra.mxu0 %v1969_v49 }
 0x18d   : > { %v1923_v17 = vadd.f32 %v1922_v59, %v1810_v60  ;;  %v1955_v55 = vmax.f32 %v1921_v19, 0.0 }
 0x18f   : > { %v1956_v37 = vmax.f32 %v1923_v17, 0.0  ;;  %v1971_v22 = vpack.c.bf16 %v1955_v55, %v1953_v15 }
 0x191   : > { %v1972_v28 = vpack.c.bf16 %v1956_v37, %v1954_v24 }
 0x193   : > { %2196 = vmatprep.mubr.bf16.mxu0 %v1972_v28 }
 0x194   : > { %2197 = vmatmul.mubr.bf16.gmra.mxu0 %v1971_v22 }
 0x21c   : > { %v5775_v7 = vpop.f32.mrf.mxu0 }
 0x21e   : > { %v5776_v18 = vpop.f32.mrf.mxu0 }
 0x21f   : > { %v5777_v61 = vadd.f32 %v5776_v18, %v5775_v7 }
 0x220   : > { %v5778_v40 = vpop.f32.mrf.mxu0 }
 0x221   : > { %v2143_v31 = vadd.f32 %v5777_v61, %v7687_v34 }
 0x222   : > { %v5779_v58 = vpop.f32.mrf.mxu0 }
 0x223   : > { %v5780_v50 = vadd.f32 %v5779_v58, %v5778_v40  ;;  %v2205_v26 = vmax.f32 %v2143_v31, 0.0 }
 0x224   : > { %v5781_v32 = vpop.f32.mrf.mxu0 }
 0x225   : > { %v2146_v2 = vadd.f32 %v5780_v50, %v7687_v34 }
 0x226   : > { %v5782_v8 = vpop.f32.mrf.mxu0 }
 0x227   : > { %v2206_v53 = vmax.f32 %v2146_v2, 0.0  ;;  %v5783_v4 = vadd.f32 %v5782_v8, %v5781_v32 }
 0x228   : > { %v5784_v44 = vpop.f32.mrf.mxu0 }
 0x229   : > { %v2221_v45 = vpack.c.bf16 %v2206_v53, %v2205_v26  ;;  %v2151_v23 = vadd.f32 %v5783_v4, %v7687_v34 }
 0x22a   : > { %v5785_v41 = vpop.f32.mrf.mxu0 }
 0x22b   : > { %v5786_v47 = vadd.f32 %v5785_v41, %v5784_v44  ;;  %5951 = vmatprep.mubr.bf16.mxu1 %v2221_v45  ;;  %v2207_v62 = vmax.f32 %v2151_v23, 0.0 }
 0x22c   : > { %v5787_v29 = vpop.f32.mrf.mxu0 }
 0x22d   : > { %v2154_v33 = vadd.f32 %v5786_v47, %v7687_v34 }
 0x22e   : > { %v5788_v25 = vpop.f32.mrf.mxu0 }
 0x22f   : > { %v2208_v35 = vmax.f32 %v2154_v33, 0.0  ;;  %v5789_v46 = vadd.f32 %v5788_v25, %v5787_v29 }
 0x230   : > { %v5790_v12 = vpop.f32.mrf.mxu0 }
 0x231   : > { %v2222_v30 = vpack.c.bf16 %v2208_v35, %v2207_v62  ;;  %v2159_v54 = vadd.f32 %v5789_v46, %v7687_v34 }
 0x232   : > { %v5791_v42 = vpop.f32.mrf.mxu0 }
 0x233   : > { %v5792_v27 = vadd.f32 %v5791_v42, %v5790_v12  ;;  %5952 = vmatmul.mubr.bf16.vlgmr.msra.gmra.mxu1 %v2222_v30  ;;  %v2209_v51 = vmax.f32 %v2159_v54, 0.0 }
 0x234   : > { %v5793_v10 = vpop.f32.mrf.mxu0  ;;  %5968 = vmatpush3.bf16.msra.mxu1 %v6292_v43 }
 0x235   : > { %v2162_v56 = vadd.f32 %v5792_v27, %v7687_v34  ;;  %5969 = vmatprep.subr.bf16.mxu1 %v6293_v20  ;;  %v6297_v27 = vld [vmem:[%s8803_s7 + $0x10] sm:$0xff]  }
 0x236   : > { %v5794_v0 = vpop.f32.mrf.mxu0 }
 0x237   : > { %v2210_v48 = vmax.f32 %v2162_v56, 0.0  ;;  %v5795_v3 = vadd.f32 %v5794_v0, %v5793_v10  ;;  %v6298_v10 = vld [vmem:[%s8803_s7 + $0x8] sm:$0xff]   ;;  %v6300_v56 = vld [vmem:[%s8805_s9 + $0x38] sm:$0xff]  }
 0x238   : > { %v5796_v63 = vpop.f32.mrf.mxu0  ;;  %5970 = vmatpush3.bf16.msra.mxu1 %v6293_v20  ;;  %5999 = vmatprep.subr.bf16.mxu0 %v6300_v56  ;;  %v6302_v0 = vld [vmem:[%s8805_s9 + $0x28] sm:$0xff]  }
 0x239   : > { %v2223_v9 = vpack.c.bf16 %v2210_v48, %v2209_v51  ;;  %5971 = vmatprep.subr.bf16.mxu1 %v6294_v52  ;;  %v2167_v36 = vadd.f32 %v5795_v3, %v7687_v34  ;;  %6000 = vmatpush3.bf16.msra.mxu0 %v6300_v56  ;;  %v6303_v51 = vld [vmem:[%s8805_s9 + $0x20] sm:$0xff]   ;;  %v6304_v48 = vld [vmem:[%s8805_s9 + $0x18] sm:$0xff]   ;;  %v6305_v3 = vld [vmem:[%s8805_s9 + $0x10] sm:$0xff]   ;;  %v8833_v56 = vmov 0  }
 0x23a   : > { %v5797_v21 = vpop.f32.mrf.mxu0 }
 0x23b   : > { %v5798_v11 = vadd.f32 %v5797_v21, %v5796_v63  ;;  %5955 = vmatprep.mubr.bf16.mxu1 %v2223_v9  ;;  %v2211_v6 = vmax.f32 %v2167_v36, 0.0  ;;  %v6306_v63 = vld [vmem:[%s8805_s9 + $0x8] sm:$0xff]   ;;  %v5474_v21 = vld [vmem:[%s8802_s6] ss:$0 sm:$0xff] }
 0x23c   : > { %v5799_v5 = vpop.f32.mrf.mxu0  ;;  %5972 = vmatpush3.bf16.msra.mxu1 %v6294_v52  ;;  %v6301_v52 = vld [vmem:[%s8805_s9 + $0x30] sm:$0xff]  }
 0x23d   : > { %v2170_v14 = vadd.f32 %v5798_v11, %v7687_v34  ;;  %5973 = vmatprep.subr.bf16.mxu1 %v6295_v1  ;;  %6001 = vmatprep.subr.bf16.mxu0 %v6301_v52 }
 0x23e   : > { %v5800_v49 = vpop.f32.mrf.mxu0  ;;  %6002 = vmatpush3.bf16.msra.mxu0 %v6301_v52  ;;  %v6307_v52 = vld [vmem:[%s8805_s9] sm:$0xff]  }
 0x23f   : > { %v2212_v13 = vmax.f32 %v2170_v14, 0.0  ;;  %v5801_v19 = vadd.f32 %v5800_v49, %v5799_v5  ;;  %6003 = vmatprep.subr.bf16.mxu0 %v6302_v0 }
 0x240   : > { %v5802_v60 = vpop.f32.mrf.mxu0  ;;  %5974 = vmatpush3.bf16.msra.mxu1 %v6295_v1 }
 0x241   : > { %v2224_v39 = vpack.c.bf16 %v2212_v13, %v2211_v6  ;;  %5975 = vmatprep.subr.bf16.mxu1 %v6296_v57  ;;  %v2175_v17 = vadd.f32 %v5801_v19, %v7687_v34 }
 0x242   : > { %v5803_v59 = vpop.f32.mrf.mxu0  ;;  %6004 = vmatpush3.bf16.msra.mxu0 %v6302_v0  ;;  %v6308_v0 = vld [vmem:[%s8807_s11 + $0x70] ss:$8 sps:$4 sm:$0xff]  }
 0x243   : > { %v5804_v55 = vadd.f32 %v5803_v59, %v5802_v60  ;;  %5956 = vmatmul.mubr.bf16.gmra.mxu1 %v2224_v39  ;;  %v2213_v28 = vmax.f32 %v2175_v17, 0.0  ;;  %6005 = vmatprep.subr.bf16.mxu0 %v6303_v51 }
 0x244   : > { %v5805_v24 = vpop.f32.mrf.mxu0  ;;  %5976 = vmatpush3.bf16.msra.mxu1 %v6296_v57 }
 0x245   : > { %v2178_v37 = vadd.f32 %v5804_v55, %v7687_v34  ;;  %5977 = vmatprep.subr.bf16.mxu1 %v6297_v27 }
 0x246   : > { %v5806_v15 = vpop.f32.mrf.mxu0  ;;  %6006 = vmatpush3.bf16.msra.mxu0 %v6303_v51  ;;  %v6310_v51 = vld [vmem:[%s8807_s11 + $0x74] ss:$8 sps:$4 sm:$0xff]  }
 0x247   : > { %v2214_v22 = vmax.f32 %v2178_v37, 0.0  ;;  %v5807_v16 = vadd.f32 %v5806_v15, %v5805_v24  ;;  %6007 = vmatprep.subr.bf16.mxu0 %v6304_v48 }
 0x248   : > { %v5808_v38 = vpop.f32.mrf.mxu0  ;;  %5978 = vmatpush3.bf16.msra.mxu1 %v6297_v27 }
 0x249   : > { %v2225_v43 = vpack.c.bf16 %v2214_v22, %v2213_v28  ;;  %v2183_v18 = vadd.f32 %v5807_v16, %v7687_v34  ;;  %5979 = vmatprep.subr.bf16.mxu1 %v6298_v10 }
 0x24a   : > { %v5809_v7 = vpop.f32.mrf.mxu0  ;;  %6008 = vmatpush3.bf16.msra.mxu0 %v6304_v48  ;;  %v6313_v48 = vld [vmem:[%s8807_s11 + $0x64] ss:$8 sps:$4 sm:$0xff]  }
 0x24b   : > { %v5810_v61 = vadd.f32 %v5809_v7, %v5808_v38  ;;  %5959 = vmatprep.mubr.bf16.mxu1 %v2225_v43  ;;  %v2215_v50 = vmax.f32 %v2183_v18, 0.0  ;;  %6009 = vmatprep.subr.bf16.mxu0 %v6305_v3 }
 0x24c   : > { %v5811_v40 = vpop.f32.mrf.mxu0  ;;  %5980 = vmatpush3.bf16.msra.mxu1 %v6298_v10 }
 0x24d   : > { %v2186_v58 = vadd.f32 %v5810_v61, %v7687_v34 }
 0x24e   : > { %v5812_v31 = vpop.f32.mrf.mxu0  ;;  %6010 = vmatpush3.bf16.msra.mxu0 %v6305_v3  ;;  %v6311_v3 = vld [vmem:[%s8807_s11 + $0x60] ss:$8 sps:$4 sm:$0xff]  }
 0x24f   : > { %v2216_v32 = vmax.f32 %v2186_v58, 0.0  ;;  %v5813_v2 = vadd.f32 %v5812_v31, %v5811_v40  ;;  %6011 = vmatprep.subr.bf16.mxu0 %v6306_v63 }
 0x250   : > { %v5814_v8 = vpop.f32.mrf.mxu0 }
 0x251   : > { %v2226_v26 = vpack.c.bf16 %v2216_v32, %v2215_v50  ;;  %v2191_v4 = vadd.f32 %v5813_v2, %v7687_v34 }
 0x252   : > { %v5815_v53 = vpop.f32.mrf.mxu0  ;;  %6012 = vmatpush3.bf16.msra.mxu0 %v6306_v63  ;;  %v6316_v63 = vld [vmem:[%s8807_s11 + $0x54] ss:$8 sps:$4 sm:$0xff]  }
 0x253   : > { %v5816_v44 = vadd.f32 %v5815_v53, %v5814_v8  ;;  %5960 = vmatmul.mubr.bf16.gmra.mxu1 %v2226_v26  ;;  %v2217_v47 = vmax.f32 %v2191_v4, 0.0  ;;  %6013 = vmatprep.subr.bf16.mxu0 %v6307_v52 }
 0x254   : > { %v5817_v45 = vpop.f32.mrf.mxu0 }
 0x255   : > { %v2194_v41 = vadd.f32 %v5816_v44, %v7687_v34 }
 0x256   : > { %v5818_v23 = vpop.f32.mrf.mxu0  ;;  %6014 = vmatpush3.bf16.msra.mxu0 %v6307_v52 }
 0x257   : > { %v2218_v29 = vmax.f32 %v2194_v41, 0.0  ;;  %v5819_v33 = vadd.f32 %v5818_v23, %v5817_v45 }
 0x258   : > { %v5820_v25 = vpop.f32.mrf.mxu0 }
 0x259   : > { %v2227_v62 = vpack.c.bf16 %v2218_v29, %v2217_v47  ;;  %v2199_v46 = vadd.f32 %v5819_v33, %v7687_v34 }
 0x25a   : > { %v5821_v35 = vpop.f32.mrf.mxu0 }
 0x25b   : > { %v5822_v12 = vadd.f32 %v5821_v35, %v5820_v25  ;;  %5963 = vmatprep.mubr.bf16.mxu1 %v2227_v62  ;;  %v2219_v20 = vmax.f32 %v2199_v46, 0.0 }
 0x25d   : > { %v2202_v30 = vadd.f32 %v5822_v12, %v7687_v34  ;;  %v6299_v34 = vld [vmem:[%s8803_s7] sm:$0xff]  }
 0x25e   : > { %5981 = vmatprep.subr.bf16.mxu1 %v6299_v34 }
 0x25f   : > { %v2220_v42 = vmax.f32 %v2202_v30, 0.0  ;;  %5982 = vmatpush3.bf16.msra.mxu1 %v6299_v34 }
 0x260   : > { %2913 = vmatprep.subr.bf16.mxu1 %v6310_v51 }
 0x261   : > { %v2228_v54 = vpack.c.bf16 %v2220_v42, %v2219_v20 }
 0x263   : > { %5964 = vmatmul.mubr.bf16.gmra.mxu1 %v2228_v54 }
 0x2f3   : > { %v5953_v9 = vpop.f32.mrf.mxu1 }
 0x2f4   : > { %v2343_v14 = vadd.f32 %v5953_v9, %v5474_v21  ;;  %v6314_v9 = vld [vmem:[%s8807_s11 + $0x50] ss:$8 sps:$4 sm:$0xff]  }
 0x2f5   : > { %v2334_v1 = vpop.f32.mrf.mxu1 }
 0x2f6   : > { %v2335_v11 = vadd.f32 %v5474_v21, %v2334_v1  ;;  %v2399_v60 = vmax.f32 %v2343_v14, 0.0  ;;  %v6319_v1 = vld [vmem:[%s8807_s11 + $0x44] ss:$8 sps:$4 sm:$0xff]  }
 0x2f7   : > { %v5954_v36 = vpop.f32.mrf.mxu1 }
 0x2f8   : > { %v2346_v5 = vadd.f32 %v5954_v36, %v5474_v21  ;;  %v2397_v13 = vmax.f32 %v2335_v11, 0.0  ;;  %v6322_v36 = vld [vmem:[%s8807_s11 + $0x34] ss:$8 sps:$4 sm:$0xff]   ;;  %v6320_v11 = vld [vmem:[%s8807_s11 + $0x30] ss:$8 sps:$4 sm:$0xff]  }
 0x2f9   : > { %v2337_v57 = vpop.f32.mrf.mxu1 }
 0x2fa   : > { %v2338_v49 = vadd.f32 %v5474_v21, %v2337_v57  ;;  %v2400_v6 = vmax.f32 %v2346_v5, 0.0  ;;  %v5483_v57 = vld [vmem:[%s8804_s8] ss:$0 sm:$0xff] }
 0x2fc   : > { %v2398_v19 = vmax.f32 %v2338_v49, 0.0  ;;  %v2414_v59 = vpack.c.bf16 %v2400_v6, %v2399_v60 }
 0x2fe   : > { %v2413_v39 = vpack.c.bf16 %v2398_v19, %v2397_v13 }
 0x300   : > { %5983 = vmatprep.mubr.bf16.mxu1 %v2413_v39 }
 0x301   : > { %5984 = vmatmul.mubr.bf16.vlgmr.msra.gmra.mxu1 %v2414_v59 }
 0x302   : > { %2914 = vmatpush1.bf16.msra.mxu1 %v6308_v0 }
 0x303   : > { %v5957_v17 = vpop.f32.mrf.mxu1  ;;  %2915 = vmatprep.subr.bf16.mxu1 %v6313_v48 }
 0x304   : > { %v2359_v28 = vadd.f32 %v5957_v17, %v5474_v21 }
 0x305   : > { %v2350_v55 = vpop.f32.mrf.mxu1 }
 0x306   : > { %v2351_v37 = vadd.f32 %v5474_v21, %v2350_v55  ;;  %v2403_v18 = vmax.f32 %v2359_v28, 0.0  ;;  %2916 = vmatpush1.bf16.msra.mxu1 %v6311_v3 }
 0x307   : > { %v5958_v24 = vpop.f32.mrf.mxu1  ;;  %2917 = vmatprep.subr.bf16.mxu1 %v6316_v63  ;;  %v6325_v63 = vld [vmem:[%s8807_s11 + $0x24] ss:$8 sps:$4 sm:$0xff]  }
 0x308   : > { %v2362_v15 = vadd.f32 %v5958_v24, %v5474_v21  ;;  %v2401_v43 = vmax.f32 %v2351_v37, 0.0 }
 0x309   : > { %v2353_v22 = vpop.f32.mrf.mxu1 }
 0x30a   : > { %v2354_v16 = vadd.f32 %v5474_v21, %v2353_v22  ;;  %v2404_v38 = vmax.f32 %v2362_v15, 0.0  ;;  %2918 = vmatpush1.bf16.msra.mxu1 %v6314_v9  ;;  %v6323_v9 = vld [vmem:[%s8807_s11 + $0x20] ss:$8 sps:$4 sm:$0xff]  }
 0x30b   : > { %2919 = vmatprep.subr.bf16.mxu1 %v6319_v1  ;;  %v6328_v1 = vld [vmem:[%s8807_s11 + $0x14] ss:$8 sps:$4 sm:$0xff]  }
 0x30c   : > { %v2402_v7 = vmax.f32 %v2354_v16, 0.0  ;;  %v2416_v40 = vpack.c.bf16 %v2404_v38, %v2403_v18 }
 0x30e   : > { %v2415_v61 = vpack.c.bf16 %v2402_v7, %v2401_v43 }
 0x310   : > { %5987 = vmatprep.mubr.bf16.mxu1 %v2415_v61 }
 0x311   : > { %5988 = vmatmul.mubr.bf16.gmra.mxu1 %v2416_v40 }
 0x313   : > { %v5961_v58 = vpop.f32.mrf.mxu1 }
 0x314   : > { %v2375_v8 = vadd.f32 %v5961_v58, %v5474_v21 }
 0x315   : > { %v2366_v31 = vpop.f32.mrf.mxu1 }
 0x316   : > { %v2367_v32 = vadd.f32 %v5474_v21, %v2366_v31  ;;  %v2407_v41 = vmax.f32 %v2375_v8, 0.0 }
 0x317   : > { %v5962_v50 = vpop.f32.mrf.mxu1 }
 0x318   : > { %v2378_v2 = vadd.f32 %v5962_v50, %v5474_v21  ;;  %v2405_v44 = vmax.f32 %v2367_v32, 0.0 }
 0x319   : > { %v2369_v26 = vpop.f32.mrf.mxu1 }
 0x31a   : > { %v2370_v53 = vadd.f32 %v5474_v21, %v2369_v26  ;;  %v2408_v4 = vmax.f32 %v2378_v2, 0.0 }
 0x31c   : > { %v2406_v45 = vmax.f32 %v2370_v53, 0.0  ;;  %v2418_v47 = vpack.c.bf16 %v2408_v4, %v2407_v41 }
 0x31e   : > { %v2417_v23 = vpack.c.bf16 %v2406_v45, %v2405_v44 }
 0x320   : > { %5991 = vmatprep.mubr.bf16.mxu1 %v2417_v23 }
 0x321   : > { %5992 = vmatmul.mubr.bf16.gmra.mxu1 %v2418_v47 }
 0x323   : > { %v5965_v29 = vpop.f32.mrf.mxu1 }
 0x324   : > { %v2391_v46 = vadd.f32 %v5965_v29, %v5474_v21 }
 0x325   : > { %v2382_v33 = vpop.f32.mrf.mxu1 }
 0x326   : > { %v2383_v62 = vadd.f32 %v5474_v21, %v2382_v33  ;;  %v2411_v27 = vmax.f32 %v2391_v46, 0.0 }
 0x327   : > { %v5966_v25 = vpop.f32.mrf.mxu1 }
 0x328   : > { %v2394_v35 = vadd.f32 %v5966_v25, %v5474_v21  ;;  %v2409_v42 = vmax.f32 %v2383_v62, 0.0 }
 0x329   : > { %v2385_v12 = vpop.f32.mrf.mxu1 }
 0x32a   : > { %v2386_v30 = vadd.f32 %v5474_v21, %v2385_v12  ;;  %v2412_v20 = vmax.f32 %v2394_v35, 0.0  ;;  %v6317_v21 = vld [vmem:[%s8807_s11 + $0x40] ss:$8 sps:$4 sm:$0xff]  }
 0x32b   : > { %2920 = vmatpush1.bf16.msra.mxu1 %v6317_v21  ;;  %v6326_v21 = vld [vmem:[%s8807_s11 + $0x10] ss:$8 sps:$4 sm:$0xff]  }
 0x32c   : > { %v2410_v54 = vmax.f32 %v2386_v30, 0.0  ;;  %v2420_v34 = vpack.c.bf16 %v2412_v20, %v2411_v27  ;;  %2921 = vmatprep.subr.bf16.mxu1 %v6322_v36  ;;  %v6331_v36 = vld [vmem:[%s8807_s11 + $0x4] ss:$8 sps:$4 sm:$0xff]  }
 0x32e   : > { %v2419_v10 = vpack.c.bf16 %v2410_v54, %v2409_v42 }
 0x32f   : > { %2922 = vmatpush1.bf16.msra.mxu1 %v6320_v11  ;;  %v6329_v11 = vld [vmem:[%s8807_s11] ss:$8 sps:$4 sm:$0xff]  }
 0x330   : > { %5995 = vmatprep.mubr.bf16.mxu1 %v2419_v10  ;;  %2923 = vmatprep.subr.bf16.mxu1 %v6325_v63 }
 0x331   : > { %5996 = vmatmul.mubr.bf16.gmra.mxu1 %v2420_v34 }
 0x332   : > { %2945 = vmatprep.mubr.bf16.mxu1 %v8833_v56 }
 0x333   : > { %2924 = vmatpush1.bf16.msra.mxu1 %v6323_v9  ;;  %v6359_v9 = vld [vmem:[%s8809_s13 + $0xb0] ss:$28 sps:$4 sm:$0xff]  }
 0x334   : > { %2925 = vmatprep.subr.bf16.mxu1 %v6328_v1 }
 0x337   : > { %2926 = vmatpush1.bf16.msra.mxu1 %v6326_v21 }
 0x338   : > { %2927 = vmatprep.subr.bf16.mxu1 %v6331_v36  ;;  %v6367_v36 = vld [vmem:[%s8809_s13 + $0x7c] ss:$28 sps:$4 sm:$0xff]  }
 0x33b   : > { %2928 = vmatpush1.bf16.msra.mxu1 %v6329_v11 }
 0x3c1   : > { %v5985_v5 = vpop.f32.mrf.mxu1 }
 0x3c2   : > { %v2535_v19 = vadd.f32 %v5985_v5, %v5483_v57  ;;  %v6332_v5 = vld [vmem:[%s8809_s13 + $0x188] ss:$28 sps:$4 sm:$0xff]  }
 0x3c3   : > { %v2526_v14 = vpop.f32.mrf.mxu1 }
 0x3c4   : > { %v2527_v6 = vadd.f32 %v5483_v57, %v2526_v14  ;;  %v2591_v24 = vmax.f32 %v2535_v19, 0.0  ;;  %v6334_v14 = vld [vmem:[%s8809_s13 + $0x18c] ss:$28 sps:$4 sm:$0xff]   ;;  %v6344_v19 = vld [vmem:[%s8809_s13 + $0x118] ss:$28 sps:$4 sm:$0xff]  }
 0x3c5   : > { %v5986_v49 = vpop.f32.mrf.mxu1  ;;  %3815 = vmatprep.subr.bf16.mxu0 %v6334_v14 }
 0x3c6   : > { %v2538_v13 = vadd.f32 %v5986_v49, %v5483_v57  ;;  %v2589_v17 = vmax.f32 %v2527_v6, 0.0  ;;  %v6340_v49 = vld [vmem:[%s8809_s13 + $0x154] ss:$28 sps:$4 sm:$0xff]  }
 0x3c7   : > { %v2529_v60 = vpop.f32.mrf.mxu1  ;;  %v6338_v6 = vld [vmem:[%s8809_s13 + $0x150] ss:$28 sps:$4 sm:$0xff]  }
 0x3c8   : > { %v2530_v39 = vadd.f32 %v5483_v57, %v2529_v60  ;;  %v2592_v59 = vmax.f32 %v2538_v13, 0.0  ;;  %v6346_v13 = vld [vmem:[%s8809_s13 + $0x11c] ss:$28 sps:$4 sm:$0xff]   ;;  %v6352_v60 = vld [vmem:[%s8809_s13 + $0xe4] ss:$28 sps:$4 sm:$0xff]  }
 0x3ca   : > { %v2590_v55 = vmax.f32 %v2530_v39, 0.0  ;;  %v2606_v15 = vpack.c.bf16 %v2592_v59, %v2591_v24  ;;  %v6350_v39 = vld [vmem:[%s8809_s13 + $0xe0] ss:$28 sps:$4 sm:$0xff]   ;;  %v6358_v59 = vld [vmem:[%s8809_s13 + $0xac] ss:$28 sps:$4 sm:$0xff]  }
 0x3cb   : > { %v6362_v24 = vld [vmem:[%s8809_s13 + $0x70] ss:$28 sps:$4 sm:$0xff]  }
 0x3cc   : > { %v2605_v37 = vpack.c.bf16 %v2590_v55, %v2589_v17  ;;  %v6356_v17 = vld [vmem:[%s8809_s13 + $0xa8] ss:$28 sps:$4 sm:$0xff]   ;;  %v6364_v55 = vld [vmem:[%s8809_s13 + $0x74] ss:$28 sps:$4 sm:$0xff]  }
 0x3ce   : > { %6015 = vmatprep.mubr.bf16.mxu0 %v2605_v37  ;;  %v6370_v37 = vld [vmem:[%s8809_s13 + $0x3c] ss:$28 sps:$4 sm:$0xff]  }
 0x3cf   : > { %6016 = vmatmul.mubr.bf16.vlgmr.msra.gmra.mxu0 %v2606_v15  ;;  %v6368_v15 = vld [vmem:[%s8809_s13 + $0x38] ss:$28 sps:$4 sm:$0xff]  }
 0x3d0   : > { %3816 = vmatpush1.bf16.msra.mxu0 %v6332_v5  ;;  %v6365_v5 = vld [vmem:[%s8809_s13 + $0x78] ss:$28 sps:$4 sm:$0xff]  }
 0x3d1   : > { %v5989_v28 = vpop.f32.mrf.mxu1  ;;  %3817 = vmatprep.subr.bf16.mxu0 %v6340_v49 }
 0x3d2   : > { %v2551_v7 = vadd.f32 %v5989_v28, %v5483_v57  ;;  %v6376_v28 = vld [vmem:[%s8809_s13 + $0x4] ss:$28 sps:$4 sm:$0xff]  }
 0x3d3   : > { %v2542_v22 = vpop.f32.mrf.mxu1 }
 0x3d4   : > { %v2543_v38 = vadd.f32 %v5483_v57, %v2542_v22  ;;  %v2595_v50 = vmax.f32 %v2551_v7, 0.0  ;;  %3818 = vmatpush1.bf16.msra.mxu0 %v6338_v6  ;;  %v6374_v22 = vld [vmem:[%s8809_s13] ss:$28 sps:$4 sm:$0xff]   ;;  %v6386_v7 = vld [vmem:[%s8809_s13 + $0x310] ss:$28 sps:$4 sm:$0xff]  }
 0x3d5   : > { %v5990_v16 = vpop.f32.mrf.mxu1  ;;  %3819 = vmatprep.subr.bf16.mxu0 %v6346_v13 }
 0x3d6   : > { %v2554_v43 = vadd.f32 %v5990_v16, %v5483_v57  ;;  %v2593_v58 = vmax.f32 %v2543_v38, 0.0  ;;  %v6382_v16 = vld [vmem:[%s8809_s13 + $0x34c] ss:$28 sps:$4 sm:$0xff]  }
 0x3d7   : > { %v2545_v18 = vpop.f32.mrf.mxu1  ;;  %v6380_v38 = vld [vmem:[%s8809_s13 + $0x348] ss:$28 sps:$4 sm:$0xff]  }
 0x3d8   : > { %v2546_v61 = vadd.f32 %v5483_v57, %v2545_v18  ;;  %v2596_v40 = vmax.f32 %v2554_v43, 0.0  ;;  %3820 = vmatpush1.bf16.msra.mxu0 %v6344_v19  ;;  %v6388_v43 = vld [vmem:[%s8809_s13 + $0x314] ss:$28 sps:$4 sm:$0xff]   ;;  %v6394_v18 = vld [vmem:[%s8809_s13 + $0x2dc] ss:$28 sps:$4 sm:$0xff]  }
 0x3d9   : > { %3821 = vmatprep.subr.bf16.mxu0 %v6352_v60  ;;  %v6371_v19 = vld [vmem:[%s8809_s13 + $0x40] ss:$28 sps:$4 sm:$0xff]  }
 0x3da   : > { %v2594_v31 = vmax.f32 %v2546_v61, 0.0  ;;  %v2608_v2 = vpack.c.bf16 %v2596_v40, %v2595_v50  ;;  %v6392_v61 = vld [vmem:[%s8809_s13 + $0x2d8] ss:$28 sps:$4 sm:$0xff]   ;;  %v6400_v40 = vld [vmem:[%s8809_s13 + $0x2a4] ss:$28 sps:$4 sm:$0xff]  }
 0x3db   : > { %v6404_v50 = vld [vmem:[%s8809_s13 + $0x268] ss:$28 sps:$4 sm:$0xff]  }
 0x3dc   : > { %v2607_v32 = vpack.c.bf16 %v2594_v31, %v2593_v58  ;;  %3822 = vmatpush1.bf16.msra.mxu0 %v6350_v39  ;;  %v6398_v58 = vld [vmem:[%s8809_s13 + $0x2a0] ss:$28 sps:$4 sm:$0xff]   ;;  %v6406_v31 = vld [vmem:[%s8809_s13 + $0x26c] ss:$28 sps:$4 sm:$0xff]  }
 0x3dd   : > { %3823 = vmatprep.subr.bf16.mxu0 %v6358_v59  ;;  %v6379_v39 = vld [vmem:[%s8809_s13 + $0xc] ss:$28 sps:$4 sm:$0xff]  }
 0x3de   : > { %6019 = vmatprep.mubr.bf16.mxu0 %v2607_v32 }
 0x3df   : > { %6020 = vmatmul.mubr.bf16.gmra.mxu0 %v2608_v2 }
 0x3e0   : > { %3824 = vmatpush1.bf16.msra.mxu0 %v6356_v17 }
 0x3e1   : > { %v5993_v8 = vpop.f32.mrf.mxu1  ;;  %3825 = vmatprep.subr.bf16.mxu0 %v6364_v55 }
 0x3e2   : > { %v2567_v45 = vadd.f32 %v5993_v8, %v5483_v57  ;;  %v7889_v8 = vld [vmem:[%s8806_s10] ss:$0 sm:$0xff] }
 0x3e3   : > { %v2558_v26 = vpop.f32.mrf.mxu1 }
 0x3e4   : > { %v2559_v4 = vadd.f32 %v5483_v57, %v2558_v26  ;;  %v2599_v25 = vmax.f32 %v2567_v45, 0.0  ;;  %3826 = vmatpush1.bf16.msra.mxu0 %v6362_v24  ;;  %v6377_v24 = vld [vmem:[%s8809_s13 + $0x8] ss:$28 sps:$4 sm:$0xff]  }
 0x3e5   : > { %v5994_v53 = vpop.f32.mrf.mxu1  ;;  %3827 = vmatprep.subr.bf16.mxu0 %v6370_v37 }
 0x3e6   : > { %v2570_v44 = vadd.f32 %v5994_v53, %v5483_v57  ;;  %v2597_v29 = vmax.f32 %v2559_v4, 0.0 }
 0x3e7   : > { %v2561_v41 = vpop.f32.mrf.mxu1 }
 0x3e8   : > { %v2562_v23 = vadd.f32 %v5483_v57, %v2561_v41  ;;  %v2600_v47 = vmax.f32 %v2570_v44, 0.0  ;;  %3828 = vmatpush1.bf16.msra.mxu0 %v6368_v15  ;;  %v6385_v15 = vld [vmem:[%s8809_s13 + $0x354] ss:$28 sps:$4 sm:$0xff]  }
 0x3e9   : > { %3829 = vmatprep.subr.bf16.mxu0 %v6376_v28 }
 0x3ea   : > { %v2598_v33 = vmax.f32 %v2562_v23, 0.0  ;;  %v2610_v35 = vpack.c.bf16 %v2600_v47, %v2599_v25  ;;  %v6335_v23 = vld [vmem:[%s8809_s13 + $0x190] ss:$28 sps:$4 sm:$0xff]  }
 0x3ec   : > { %v2609_v62 = vpack.c.bf16 %v2598_v33, %v2597_v29  ;;  %3830 = vmatpush1.bf16.msra.mxu0 %v6374_v22  ;;  %v6343_v33 = vld [vmem:[%s8809_s13 + $0x15c] ss:$28 sps:$4 sm:$0xff]  }
 0x3ed   : > { %3831 = vmatprep.subr.bf16.mxu0 %v6382_v16  ;;  %v6383_v16 = vld [vmem:[%s8809_s13 + $0x350] ss:$28 sps:$4 sm:$0xff]  }
 0x3ee   : > { %6023 = vmatprep.mubr.bf16.mxu0 %v2609_v62  ;;  %v6341_v62 = vld [vmem:[%s8809_s13 + $0x158] ss:$28 sps:$4 sm:$0xff]  }
 0x3ef   : > { %6024 = vmatmul.mubr.bf16.gmra.mxu0 %v2610_v35 }
 0x3f0   : > { %3832 = vmatpush2.bf16.msra.mxu0 %v6380_v38 }
 0x3f1   : > { %v5997_v46 = vpop.f32.mrf.mxu1  ;;  %3833 = vmatprep.subr.bf16.mxu0 %v6388_v43 }
 0x3f2   : > { %v2583_v54 = vadd.f32 %v5997_v46, %v5483_v57  ;;  %v6349_v46 = vld [vmem:[%s8809_s13 + $0x124] ss:$28 sps:$4 sm:$0xff]  }
 0x3f3   : > { %v2574_v12 = vpop.f32.mrf.mxu1 }
 0x3f4   : > { %v2575_v20 = vadd.f32 %v5483_v57, %v2574_v12  ;;  %v2603_v51 = vmax.f32 %v2583_v54, 0.0  ;;  %3834 = vmatpush2.bf16.msra.mxu0 %v6386_v7  ;;  %v6391_v7 = vld [vmem:[%s8809_s13 + $0x31c] ss:$28 sps:$4 sm:$0xff]  }
 0x3f5   : > { %v5998_v30 = vpop.f32.mrf.mxu1  ;;  %3835 = vmatprep.subr.bf16.mxu0 %v6394_v18 }
 0x3f6   : > { %v2586_v42 = vadd.f32 %v5998_v30, %v5483_v57  ;;  %v2601_v52 = vmax.f32 %v2575_v20, 0.0 }
 0x3f7   : > { %v2577_v27 = vpop.f32.mrf.mxu1 }
 0x3f8   : > { %v2578_v10 = vadd.f32 %v5483_v57, %v2577_v27  ;;  %v2604_v34 = vmax.f32 %v2586_v42, 0.0  ;;  %v6337_v57 = vld [vmem:[%s8809_s13 + $0x194] ss:$28 sps:$4 sm:$0xff]   ;;  %3836 = vmatpush2.bf16.msra.mxu0 %v6392_v61  ;;  %v6347_v42 = vld [vmem:[%s8809_s13 + $0x120] ss:$28 sps:$4 sm:$0xff]  }
 0x3f9   : > { %3928 = vmatprep.subr.bf16.mxu1 %v6337_v57  ;;  %3837 = vmatprep.subr.bf16.mxu0 %v6400_v40  ;;  %v6355_v27 = vld [vmem:[%s8809_s13 + $0xec] ss:$28 sps:$4 sm:$0xff]   ;;  %v6373_v57 = vld [vmem:[%s8809_s13 + $0x44] ss:$28 sps:$4 sm:$0xff]   ;;  %v6389_v61 = vld [vmem:[%s8809_s13 + $0x318] ss:$28 sps:$4 sm:$0xff]  }
 0x3fa   : > { %v2602_v0 = vmax.f32 %v2578_v10, 0.0  ;;  %v2612_v3 = vpack.c.bf16 %v2604_v34, %v2603_v51 }
 0x3fc   : > { %v2611_v48 = vpack.c.bf16 %v2602_v0, %v2601_v52  ;;  %3838 = vmatpush2.bf16.msra.mxu0 %v6398_v58  ;;  %v6353_v0 = vld [vmem:[%s8809_s13 + $0xe8] ss:$28 sps:$4 sm:$0xff]  }
 0x3fd   : > { %3839 = vmatprep.subr.bf16.mxu0 %v6406_v31  ;;  %v6397_v58 = vld [vmem:[%s8809_s13 + $0x2e4] ss:$28 sps:$4 sm:$0xff]  }
 0x3fe   : > { %6027 = vmatprep.mubr.bf16.mxu0 %v2611_v48  ;;  %v6361_v48 = vld [vmem:[%s8809_s13 + $0xb4] ss:$28 sps:$4 sm:$0xff]  }
 0x3ff   : > { %6028 = vmatmul.mubr.bf16.gmra.mxu0 %v2612_v3 }
 0x400   : > { %3840 = vmatpush2.bf16.msra.mxu0 %v6404_v50 }
 0x48f   : > { %v6017_v32 = vpop.f32.mrf.mxu0 }
 0x490   : > { %v2727_v25 = vadd.f32 %v6017_v32, %v7889_v8 }
 0x491   : > { %v2718_v2 = vpop.f32.mrf.mxu0 }
 0x492   : > { %v2719_v53 = vadd.f32 %v7889_v8, %v2718_v2  ;;  %v2783_v30 = vmax.f32 %v2727_v25, 0.0  ;;  %v6395_v2 = vld [vmem:[%s8809_s13 + $0x2e0] ss:$28 sps:$4 sm:$0xff]   ;;  %v6407_v25 = vld [vmem:[%s8809_s13 + $0x270] ss:$28 sps:$4 sm:$0xff]  }
 0x493   : > { %v6018_v26 = vpop.f32.mrf.mxu0 }
 0x494   : > { %v2781_v45 = vmax.f32 %v2719_v53, 0.0  ;;  %v2730_v47 = vadd.f32 %v6018_v26, %v7889_v8  ;;  %v6403_v53 = vld [vmem:[%s8809_s13 + $0x2ac] ss:$28 sps:$4 sm:$0xff]  }
 0x495   : > { %v2721_v4 = vpop.f32.mrf.mxu0 }
 0x496   : > { %v2722_v44 = vadd.f32 %v7889_v8, %v2721_v4  ;;  %v2784_v35 = vmax.f32 %v2730_v47, 0.0  ;;  %v6409_v47 = vld [vmem:[%s8809_s13 + $0x274] ss:$28 sps:$4 sm:$0xff]  }
 0x498   : > { %v2782_v41 = vmax.f32 %v2722_v44, 0.0  ;;  %v2798_v54 = vpack.c.bf16 %v2784_v35, %v2783_v30 }
 0x49a   : > { %v2797_v29 = vpack.c.bf16 %v2782_v41, %v2781_v45  ;;  %v6401_v41 = vld [vmem:[%s8809_s13 + $0x2a8] ss:$28 sps:$4 sm:$0xff]  }
 0x49c   : > { %2946 = vmatmul.mubr.bf16.vlgmr.msra.gmra.mxu1 %v2797_v29 }
 0x49d   : > { %2955 = vmatprep.mubr.bf16.mxu1 %v8833_v56  ;;  %3929 = vmatpush1.bf16.msra.mxu1 %v6335_v23 }
 0x49e   : > { %3930 = vmatprep.subr.bf16.mxu1 %v6343_v33 }
 0x49f   : > { %v6021_v12 = vpop.f32.mrf.mxu0 }
 0x4a0   : > { %v2743_v11 = vadd.f32 %v6021_v12, %v7889_v8 }
 0x4a1   : > { %v2734_v20 = vpop.f32.mrf.mxu0  ;;  %3931 = vmatpush1.bf16.msra.mxu1 %v6341_v62 }
 0x4a2   : > { %3932 = vmatprep.subr.bf16.mxu1 %v6349_v46  ;;  %v2735_v34 = vadd.f32 %v7889_v8, %v2734_v20  ;;  %v2787_v6 = vmax.f32 %v2743_v11, 0.0 }
 0x4a3   : > { %v6022_v10 = vpop.f32.mrf.mxu0 }
 0x4a4   : > { %2956 = vmatmul.mubr.bf16.gmra.mxu1 %v2798_v54  ;;  %v2785_v3 = vmax.f32 %v2735_v34, 0.0  ;;  %v2746_v1 = vadd.f32 %v6022_v10, %v7889_v8  ;;  %v6415_v54 = vld [vmem:[%s8809_s13 + $0x23c] ss:$28 sps:$4 sm:$0xff]   ;;  %v6421_v10 = vld [vmem:[%s8809_s13 + $0x204] ss:$28 sps:$4 sm:$0xff]  }
 0x4a5   : > { %v2737_v52 = vpop.f32.mrf.mxu0  ;;  %2965 = vmatprep.mubr.bf16.mxu1 %v8833_v56  ;;  %3933 = vmatpush1.bf16.msra.mxu1 %v6347_v42  ;;  %v6412_v42 = vld [vmem:[%s8809_s13 + $0x234] ss:$28 sps:$4 sm:$0xff]  }
 0x4a6   : > { %v2738_v51 = vadd.f32 %v7889_v8, %v2737_v52  ;;  %3934 = vmatprep.subr.bf16.mxu1 %v6355_v27  ;;  %v2788_v14 = vmax.f32 %v2746_v1, 0.0  ;;  %3841 = vmatprep.subr.bf16.mxu0 %v6412_v42  ;;  %v6418_v27 = vld [vmem:[%s8809_s13 + $0x1fc] ss:$28 sps:$4 sm:$0xff]   ;;  %v2821_v1 = vld [vmem:[%s8808_s12] sm:$0x3] }
 0x4a7   : > { %v6416_v34 = vld [vmem:[%s8809_s13 + $0x1f8] ss:$28 sps:$4 sm:$0xff]   ;;  %v6419_v52 = vld [vmem:[%s8809_s13 + $0x200] ss:$28 sps:$4 sm:$0xff]  }
 0x4a8   : > { %v2786_v63 = vmax.f32 %v2738_v51, 0.0  ;;  %v2800_v60 = vpack.c.bf16 %v2788_v14, %v2787_v6  ;;  %v6427_v51 = vld [vmem:[%s8809_s13 + $0x1cc] ss:$28 sps:$4 sm:$0xff]  }
 0x4a9   : > { %3935 = vmatpush1.bf16.msra.mxu1 %v6353_v0  ;;  %v6424_v0 = vld [vmem:[%s8809_s13 + $0x1c4] ss:$28 sps:$4 sm:$0xff]  }
 0x4aa   : > { %v2799_v21 = vpack.c.bf16 %v2786_v63, %v2785_v3  ;;  %3936 = vmatprep.subr.bf16.mxu1 %v6361_v48  ;;  %v6422_v48 = vld [vmem:[%s8809_s13 + $0x1c0] ss:$28 sps:$4 sm:$0xff]   ;;  %v6425_v3 = vld [vmem:[%s8809_s13 + $0x1c8] ss:$28 sps:$4 sm:$0xff]  }
 0x4ab   : > { %v6430_v63 = vld [vmem:[%s8809_s13 + $0x19c] ss:$28 sps:$4 sm:$0xff]  }
 0x4ac   : > { %2966 = vmatmul.mubr.bf16.gmra.mxu1 %v2799_v21 }
 0x4ad   : > { %2975 = vmatprep.mubr.bf16.mxu1 %v8833_v56  ;;  %3937 = vmatpush1.bf16.msra.mxu1 %v6359_v9  ;;  %v6431_v9 = vld [vmem:[%s8809_s13 + $0x360] ss:$28 sps:$4 sm:$0xff]  }
 0x4ae   : > { %3938 = vmatprep.subr.bf16.mxu1 %v6367_v36  ;;  %v8834_v36 = vld [vmem:[#allocation4_spill] sm:$0xff] }
 0x4af   : > { %v6025_v49 = vpop.f32.mrf.mxu0  ;;  %v8035_v11 = vrot.slane %v2821_v1, %v8834_v36 }
 0x4b0   : > { %v2759_v18 = vadd.f32 %v6025_v49, %v7889_v8 }
 0x4b1   : > { %v2750_v13 = vpop.f32.mrf.mxu0  ;;  %3939 = vmatpush1.bf16.msra.mxu1 %v6365_v5  ;;  %v8835_v5 = vld [vmem:[#allocation3_spill] sm:$0xff] }
 0x4b2   : > { %3940 = vmatprep.subr.bf16.mxu1 %v6373_v57  ;;  %v2751_v17 = vadd.f32 %v7889_v8, %v2750_v13  ;;  %v2791_v50 = vmax.f32 %v2759_v18, 0.0  ;;  %v8038_v14 = vrot.slane %v2821_v1, %v8835_v5  ;;  %v6439_v18 = vld [vmem:[%s8809_s13 + $0x328] ss:$28 sps:$4 sm:$0xff]   ;;  %v6444_v1 = vld [vmem:[%s8809_s13 + $0xb8] ss:$28 sps:$4 sm:$0xff]  }
 0x4b3   : > { %v6026_v59 = vpop.f32.mrf.mxu0 }
 0x4b4   : > { %2976 = vmatmul.mubr.bf16.gmra.mxu1 %v2800_v60  ;;  %v2789_v28 = vmax.f32 %v2751_v17, 0.0  ;;  %v2762_v38 = vadd.f32 %v6026_v59, %v7889_v8 }
 0x4b5   : > { %v2753_v55 = vpop.f32.mrf.mxu0  ;;  %2985 = vmatprep.mubr.bf16.mxu1 %v8833_v56  ;;  %3941 = vmatpush1.bf16.msra.mxu1 %v6371_v19 }
 0x4b6   : > { %v2754_v37 = vadd.f32 %v7889_v8, %v2753_v55  ;;  %3942 = vmatprep.subr.bf16.mxu1 %v6379_v39  ;;  %v2792_v40 = vmax.f32 %v2762_v38, 0.0 }
 0x4b8   : > { %v2790_v22 = vmax.f32 %v2754_v37, 0.0  ;;  %v2802_v26 = vpack.c.bf16 %v2792_v40, %v2791_v50 }
 0x4b9   : > { %3943 = vmatpush1.bf16.msra.mxu1 %v6377_v24 }
 0x4ba   : > { %v2801_v43 = vpack.c.bf16 %v2790_v22, %v2789_v28  ;;  %3944 = vmatprep.subr.bf16.mxu1 %v6385_v15  ;;  %v6428_v22 = vld [vmem:[%s8809_s13 + $0x198] ss:$28 sps:$4 sm:$0xff]  }
 0x4bc   : > { %2986 = vmatmul.mubr.bf16.gmra.mxu1 %v2801_v43 }
 0x4bd   : > { %2995 = vmatprep.mubr.bf16.mxu1 %v8833_v56  ;;  %3945 = vmatpush2.bf16.msra.mxu1 %v6383_v16  ;;  %v6432_v16 = vld [vmem:[%s8809_s13 + $0x1a0] ss:$28 sps:$4 sm:$0xff]  }
 0x4be   : > { %3946 = vmatprep.subr.bf16.mxu1 %v6391_v7  ;;  %v6435_v7 = vld [vmem:[%s8809_s13 + $0x164] ss:$28 sps:$4 sm:$0xff]  }
 0x4bf   : > { %v6029_v31 = vpop.f32.mrf.mxu0 }
 0x4c0   : > { %v2775_v46 = vadd.f32 %v6029_v31, %v7889_v8 }
 0x4c1   : > { %v2766_v32 = vpop.f32.mrf.mxu0  ;;  %3947 = vmatpush2.bf16.msra.mxu1 %v6389_v61 }
 0x4c2   : > { %3948 = vmatprep.subr.bf16.mxu1 %v6397_v58  ;;  %v2767_v44 = vadd.f32 %v7889_v8, %v2766_v32  ;;  %v2795_v30 = vmax.f32 %v2775_v46, 0.0  ;;  %v6433_v32 = vld [vmem:[%s8809_s13 + $0x160] ss:$28 sps:$4 sm:$0xff]   ;;  %v6443_v46 = vld [vmem:[%s8809_s13 + $0xf4] ss:$28 sps:$4 sm:$0xff]  }
 0x4c3   : > { %v6030_v4 = vpop.f32.mrf.mxu0 }
 0x4c4   : > { %2996 = vmatmul.mubr.bf16.gmra.mxu1 %v2802_v26  ;;  %v2793_v29 = vmax.f32 %v2767_v44, 0.0  ;;  %v2778_v62 = vadd.f32 %v6030_v4, %v7889_v8  ;;  %v6438_v4 = vld [vmem:[%s8809_s13 + $0x12c] ss:$28 sps:$4 sm:$0xff]  }
 0x4c5   : > { %v2769_v45 = vpop.f32.mrf.mxu0  ;;  %3005 = vmatprep.mubr.bf16.mxu1 %v8833_v56  ;;  %3949 = vmatpush2.bf16.msra.mxu1 %v6395_v2  ;;  %v6440_v2 = vld [vmem:[%s8809_s13 + $0x168] ss:$28 sps:$4 sm:$0xff]   ;;  %v6447_v44 = vld [vmem:[%s8809_s13 + $0x2f0] ss:$28 sps:$4 sm:$0xff]  }
 0x4c6   : > { %v2770_v23 = vadd.f32 %v7889_v8, %v2769_v45  ;;  %3950 = vmatprep.subr.bf16.mxu1 %v6403_v53  ;;  %v2796_v12 = vmax.f32 %v2778_v62, 0.0  ;;  %v6410_v8 = vld [vmem:[%s8809_s13 + $0x230] ss:$28 sps:$4 sm:$0xff]  }
 0x4c7   : > { %3842 = vmatpush2.bf16.msra.mxu0 %v6410_v8 }
 0x4c8   : > { %v2794_v33 = vmax.f32 %v2770_v23, 0.0  ;;  %v2804_v20 = vpack.c.bf16 %v2796_v12, %v2795_v30  ;;  %3843 = vmatprep.subr.bf16.mxu0 %v6418_v27  ;;  %v6455_v12 = vld [vmem:[%s8809_s13 + $0x2b8] ss:$28 sps:$4 sm:$0xff]  }
 0x4c9   : > { %3951 = vmatpush2.bf16.msra.mxu1 %v6401_v41  ;;  %v6456_v27 = vld [vmem:[%s8809_s13 + $0xf8] ss:$28 sps:$4 sm:$0xff]  }
 0x4ca   : > { %v2803_v35 = vpack.c.bf16 %v2794_v33, %v2793_v29  ;;  %3952 = vmatprep.subr.bf16.mxu1 %v6409_v47  ;;  %v6436_v33 = vld [vmem:[%s8809_s13 + $0x128] ss:$28 sps:$4 sm:$0xff]  }
 0x4cb   : > { %3844 = vmatpush2.bf16.msra.mxu0 %v6416_v34 }
 0x4cc   : > { %3006 = vmatmul.mubr.bf16.gmra.mxu1 %v2803_v35  ;;  %3845 = vmatprep.subr.bf16.mxu0 %v6424_v0  ;;  %v6463_v0 = vld [vmem:[%s8809_s13 + $0x280] ss:$28 sps:$4 sm:$0xff]  }
 0x4cd   : > { %3015 = vmatprep.mubr.bf16.mxu1 %v8833_v56  ;;  %3953 = vmatpush2.bf16.msra.mxu1 %v6407_v25  ;;  %v6413_v56 = vld [vmem:[%s8809_s13 + $0x238] ss:$28 sps:$4 sm:$0xff]   ;;  %v6448_v25 = vld [vmem:[%s8809_s13 + $0x130] ss:$28 sps:$4 sm:$0xff]  }
 0x4ce   : > { %3954 = vmatprep.subr.bf16.mxu1 %v6415_v54 }
 0x4cf   : > { %3846 = vmatpush2.bf16.msra.mxu0 %v6422_v48 }
 0x4d0   : > { %4041 = vmatprep.subr.bf16.mxu0 %v6430_v63 }
 0x4d1   : > { %3955 = vmatpush2.bf16.msra.mxu1 %v6413_v56  ;;  %v6441_v56 = vld [vmem:[%s8809_s13 + $0xf0] ss:$28 sps:$4 sm:$0xff]  }
 0x4d2   : > { %3956 = vmatprep.subr.bf16.mxu1 %v6421_v10 }
 0x4d4   : > { %3016 = vmatmul.mubr.bf16.gmra.mxu1 %v2804_v20 }
 0x4d5   : > { %3957 = vmatpush2.bf16.msra.mxu1 %v6419_v52  ;;  %v6446_v52 = vld [vmem:[%s8809_s13 + $0xbc] ss:$28 sps:$4 sm:$0xff]  }
 0x4d6   : > { %3958 = vmatprep.subr.bf16.mxu1 %v6427_v51 }
 0x4d9   : > { %3959 = vmatpush2.bf16.msra.mxu1 %v6425_v3 }
 0x4da   : > { %5871 = vmatprep.subr.bf16.mxu1 %v6431_v9 }
 0x55c   : > { %v2947_v21 = vpop.f32.mrf.mxu1 }
 0x55d   : > { %v2948_v19 = vadd.f32 %v2947_v21, %v8038_v14  ;;  %v6464_v21 = vld [vmem:[%s8809_s13 + $0xc0] ss:$28 sps:$4 sm:$0xff]  }
 0x55e   : > { %v2949_v57 = vpop.f32.mrf.mxu1 }
 0x55f   : > { %v2950_v6 = vadd.f32 %v2949_v57, %v8035_v11  ;;  %v3026_v37 = vmax.f32 %v2948_v19, 0.0 }
 0x560   : > { %v2951_v49 = vpop.f32.mrf.mxu1 }
 0x561   : > { %v2952_v13 = vadd.f32 %v2951_v49, %v8038_v14  ;;  %v3027_v55 = vmax.f32 %v2950_v6, 0.0  ;;  %v6451_v6 = vld [vmem:[%s8809_s13 + $0x84] ss:$28 sps:$4 sm:$0xff]  }
 0x562   : > { %v2953_v60 = vpop.f32.mrf.mxu1 }
 0x563   : > { %v2954_v39 = vadd.f32 %v2953_v60, %v8035_v11  ;;  %v3028_v59 = vmax.f32 %v2952_v13, 0.0  ;;  %v6471_v13 = vld [vmem:[%s8809_s13 + $0x248] ss:$28 sps:$4 sm:$0xff]  }
 0x564   : > { %v2957_v17 = vpop.f32.mrf.mxu1 }
 0x565   : > { %v3029_v24 = vmax.f32 %v2954_v39, 0.0  ;;  %v8052_v38 = vpack.c.bf16 %v3028_v59, %v3026_v37  ;;  %v2958_v58 = vadd.f32 %v2957_v17, %v8038_v14 }
 0x566   : > { %v2959_v15 = vpop.f32.mrf.mxu1 }
 0x567   : > { %v8044_v28 = vpack.c.bf16 %v3029_v24, %v3027_v55  ;;  %v2960_v61 = vadd.f32 %v2959_v15, %v8035_v11  ;;  %v3030_v23 = vmax.f32 %v2958_v58, 0.0  ;;  %v6449_v55 = vld [vmem:[%s8809_s13 + $0x80] ss:$28 sps:$4 sm:$0xff]   ;;  %v6472_v24 = vld [vmem:[%s8809_s13 + $0x88] ss:$28 sps:$4 sm:$0xff]  }
 0x568   : > { %v2961_v43 = vpop.f32.mrf.mxu1  ;;  %v6452_v58 = vld [vmem:[%s8809_s13 + $0x48] ss:$28 sps:$4 sm:$0xff]  }
 0x569   : > { %v2962_v40 = vadd.f32 %v2961_v43, %v8038_v14  ;;  %3847 = vmatprep.mubr.bf16.mxu0 %v8044_v28  ;;  %3960 = vmatprep.mubr.bf16.mxu1 %v8044_v28  ;;  %v3031_v45 = vmax.f32 %v2960_v61, 0.0 }
 0x56a   : > { %v2963_v31 = vpop.f32.mrf.mxu1  ;;  %3848 = vmatmul.mubr.bf16.vlgmr.msra.gmra.mxu0 %v8052_v38  ;;  %3961 = vmatmul.mubr.bf16.vlgmr.msra.gmra.mxu1 %v8052_v38 }
 0x56b   : > { %v2964_v50 = vadd.f32 %v2963_v31, %v8035_v11  ;;  %4042 = vmatpush1.bf16.msra.mxu0 %v6428_v22  ;;  %5872 = vmatpush3.bf16.msra.mxu1 %v6432_v16  ;;  %v3032_v26 = vmax.f32 %v2962_v40, 0.0  ;;  %v6454_v22 = vld [vmem:[%s8809_s13 + $0x4c] ss:$28 sps:$4 sm:$0xff]  }
 0x56c   : > { %v2967_v53 = vpop.f32.mrf.mxu1  ;;  %4043 = vmatprep.subr.bf16.mxu0 %v6435_v7  ;;  %5873 = vmatprep.subr.bf16.mxu1 %v6439_v18  ;;  %v6479_v16 = vld [vmem:[%s8809_s13 + $0x210] ss:$28 sps:$4 sm:$0xff]  }
 0x56d   : > { %v3033_v41 = vmax.f32 %v2964_v50, 0.0  ;;  %v8088_v62 = vpack.c.bf16 %v3032_v26, %v3030_v23  ;;  %v2968_v42 = vadd.f32 %v2967_v53, %v8038_v14  ;;  %v6480_v31 = vld [vmem:[%s8809_s13 + $0x50] ss:$28 sps:$4 sm:$0xff]   ;;  %v6487_v26 = vld [vmem:[%s8809_s13 + $0x1d8] ss:$28 sps:$4 sm:$0xff]  }
 0x56e   : > { %v2969_v47 = vpop.f32.mrf.mxu1  ;;  %v6457_v23 = vld [vmem:[%s8809_s13 + $0x10] ss:$28 sps:$4 sm:$0xff]  }
 0x56f   : > { %v8080_v29 = vpack.c.bf16 %v3033_v41, %v3031_v45  ;;  %4044 = vmatpush1.bf16.msra.mxu0 %v6433_v32  ;;  %5874 = vmatpush3.bf16.msra.mxu1 %v6440_v2  ;;  %v2970_v30 = vadd.f32 %v2969_v47, %v8035_v11  ;;  %v3034_v3 = vmax.f32 %v2968_v42, 0.0  ;;  %v6459_v2 = vld [vmem:[%s8809_s13 + $0x14] ss:$28 sps:$4 sm:$0xff]  }
 0x570   : > { %v2971_v35 = vpop.f32.mrf.mxu1  ;;  %4045 = vmatprep.subr.bf16.mxu0 %v6438_v4  ;;  %5875 = vmatprep.subr.bf16.mxu1 %v6447_v44  ;;  %v6488_v47 = vld [vmem:[%s8809_s13 + $0x18] ss:$28 sps:$4 sm:$0xff]  }
 0x571   : > { %v2972_v20 = vadd.f32 %v2971_v35, %v8038_v14  ;;  %3857 = vmatprep.mubr.bf16.mxu0 %v8080_v29  ;;  %3970 = vmatprep.mubr.bf16.mxu1 %v8080_v29  ;;  %v3035_v51 = vmax.f32 %v2970_v30, 0.0  ;;  %v6462_v35 = vld [vmem:[%s8809_s13 + $0x35c] ss:$28 sps:$4 sm:$0xff]  }
 0x572   : > { %v2973_v54 = vpop.f32.mrf.mxu1  ;;  %3858 = vmatmul.mubr.bf16.gmra.mxu0 %v8088_v62  ;;  %3971 = vmatmul.mubr.bf16.gmra.mxu1 %v8088_v62 }
 0x573   : > { %v2974_v8 = vadd.f32 %v2973_v54, %v8035_v11  ;;  %4046 = vmatpush1.bf16.msra.mxu0 %v6436_v33  ;;  %5876 = vmatpush3.bf16.msra.mxu1 %v6448_v25  ;;  %v3036_v10 = vmax.f32 %v2972_v20, 0.0  ;;  %v6460_v54 = vld [vmem:[%s8809_s13 + $0x358] ss:$28 sps:$4 sm:$0xff]  }
 0x574   : > { %v2977_v34 = vpop.f32.mrf.mxu1  ;;  %4047 = vmatprep.subr.bf16.mxu0 %v6443_v46  ;;  %5877 = vmatprep.subr.bf16.mxu1 %v6455_v12 }
 0x575   : > { %v3037_v48 = vmax.f32 %v2974_v8, 0.0  ;;  %v8124_v57 = vpack.c.bf16 %v3036_v10, %v3034_v3  ;;  %v2978_v39 = vadd.f32 %v2977_v34, %v8038_v14 }
 0x576   : > { %v2979_v63 = vpop.f32.mrf.mxu1 }
 0x577   : > { %v8116_v9 = vpack.c.bf16 %v3037_v48, %v3035_v51  ;;  %4048 = vmatpush1.bf16.msra.mxu0 %v6441_v56  ;;  %5878 = vmatpush3.bf16.msra.mxu1 %v6456_v27  ;;  %v2980_v19 = vadd.f32 %v2979_v63, %v8035_v11  ;;  %v3038_v18 = vmax.f32 %v2978_v39, 0.0  ;;  %v6467_v27 = vld [vmem:[%s8809_s13 + $0x324] ss:$28 sps:$4 sm:$0xff]  }
 0x578   : > { %v2981_v49 = vpop.f32.mrf.mxu1  ;;  %4049 = vmatprep.subr.bf16.mxu0 %v6446_v52  ;;  %5879 = vmatprep.subr.bf16.mxu1 %v6463_v0  ;;  %v6465_v48 = vld [vmem:[%s8809_s13 + $0x320] ss:$28 sps:$4 sm:$0xff]  }
 0x579   : > { %v2982_v60 = vadd.f32 %v2981_v49, %v8038_v14  ;;  %3867 = vmatprep.mubr.bf16.mxu0 %v8116_v9  ;;  %3980 = vmatprep.mubr.bf16.mxu1 %v8116_v9  ;;  %v3039_v43 = vmax.f32 %v2980_v19, 0.0 }
 0x57a   : > { %v2983_v59 = vpop.f32.mrf.mxu1  ;;  %3868 = vmatmul.mubr.bf16.gmra.mxu0 %v8124_v57  ;;  %3981 = vmatmul.mubr.bf16.gmra.mxu1 %v8124_v57 }
 0x57b   : > { %v2984_v17 = vadd.f32 %v2983_v59, %v8035_v11  ;;  %4050 = vmatpush1.bf16.msra.mxu0 %v6444_v1  ;;  %5880 = vmatpush3.bf16.msra.mxu1 %v6464_v21  ;;  %v3040_v37 = vmax.f32 %v2982_v60, 0.0  ;;  %v6470_v1 = vld [vmem:[%s8809_s13 + $0x2ec] ss:$28 sps:$4 sm:$0xff]  }
 0x57c   : > { %v2987_v15 = vpop.f32.mrf.mxu1  ;;  %4051 = vmatprep.subr.bf16.mxu0 %v6451_v6  ;;  %5881 = vmatprep.subr.bf16.mxu1 %v6471_v13  ;;  %v6468_v60 = vld [vmem:[%s8809_s13 + $0x2e8] ss:$28 sps:$4 sm:$0xff]  }
 0x57d   : > { %v3041_v7 = vmax.f32 %v2984_v17, 0.0  ;;  %v8160_v50 = vpack.c.bf16 %v3040_v37, %v3038_v18  ;;  %v2988_v44 = vadd.f32 %v2987_v15, %v8038_v14  ;;  %v6475_v17 = vld [vmem:[%s8809_s13 + $0x2b4] ss:$28 sps:$4 sm:$0xff]   ;;  %v6478_v18 = vld [vmem:[%s8809_s13 + $0x27c] ss:$28 sps:$4 sm:$0xff]  }
 0x57e   : > { %v2989_v61 = vpop.f32.mrf.mxu1 }
 0x57f   : > { %v8152_v40 = vpack.c.bf16 %v3041_v7, %v3039_v43  ;;  %4052 = vmatpush1.bf16.msra.mxu0 %v6449_v55  ;;  %5882 = vmatpush3.bf16.msra.mxu1 %v6472_v24  ;;  %v2990_v53 = vadd.f32 %v2989_v61, %v8035_v11  ;;  %v3042_v30 = vmax.f32 %v2988_v44, 0.0  ;;  %v6483_v44 = vld [vmem:[%s8809_s13 + $0x244] ss:$28 sps:$4 sm:$0xff]  }
 0x580   : > { %v2991_v32 = vpop.f32.mrf.mxu1  ;;  %4053 = vmatprep.subr.bf16.mxu0 %v6454_v22  ;;  %5883 = vmatprep.subr.bf16.mxu1 %v6479_v16  ;;  %v6473_v16 = vld [vmem:[%s8809_s13 + $0x2b0] ss:$28 sps:$4 sm:$0xff]  }
 0x581   : > { %v2992_v4 = vadd.f32 %v2991_v32, %v8038_v14  ;;  %3877 = vmatprep.mubr.bf16.mxu0 %v8152_v40  ;;  %3990 = vmatprep.mubr.bf16.mxu1 %v8152_v40  ;;  %v3043_v46 = vmax.f32 %v2990_v53, 0.0 }
 0x582   : > { %v2993_v45 = vpop.f32.mrf.mxu1  ;;  %3878 = vmatmul.mubr.bf16.gmra.mxu0 %v8160_v50  ;;  %3991 = vmatmul.mubr.bf16.gmra.mxu1 %v8160_v50 }
 0x583   : > { %v2994_v41 = vadd.f32 %v2993_v45, %v8035_v11  ;;  %4054 = vmatpush1.bf16.msra.mxu0 %v6452_v58  ;;  %5884 = vmatpush3.bf16.msra.mxu1 %v6480_v31  ;;  %v3044_v33 = vmax.f32 %v2992_v4, 0.0 }
 0x584   : > { %v2997_v25 = vpop.f32.mrf.mxu1  ;;  %4055 = vmatprep.subr.bf16.mxu0 %v6459_v2  ;;  %5885 = vmatprep.subr.bf16.mxu1 %v6487_v26  ;;  %v6476_v26 = vld [vmem:[%s8809_s13 + $0x278] ss:$28 sps:$4 sm:$0xff]  }
 0x585   : > { %v3045_v12 = vmax.f32 %v2994_v41, 0.0  ;;  %v8190_v8 = vpack.c.bf16 %v3044_v33, %v3042_v30  ;;  %v2998_v52 = vadd.f32 %v2997_v25, %v8038_v14  ;;  %v6481_v25 = vld [vmem:[%s8809_s13 + $0x240] ss:$28 sps:$4 sm:$0xff]  }
 0x586   : > { %v2999_v20 = vpop.f32.mrf.mxu1 }
 0x587   : > { %v8185_v42 = vpack.c.bf16 %v3045_v12, %v3043_v46  ;;  %4056 = vmatpush1.bf16.msra.mxu0 %v6457_v23  ;;  %5886 = vmatpush3.bf16.msra.mxu1 %v6488_v47  ;;  %v3000_v10 = vadd.f32 %v2999_v20, %v8035_v11  ;;  %v3046_v6 = vmax.f32 %v2998_v52, 0.0  ;;  %v6486_v46 = vld [vmem:[%s8809_s13 + $0x20c] ss:$28 sps:$4 sm:$0xff]  }
 0x588   : > { %v3001_v56 = vpop.f32.mrf.mxu1  ;;  %4057 = vmatprep.subr.bf16.mxu0 %v6462_v35 }
 0x589   : > { %v3002_v34 = vadd.f32 %v3001_v56, %v8038_v14  ;;  %3887 = vmatprep.mubr.bf16.mxu0 %v8185_v42  ;;  %4000 = vmatprep.mubr.bf16.mxu1 %v8185_v42  ;;  %v3047_v21 = vmax.f32 %v3000_v10, 0.0  ;;  %v6491_v56 = vld [vmem:[%s8809_s13 + $0x1d4] ss:$28 sps:$4 sm:$0xff]  }
 0x58a   : > { %v3003_v0 = vpop.f32.mrf.mxu1  ;;  %3888 = vmatmul.mubr.bf16.gmra.mxu0 %v8190_v8  ;;  %4001 = vmatmul.mubr.bf16.gmra.mxu1 %v8190_v8 }
 0x58b   : > { %v3004_v51 = vadd.f32 %v3003_v0, %v8035_v11  ;;  %4058 = vmatpush2.bf16.msra.mxu0 %v6460_v54  ;;  %v3048_v3 = vmax.f32 %v3002_v34, 0.0 }
 0x58c   : > { %v3007_v63 = vpop.f32.mrf.mxu1  ;;  %4059 = vmatprep.subr.bf16.mxu0 %v6467_v27  ;;  %v6489_v27 = vld [vmem:[%s8809_s13 + $0x1d0] ss:$28 sps:$4 sm:$0xff]  }
 0x58d   : > { %v3049_v49 = vmax.f32 %v3004_v51, 0.0  ;;  %v8214_v39 = vpack.c.bf16 %v3048_v3, %v3046_v6  ;;  %v3008_v37 = vadd.f32 %v3007_v63, %v8038_v14 }
 0x58e   : > { %v3009_v13 = vpop.f32.mrf.mxu1 }
 0x58f   : > { %v8209_v19 = vpack.c.bf16 %v3049_v49, %v3047_v21  ;;  %4060 = vmatpush2.bf16.msra.mxu0 %v6465_v48  ;;  %v3010_v55 = vadd.f32 %v3009_v13, %v8035_v11  ;;  %v3050_v31 = vmax.f32 %v3008_v37, 0.0 }
 0x590   : > { %v3011_v59 = vpop.f32.mrf.mxu1  ;;  %4061 = vmatprep.subr.bf16.mxu0 %v6470_v1 }
 0x591   : > { %v3012_v24 = vadd.f32 %v3011_v59, %v8038_v14  ;;  %3897 = vmatprep.mubr.bf16.mxu0 %v8209_v19  ;;  %4010 = vmatprep.mubr.bf16.mxu1 %v8209_v19  ;;  %v3051_v61 = vmax.f32 %v3010_v55, 0.0 }
 0x592   : > { %v3013_v15 = vpop.f32.mrf.mxu1  ;;  %3898 = vmatmul.mubr.bf16.gmra.mxu0 %v8214_v39  ;;  %4011 = vmatmul.mubr.bf16.gmra.mxu1 %v8214_v39 }
 0x593   : > { %v3014_v22 = vadd.f32 %v3013_v15, %v8035_v11  ;;  %4062 = vmatpush2.bf16.msra.mxu0 %v6468_v60  ;;  %v3052_v43 = vmax.f32 %v3012_v24, 0.0 }
 0x594   : > { %v3017_v7 = vpop.f32.mrf.mxu1  ;;  %4063 = vmatprep.subr.bf16.mxu0 %v6475_v17 }
 0x595   : > { %v3053_v58 = vmax.f32 %v3014_v22, 0.0  ;;  %v3070_v53 = vpack.c.bf16 %v3052_v43, %v3050_v31  ;;  %v3018_v23 = vadd.f32 %v3017_v7, %v8038_v14 }
 0x596   : > { %v3019_v32 = vpop.f32.mrf.mxu1 }
 0x597   : > { %v3071_v2 = vpack.c.bf16 %v3053_v58, %v3051_v61  ;;  %4064 = vmatpush2.bf16.msra.mxu0 %v6473_v16  ;;  %v3020_v45 = vadd.f32 %v3019_v32, %v8035_v11  ;;  %v3054_v20 = vmax.f32 %v3018_v23, 0.0 }
 0x598   : > { %v3021_v4 = vpop.f32.mrf.mxu1  ;;  %4065 = vmatprep.subr.bf16.mxu0 %v6478_v18 }
 0x599   : > { %v3022_v41 = vadd.f32 %v3021_v4, %v8038_v14  ;;  %3907 = vmatprep.mubr.bf16.mxu0 %v3071_v2  ;;  %4020 = vmatprep.mubr.bf16.mxu1 %v3071_v2  ;;  %v3055_v12 = vmax.f32 %v3020_v45, 0.0 }
 0x59a   : > { %v3023_v47 = vpop.f32.mrf.mxu1  ;;  %3908 = vmatmul.mubr.bf16.gmra.mxu0 %v3070_v53  ;;  %4021 = vmatmul.mubr.bf16.gmra.mxu1 %v3070_v53 }
 0x59b   : > { %v3024_v33 = vadd.f32 %v3023_v47, %v8035_v11  ;;  %4066 = vmatpush2.bf16.msra.mxu0 %v6476_v26  ;;  %v3056_v35 = vmax.f32 %v3022_v41, 0.0  ;;  %v6484_v11 = vld [vmem:[%s8809_s13 + $0x208] ss:$28 sps:$4 sm:$0xff]  }
 0x59c   : > { %4067 = vmatprep.subr.bf16.mxu0 %v6483_v44 }
 0x59d   : > { %v3057_v30 = vmax.f32 %v3024_v33, 0.0  ;;  %v3072_v54 = vpack.c.bf16 %v3056_v35, %v3054_v20 }
 0x59f   : > { %v3073_v14 = vpack.c.bf16 %v3057_v30, %v3055_v12  ;;  %4068 = vmatpush2.bf16.msra.mxu0 %v6481_v25 }
 0x5a0   : > { %4069 = vmatprep.subr.bf16.mxu0 %v6486_v46 }
 0x5a1   : > { %3917 = vmatprep.mubr.bf16.mxu0 %v3073_v14  ;;  %4030 = vmatprep.mubr.bf16.mxu1 %v3073_v14 }
 0x5a2   : > { %3918 = vmatmul.mubr.bf16.gmra.mxu0 %v3072_v54  ;;  %4031 = vmatmul.mubr.bf16.gmra.mxu1 %v3072_v54 }
 0x5a3   : > { %4070 = vmatpush2.bf16.msra.mxu0 %v6484_v11  ;;  %4073 = vmatprep.mubr.bf16.mxu0 %v8044_v28 }
 0x5a4   : > { %4186 = vmatprep.mubr.bf16.mxu1 %v8044_v28  ;;  %4071 = vmatprep.subr.bf16.mxu0 %v6491_v56  ;;  %v8836_v28 = vld [vmem:[#allocation2_spill] sm:$0xff] }
 0x5a7   : > { %4072 = vmatpush2.bf16.msra.mxu0 %v6489_v27 }
 0x5aa   : > { %4074 = vmatmul.mubr.bf16.vlgmr.msra.gmra.mxu0 %v8052_v38  ;;  %4187 = vmatmul.mubr.bf16.vlgmr.msra.gmra.mxu1 %v8052_v38  ;;  %v3214_v38 = vsub.s32 2, %v8836_v28 }
 0x5ab   : > { %4083 = vmatprep.mubr.bf16.mxu0 %v8080_v29  ;;  %4194 = vmatprep.mubr.bf16.mxu1 %v8080_v29  ;;  %v3202_v29 = vld [vmem:[%s8810_s14] sm:$0x7f] }
 0x5b2   : > { %4084 = vmatmul.mubr.bf16.gmra.mxu0 %v8088_v62  ;;  %4195 = vmatmul.mubr.bf16.gmra.mxu1 %v8088_v62  ;;  %v3218_v62 = vsub.s32 3, %v8836_v28 }
 0x5b3   : > { %4093 = vmatprep.mubr.bf16.mxu0 %v8116_v9  ;;  %4202 = vmatprep.mubr.bf16.mxu1 %v8116_v9  ;;  %v8288_v9 = vrot.slane %v3202_v29, %v8835_v5 }
 0x5ba   : > { %4094 = vmatmul.mubr.bf16.gmra.mxu0 %v8124_v57  ;;  %4203 = vmatmul.mubr.bf16.gmra.mxu1 %v8124_v57  ;;  %v8290_v57 = vrot.slane %v3202_v29, %v3214_v38 }
 0x5bb   : > { %4103 = vmatprep.mubr.bf16.mxu0 %v8152_v40  ;;  %4210 = vmatprep.mubr.bf16.mxu1 %v8152_v40  ;;  %v8293_v40 = vrot.slane %v3202_v29, %v8834_v36 }
 0x5c2   : > { %4104 = vmatmul.mubr.bf16.gmra.mxu0 %v8160_v50  ;;  %4211 = vmatmul.mubr.bf16.gmra.mxu1 %v8160_v50  ;;  %v8295_v50 = vrot.slane %v3202_v29, %v3218_v62 }
 0x5c3   : > { %4113 = vmatprep.mubr.bf16.mxu0 %v8185_v42  ;;  %4218 = vmatprep.mubr.bf16.mxu1 %v8185_v42 }
 0x5ca   : > { %4114 = vmatmul.mubr.bf16.gmra.mxu0 %v8190_v8  ;;  %4219 = vmatmul.mubr.bf16.gmra.mxu1 %v8190_v8 }
 0x5cb   : > { %4123 = vmatprep.mubr.bf16.mxu0 %v8209_v19  ;;  %4226 = vmatprep.mubr.bf16.mxu1 %v8209_v19 }
 0x5d2   : > { %4124 = vmatmul.mubr.bf16.gmra.mxu0 %v8214_v39  ;;  %4227 = vmatmul.mubr.bf16.gmra.mxu1 %v8214_v39 }
 0x5d3   : > { %4133 = vmatprep.mubr.bf16.mxu0 %v3071_v2  ;;  %4234 = vmatprep.mubr.bf16.mxu1 %v3071_v2 }
 0x5da   : > { %4134 = vmatmul.mubr.bf16.gmra.mxu0 %v3070_v53  ;;  %4235 = vmatmul.mubr.bf16.gmra.mxu1 %v3070_v53 }
 0x5db   : > { %4143 = vmatprep.mubr.bf16.mxu0 %v3073_v14  ;;  %4242 = vmatprep.mubr.bf16.mxu1 %v3073_v14 }
 0x5e2   : > { %4144 = vmatmul.mubr.bf16.gmra.mxu0 %v3072_v54  ;;  %4243 = vmatmul.mubr.bf16.gmra.mxu1 %v3072_v54 }
 0x62a   : > { %v3849_v42 = vpop.f32.mrf.mxu0  ;;  %v3962_v8 = vpop.f32.mrf.mxu1 }
 0x62b   : > { %v3850_v10 = vadd.f32 %v3849_v42, %v8288_v9  ;;  %v3963_v34 = vadd.f32 %v3962_v8, %v8290_v57 }
 0x62c   : > { %v3851_v52 = vpop.f32.mrf.mxu0  ;;  %v3964_v0 = vpop.f32.mrf.mxu1 }
 0x62d   : > { %v4251_v51 = vsub.f32 0.0, %v3850_v10  ;;  %v4253_v48 = vsub.f32 0.0, %v3963_v34  ;;  %v3852_v5 = vadd.f32 %v3851_v52, %v8293_v40  ;;  %v3965_v3 = vadd.f32 %v3964_v0, %v8295_v50 }
 0x62e   : > { %v3853_v63 = vpop.f32.mrf.mxu0  ;;  %v3966_v1 = vpop.f32.mrf.mxu1 }
 0x62f   : > { %v4363_v36 = vmul.f32 1.442695, %v4251_v51  ;;  %v4367_v21 = vmul.f32 1.442695, %v4253_v48  ;;  %v4252_v49 = vsub.f32 0.0, %v3852_v5  ;;  %v4254_v6 = vsub.f32 0.0, %v3965_v3 }
 0x630   : > { %v3854_v13 = vadd.f32 %v3853_v63, %v8288_v9  ;;  %v3967_v19 = vadd.f32 %v3966_v1, %v8290_v57  ;;  %v3855_v60 = vpop.f32.mrf.mxu0  ;;  %v3968_v39 = vpop.f32.mrf.mxu1 }
 0x631   : > { %6492 = vpow2.f32 %v4363_v36  ;;  %v4365_v59 = vmul.f32 1.442695, %v4252_v49  ;;  %v4369_v17 = vmul.f32 1.442695, %v4254_v6  ;;  %v3856_v55 = vadd.f32 %v3855_v60, %v8293_v40 }
 0x632   : > { %6494 = vpow2.f32 %v4367_v21  ;;  %v4258_v24 = vsub.f32 0.0, %v3854_v13  ;;  %v4260_v37 = vsub.f32 0.0, %v3967_v19  ;;  %v3969_v15 = vadd.f32 %v3968_v39, %v8295_v50  ;;  %v3859_v22 = vpop.f32.mrf.mxu0  ;;  %v3972_v16 = vpop.f32.mrf.mxu1 }
 0x633   : > { %6496 = vpow2.f32 %v4365_v59  ;;  %v4259_v43 = vsub.f32 0.0, %v3856_v55  ;;  %v3860_v7 = vadd.f32 %v3859_v22, %v8288_v9  ;;  %v3973_v18 = vadd.f32 %v3972_v16, %v8290_v57 }
 0x634   : > { %6498 = vpow2.f32 %v4369_v17  ;;  %v4377_v61 = vmul.f32 1.442695, %v4258_v24  ;;  %v4381_v58 = vmul.f32 1.442695, %v4260_v37  ;;  %v4261_v31 = vsub.f32 0.0, %v3969_v15  ;;  %v3861_v32 = vpop.f32.mrf.mxu0  ;;  %v3974_v2 = vpop.f32.mrf.mxu1 }
 0x635   : > { %v4379_v26 = vmul.f32 1.442695, %v4259_v43  ;;  %v4265_v53 = vsub.f32 0.0, %v3860_v7  ;;  %v4267_v4 = vsub.f32 0.0, %v3973_v18  ;;  %v3862_v44 = vadd.f32 %v3861_v32, %v8293_v40 }
 0x636   : > { %6500 = vpow2.f32 %v4377_v61  ;;  %v4383_v45 = vmul.f32 1.442695, %v4261_v31  ;;  %v3975_v41 = vadd.f32 %v3974_v2, %v8295_v50  ;;  %v3863_v23 = vpop.f32.mrf.mxu0  ;;  %v3976_v47 = vpop.f32.mrf.mxu1 }
 0x637   : > { %6502 = vpow2.f32 %v4381_v58  ;;  %v4391_v33 = vmul.f32 1.442695, %v4265_v53  ;;  %v4395_v25 = vmul.f32 1.442695, %v4267_v4  ;;  %v4266_v35 = vsub.f32 0.0, %v3862_v44 }
 0x638   : > { %6504 = vpow2.f32 %v4379_v26  ;;  %v4268_v46 = vsub.f32 0.0, %v3975_v41  ;;  %v3864_v12 = vadd.f32 %v3863_v23, %v8288_v9  ;;  %v3977_v30 = vadd.f32 %v3976_v47, %v8290_v57  ;;  %v3865_v20 = vpop.f32.mrf.mxu0  ;;  %v3978_v14 = vpop.f32.mrf.mxu1 }
 0x639   : > { %6506 = vpow2.f32 %v4383_v45  ;;  %v4393_v11 = vmul.f32 1.442695, %v4266_v35  ;;  %v3866_v54 = vadd.f32 %v3865_v20, %v8293_v40  ;;  %v3979_v56 = vadd.f32 %v3978_v14, %v8295_v50 }
 0x63a   : > { %6508 = vpow2.f32 %v4391_v33  ;;  %v4397_v27 = vmul.f32 1.442695, %v4268_v46  ;;  %v4272_v38 = vsub.f32 0.0, %v3864_v12  ;;  %v4274_v29 = vsub.f32 0.0, %v3977_v30  ;;  %v3869_v62 = vpop.f32.mrf.mxu0  ;;  %v3982_v42 = vpop.f32.mrf.mxu1 }
 0x63b   : > { %6510 = vpow2.f32 %v4395_v25  ;;  %v4273_v8 = vsub.f32 0.0, %v3866_v54  ;;  %v4275_v48 = vsub.f32 0.0, %v3979_v56  ;;  %v3870_v17 = vadd.f32 %v3869_v62, %v8288_v9 }
 0x63c   : > { %6512 = vpow2.f32 %v4393_v11  ;;  %v4405_v10 = vmul.f32 1.442695, %v4272_v38  ;;  %v4409_v34 = vmul.f32 1.442695, %v4274_v29  ;;  %v3871_v52 = vpop.f32.mrf.mxu0  ;;  %v3984_v0 = vpop.f32.mrf.mxu1  ;;  %v3983_v61 = vadd.f32 %v3982_v42, %v8290_v57 }
 0x63d   : > { %6514 = vpow2.f32 %v4397_v27  ;;  %v4407_v51 = vmul.f32 1.442695, %v4273_v8  ;;  %v4411_v39 = vmul.f32 1.442695, %v4275_v48  ;;  %v4279_v32 = vsub.f32 0.0, %v3870_v17 }
 0x63e   : > { %v6493_v5 = vpop.eup %6492  ;;  %6516 = vpow2.f32 %v4405_v10  ;;  %v3873_v3 = vpop.f32.mrf.mxu0  ;;  %v3872_v2 = vadd.f32 %v3871_v52, %v8293_v40  ;;  %v3985_v45 = vadd.f32 %v3984_v0, %v8295_v50  ;;  %v4281_v30 = vsub.f32 0.0, %v3983_v61 }
 0x63f   : > { %v3986_v63 = vpop.f32.mrf.mxu1  ;;  %v6495_v1 = vpop.eup %6494  ;;  %v4587_v36 = vadd.f32 1.0, %v6493_v5  ;;  %6518 = vpow2.f32 %v4409_v34  ;;  %v3874_v41 = vadd.f32 %v3873_v3, %v8288_v9  ;;  %v4419_v11 = vmul.f32 1.442695, %v4279_v32 }
 0x640   : > { %v6497_v21 = vpop.eup %6496  ;;  %v4589_v49 = vadd.f32 1.0, %v6495_v1  ;;  %6520 = vpow2.f32 %v4407_v51  ;;  %v3875_v6 = vpop.f32.mrf.mxu0  ;;  %v3987_v33 = vadd.f32 %v3986_v63, %v8290_v57  ;;  %v4280_v54 = vsub.f32 0.0, %v3872_v2 }
 0x641   : > { %v8313_v13 = vpop.f32.mrf.mxu1  ;;  %v6499_v19 = vpop.eup %6498  ;;  %6522 = vrcp.f32 %v4587_v36  ;;  %v4588_v60 = vadd.f32 1.0, %v6497_v21  ;;  %v4282_v62 = vsub.f32 0.0, %v3985_v45  ;;  %v4286_v42 = vsub.f32 0.0, %v3874_v41 }
 0x642   : > { %6524 = vrcp.f32 %v4589_v49  ;;  %v4590_v59 = vadd.f32 1.0, %v6499_v19  ;;  %v8316_v55 = vpop.f32.mrf.mxu0  ;;  %v4288_v34 = vsub.f32 0.0, %v3987_v33  ;;  %v3876_v52 = vadd.f32 %v3875_v6, %v8293_v40 }
 0x643   : > { %v8318_v24 = vpop.f32.mrf.mxu1  ;;  %v6501_v37 = vpop.eup %6500  ;;  %6526 = vrcp.f32 %v4588_v60  ;;  %v4423_v3 = vmul.f32 1.442695, %v4281_v30  ;;  %v3989_v63 = vadd.f32 %v8313_v13, %v8295_v50  ;;  %v4421_v21 = vmul.f32 1.442695, %v4280_v54 }
 0x644   : > { %v6503_v15 = vpop.eup %6502  ;;  %6528 = vrcp.f32 %v4590_v59  ;;  %v4594_v22 = vadd.f32 1.0, %v6501_v37  ;;  %v8320_v16 = vpop.f32.mrf.mxu0  ;;  %v3880_v49 = vadd.f32 %v8316_v55, %v8288_v9  ;;  %v4433_v59 = vmul.f32 1.442695, %v4286_v42 }
 0x645   : > { %v8322_v43 = vpop.f32.mrf.mxu1  ;;  %v6505_v7 = vpop.eup %6504  ;;  %v4596_v18 = vadd.f32 1.0, %v6503_v15  ;;  %6530 = vpow2.f32 %v4411_v39  ;;  %v4425_v39 = vmul.f32 1.442695, %v4282_v62  ;;  %v3993_v17 = vadd.f32 %v8318_v24, %v8290_v57 }
 0x646   : > { %v6507_v58 = vpop.eup %6506  ;;  %6532 = vrcp.f32 %v4594_v22  ;;  %v4595_v31 = vadd.f32 1.0, %v6505_v7  ;;  %v8326_v26 = vpop.f32.mrf.mxu0  ;;  %v4437_v13 = vmul.f32 1.442695, %v4288_v34  ;;  %v4287_v55 = vsub.f32 0.0, %v3876_v52 }
 0x647   : > { %v8328_v53 = vpop.f32.mrf.mxu1  ;;  %v6509_v4 = vpop.eup %6508  ;;  %6534 = vrcp.f32 %v4596_v18  ;;  %v4597_v44 = vadd.f32 1.0, %v6507_v58  ;;  %v3882_v15 = vadd.f32 %v8320_v16, %v8293_v40  ;;  %v4289_v61 = vsub.f32 0.0, %v3989_v63 }
 0x648   : > { %v6511_v23 = vpop.eup %6510  ;;  %6536 = vrcp.f32 %v4595_v31  ;;  %v4601_v47 = vadd.f32 1.0, %v6509_v4  ;;  %v8333_v25 = vpop.f32.mrf.mxu0  ;;  %v3995_v58 = vadd.f32 %v8322_v43, %v8295_v50  ;;  %v4293_v2 = vsub.f32 0.0, %v3880_v49 }
 0x649   : > { %v8335_v35 = vpop.f32.mrf.mxu1  ;;  %v6513_v46 = vpop.eup %6512  ;;  %6538 = vrcp.f32 %v4597_v44  ;;  %v4603_v12 = vadd.f32 1.0, %v6511_v23  ;;  %v3884_v16 = vadd.f32 %v8326_v26, %v8288_v9  ;;  %v4295_v23 = vsub.f32 0.0, %v3993_v17 }
 0x64a   : > { %v6515_v20 = vpop.eup %6514  ;;  %6540 = vrcp.f32 %v4601_v47  ;;  %v4602_v14 = vadd.f32 1.0, %v6513_v46  ;;  %v8337_v56 = vpop.f32.mrf.mxu0  ;;  %v3997_v47 = vadd.f32 %v8328_v53, %v8290_v57  ;;  %v4435_v33 = vmul.f32 1.442695, %v4287_v55 }
 0x64b   : > { %v8339_v27 = vpop.f32.mrf.mxu1  ;;  %v6517_v38 = vpop.eup %6516  ;;  %6542 = vrcp.f32 %v4603_v12  ;;  %v4604_v29 = vadd.f32 1.0, %v6515_v20  ;;  %v4294_v46 = vsub.f32 0.0, %v3882_v15  ;;  %v3886_v26 = vadd.f32 %v8333_v25, %v8293_v40 }
 0x64c   : > { %v6519_v8 = vpop.eup %6518  ;;  %6544 = vrcp.f32 %v4602_v14  ;;  %v4608_v10 = vadd.f32 1.0, %v6517_v38  ;;  %v8342_v0 = vpop.f32.mrf.mxu0  ;;  %v4439_v14 = vmul.f32 1.442695, %v4289_v61  ;;  %v4447_v53 = vmul.f32 1.442695, %v4293_v2 }
 0x64d   : > { %v8344_v51 = vpop.f32.mrf.mxu1  ;;  %v6521_v48 = vpop.eup %6520  ;;  %6546 = vrcp.f32 %v4604_v29  ;;  %v4610_v5 = vadd.f32 1.0, %v6519_v8  ;;  %v4300_v29 = vsub.f32 0.0, %v3884_v16  ;;  %v4302_v34 = vsub.f32 0.0, %v3997_v47 }
 0x64e   : > { %v6523_v1 = vpop.eup %6522  ;;  %6548 = vrcp.f32 %v4608_v10  ;;  %v4609_v36 = vadd.f32 1.0, %v6521_v48  ;;  %v8350_v6 = vpop.f32.mrf.mxu0  ;;  %v4451_v10 = vmul.f32 1.442695, %v4295_v23  ;;  %v4449_v48 = vmul.f32 1.442695, %v4294_v46 }
 0x64f   : > { %v8352_v19 = vpop.f32.mrf.mxu1  ;;  %v6525_v60 = vpop.eup %6524  ;;  %6550 = vrcp.f32 %v4610_v5  ;;  %v4301_v5 = vsub.f32 0.0, %v3886_v26  ;;  %v4465_v55 = vmul.f32 1.442695, %v4302_v34  ;;  %v4003_v34 = vadd.f32 %v8339_v27, %v8290_v57 }
 0x650   : > { %v6527_v37 = vpop.eup %6526  ;;  %6552 = vrcp.f32 %v4609_v36  ;;  %v8365_v22 = vpop.f32.mrf.mxu0  ;;  %v3894_v27 = vadd.f32 %v8350_v6, %v8288_v9 }
 0x651   : > { %v8367_v7 = vpop.f32.mrf.mxu1  ;;  %v6529_v18 = vpop.eup %6528  ;;  %v5695_v24 = vpack.c.bf16 %v6527_v37, %v6523_v1  ;;  %6554 = vpow2.f32 %v4419_v11  ;;  %v4296_v11 = vsub.f32 0.0, %v3995_v58 }
 0x652   : > { %v6531_v31 = vpop.eup %6530  ;;  %v5696_v32 = vpack.c.bf16 %v6529_v18, %v6525_v60  ;;  %6556 = vpow2.f32 %v4423_v3  ;;  %v8373_v4 = vpop.f32.mrf.mxu0  ;;  %v4463_v18 = vmul.f32 1.442695, %v4301_v5 }
 0x653   : > { %v8375_v44 = vpop.f32.mrf.mxu1  ;;  %v6533_v45 = vpop.eup %6532  ;;  %5163 = vst [vmem:[%s8361_s25] sm:$0xff] %v5695_v24  ;;  %v4611_v41 = vadd.f32 1.0, %v6531_v31  ;;  %6558 = vpow2.f32 %v4421_v21  ;;  %v4453_v36 = vmul.f32 1.442695, %v4296_v11  ;;  %v3999_v21 = vadd.f32 %v8335_v35, %v8295_v50 }
 0x654   : > { %v6535_v43 = vpop.eup %6534  ;;  %5164 = vst [vmem:[%s8361_s25 + $0x8] sm:$0xff] %v5696_v32  ;;  %6560 = vpow2.f32 %v4425_v39  ;;  %v8383_v12 = vpop.f32.mrf.mxu0  ;;  %v4461_v39 = vmul.f32 1.442695, %v4300_v29  ;;  %v3890_v11 = vadd.f32 %v8337_v56, %v8288_v9 }
 0x655   : > { %v8385_v30 = vpop.f32.mrf.mxu1  ;;  %v6537_v20 = vpop.eup %6536  ;;  %6562 = vrcp.f32 %v4611_v41  ;;  %v4303_v58 = vsub.f32 0.0, %v3999_v21 }
 0x656   : > { %v6539_v54 = vpop.eup %6538  ;;  %v5699_v38 = vpack.c.bf16 %v6537_v20, %v6533_v45  ;;  %6564 = vpow2.f32 %v4433_v59  ;;  %v8387_v62 = vpop.f32.mrf.mxu0  ;;  %v4307_v5 = vsub.f32 0.0, %v3890_v11  ;;  %v4009_v11 = vadd.f32 %v8367_v7, %v8295_v50 }
 0x657   : > { %v8389_v42 = vpop.f32.mrf.mxu1  ;;  %v6541_v25 = vpop.eup %6540  ;;  %v5700_v8 = vpack.c.bf16 %v6539_v54, %v6535_v43  ;;  %6566 = vpow2.f32 %v4437_v13  ;;  %v4467_v46 = vmul.f32 1.442695, %v4303_v58 }
 0x658   : > { %v6543_v52 = vpop.eup %6542  ;;  %5168 = vst [vmem:[%s8361_s25 + $0x1c] sm:$0xff] %v5699_v38  ;;  %6568 = vpow2.f32 %v4435_v33  ;;  %v8392_v3 = vpop.f32.mrf.mxu0 }
 0x659   : > { %v8394_v63 = vpop.f32.mrf.mxu1  ;;  %v6545_v1 = vpop.eup %6544  ;;  %5169 = vst [vmem:[%s8361_s25 + $0x24] sm:$0xff] %v5700_v8  ;;  %6570 = vpow2.f32 %v4439_v14 }
 0x65a   : > { %v6547_v49 = vpop.eup %6546  ;;  %v5703_v60 = vpack.c.bf16 %v6545_v1, %v6541_v25  ;;  %6572 = vpow2.f32 %v4447_v53  ;;  %v8399_v59 = vpop.f32.mrf.mxu0  ;;  %v3892_v1 = vadd.f32 %v8342_v0, %v8293_v40 }
 0x65b   : > { %v8401_v17 = vpop.f32.mrf.mxu1  ;;  %v6549_v37 = vpop.eup %6548  ;;  %v5704_v13 = vpack.c.bf16 %v6547_v49, %v6543_v52  ;;  %6574 = vpow2.f32 %v4451_v10 }
 0x65c   : > { %v6551_v15 = vpop.eup %6550  ;;  %5172 = vst [vmem:[%s8361_s25 + $0x38] sm:$0xff] %v5703_v60  ;;  %6576 = vpow2.f32 %v4449_v48  ;;  %v8404_v24 = vpop.f32.mrf.mxu0  ;;  %v4005_v60 = vadd.f32 %v8344_v51, %v8295_v50  ;;  %v4308_v51 = vsub.f32 0.0, %v3892_v1 }
 0x65d   : > { %v8406_v35 = vpop.f32.mrf.mxu1  ;;  %v6553_v61 = vpop.eup %6552  ;;  %5173 = vst [vmem:[%s8361_s25 + $0x40] sm:$0xff] %v5704_v13  ;;  %6578 = vpow2.f32 %v4453_v36  ;;  %v4007_v13 = vadd.f32 %v8352_v19, %v8290_v57 }
 0x65e   : > { %v6555_v31 = vpop.eup %6554  ;;  %v5707_v32 = vpack.c.bf16 %v6553_v61, %v6549_v37  ;;  %6580 = vpow2.f32 %v4461_v39  ;;  %v8409_v2 = vpop.f32.mrf.mxu0 }
 0x65f   : > { %v8411_v16 = vpop.f32.mrf.mxu1  ;;  %v6557_v45 = vpop.eup %6556  ;;  %v4615_v41 = vadd.f32 1.0, %v6555_v31  ;;  %6582 = vpow2.f32 %v4465_v55  ;;  %v4475_v31 = vmul.f32 1.442695, %v4307_v5 }
 0x660   : > { %v6559_v23 = vpop.eup %6558  ;;  %5176 = vst [vmem:[%s8361_s25 + $0x54] sm:$0xff] %v5707_v32  ;;  %v4617_v47 = vadd.f32 1.0, %v6557_v45  ;;  %6584 = vpow2.f32 %v4463_v18  ;;  %v8414_v26 = vpop.f32.mrf.mxu0 }
 0x661   : > { %v6561_v43 = vpop.eup %6560  ;;  %6586 = vrcp.f32 %v4615_v41  ;;  %v4616_v33 = vadd.f32 1.0, %v6559_v23  ;;  %v8418_v54 = vpop.f32.mrf.mxu1  ;;  %v4310_v41 = vsub.f32 0.0, %v4005_v60  ;;  %v4314_v23 = vsub.f32 0.0, %v3894_v27 }
 0x662   : > { %v6563_v20 = vpop.eup %6562  ;;  %6588 = vrcp.f32 %v4617_v47  ;;  %v4618_v14 = vadd.f32 1.0, %v6561_v43  ;;  %v8423_v52 = vpop.f32.mrf.mxu0  ;;  %v4316_v43 = vsub.f32 0.0, %v4007_v13  ;;  %v4015_v27 = vadd.f32 %v8385_v30, %v8295_v50 }
 0x663   : > { %v6565_v38 = vpop.eup %6564  ;;  %v5708_v53 = vpack.c.bf16 %v6563_v20, %v6551_v15  ;;  %6590 = vrcp.f32 %v4616_v33  ;;  %v8427_v36 = vpop.f32.mrf.mxu1  ;;  %v4309_v15 = vsub.f32 0.0, %v4003_v34  ;;  %v3896_v33 = vadd.f32 %v8365_v22, %v8293_v40 }
 0x664   : > { %v6567_v29 = vpop.eup %6566  ;;  %6592 = vrcp.f32 %v4618_v14  ;;  %v4622_v25 = vadd.f32 1.0, %v6565_v38  ;;  %v8435_v18 = vpop.f32.mrf.mxu0  ;;  %v4481_v22 = vmul.f32 1.442695, %v4310_v41  ;;  %v4493_v7 = vmul.f32 1.442695, %v4316_v43 }
 0x665   : > { %v6569_v8 = vpop.eup %6568  ;;  %5177 = vst [vmem:[%s8361_s25 + $0x5c] sm:$0xff] %v5708_v53  ;;  %v4624_v10 = vadd.f32 1.0, %v6567_v29  ;;  %6594 = vpow2.f32 %v4467_v46  ;;  %v8437_v32 = vpop.f32.mrf.mxu1  ;;  %v4479_v14 = vmul.f32 1.442695, %v4309_v15  ;;  %v4315_v1 = vsub.f32 0.0, %v3896_v33 }
 0x666   : > { %v6571_v48 = vpop.eup %6570  ;;  %6596 = vrcp.f32 %v4622_v25  ;;  %v4623_v56 = vadd.f32 1.0, %v6569_v8  ;;  %v8443_v38 = vpop.f32.mrf.mxu0  ;;  %v4477_v25 = vmul.f32 1.442695, %v4308_v51  ;;  %v3900_v8 = vadd.f32 %v8373_v4, %v8288_v9 }
 0x667   : > { %v6573_v21 = vpop.eup %6572  ;;  %6598 = vrcp.f32 %v4624_v10  ;;  %v4625_v49 = vadd.f32 1.0, %v6571_v48  ;;  %v8447_v10 = vpop.f32.mrf.mxu1  ;;  %v4489_v48 = vmul.f32 1.442695, %v4314_v23  ;;  %v4317_v4 = vsub.f32 0.0, %v4009_v11 }
 0x668   : > { %v6575_v39 = vpop.eup %6574  ;;  %6600 = vrcp.f32 %v4623_v56  ;;  %v4629_v37 = vadd.f32 1.0, %v6573_v21  ;;  %v4013_v56 = vadd.f32 %v8375_v44, %v8290_v57  ;;  %v3902_v21 = vadd.f32 %v8383_v12, %v8293_v40 }
 0x669   : > { %v6577_v55 = vpop.eup %6576  ;;  %6602 = vrcp.f32 %v4625_v49  ;;  %v4631_v0 = vadd.f32 1.0, %v6575_v39  ;;  %v8455_v39 = vpop.f32.mrf.mxu0  ;;  %v4321_v13 = vsub.f32 0.0, %v3900_v8  ;;  %v4324_v41 = vsub.f32 0.0, %v4015_v27 }
 0x66a   : > { %v6579_v61 = vpop.eup %6578  ;;  %6604 = vrcp.f32 %v4629_v37  ;;  %v4630_v58 = vadd.f32 1.0, %v6577_v55  ;;  %v3904_v55 = vadd.f32 %v8387_v62, %v8288_v9  ;;  %v4322_v51 = vsub.f32 0.0, %v3902_v21 }
 0x66b   : > { %v6581_v6 = vpop.eup %6580  ;;  %6606 = vrcp.f32 %v4631_v0  ;;  %v4632_v45 = vadd.f32 1.0, %v6579_v61  ;;  %v8459_v0 = vpop.f32.mrf.mxu1  ;;  %v4323_v61 = vsub.f32 0.0, %v4013_v56  ;;  %v4495_v62 = vmul.f32 1.442695, %v4317_v4 }
 0x66c   : > { %v6583_v47 = vpop.eup %6582  ;;  %6608 = vrcp.f32 %v4630_v58  ;;  %v4636_v19 = vadd.f32 1.0, %v6581_v6  ;;  %v4017_v58 = vadd.f32 %v8389_v42, %v8290_v57  ;;  %v3906_v6 = vadd.f32 %v8392_v3, %v8293_v40  ;;  %v8467_v23 = vpop.f32.mrf.mxu0 }
 0x66d   : > { %v6585_v46 = vpop.eup %6584  ;;  %6610 = vrcp.f32 %v4632_v45  ;;  %v4638_v20 = vadd.f32 1.0, %v6583_v47  ;;  %v4503_v42 = vmul.f32 1.442695, %v4321_v13  ;;  %v4328_v43 = vsub.f32 0.0, %v3904_v55  ;;  %v8469_v33 = vpop.f32.mrf.mxu1 }
 0x66e   : > { %v6587_v53 = vpop.eup %6586  ;;  %6612 = vrcp.f32 %v4636_v19  ;;  %v4637_v29 = vadd.f32 1.0, %v6585_v46  ;;  %v4330_v3 = vsub.f32 0.0, %v4017_v58  ;;  %v4509_v8 = vmul.f32 1.442695, %v4324_v41 }
 0x66f   : > { %v6589_v34 = vpop.eup %6588  ;;  %6614 = vrcp.f32 %v4638_v20  ;;  %v3910_v41 = vadd.f32 %v8399_v59, %v8288_v9 }
 0x670   : > { %v6591_v5 = vpop.eup %6590  ;;  %6616 = vrcp.f32 %v4637_v29  ;;  %v4329_v29 = vsub.f32 0.0, %v3906_v6 }
 0x671   : > { %v6593_v49 = vpop.eup %6592  ;;  %v5711_v60 = vpack.c.bf16 %v6591_v5, %v6587_v53  ;;  %6618 = vpow2.f32 %v4475_v31  ;;  %v4491_v31 = vmul.f32 1.442695, %v4315_v1  ;;  %v4505_v53 = vmul.f32 1.442695, %v4322_v51 }
 0x672   : > { %v6595_v37 = vpop.eup %6594  ;;  %v5712_v44 = vpack.c.bf16 %v6593_v49, %v6589_v34  ;;  %6620 = vpow2.f32 %v4479_v14  ;;  %v4507_v14 = vmul.f32 1.442695, %v4323_v61  ;;  %v4019_v34 = vadd.f32 %v8394_v63, %v8295_v50 }
 0x673   : > { %v6597_v12 = vpop.eup %6596  ;;  %5180 = vst [vmem:[%s8361_s25 + $0x70] sm:$0xff] %v5711_v60  ;;  %v4639_v15 = vadd.f32 1.0, %v6595_v37  ;;  %6622 = vpow2.f32 %v4477_v25  ;;  %v4517_v5 = vmul.f32 1.442695, %v4328_v43  ;;  %v4521_v49 = vmul.f32 1.442695, %v4330_v3 }
 0x674   : > { %v6599_v30 = vpop.eup %6598  ;;  %5181 = vst [vmem:[%s8361_s25 + $0x78] sm:$0xff] %v5712_v44  ;;  %6624 = vpow2.f32 %v4481_v22  ;;  %v8475_v22 = vpop.f32.mrf.mxu0  ;;  %v4519_v4 = vmul.f32 1.442695, %v4329_v29  ;;  %v4331_v63 = vsub.f32 0.0, %v4019_v34  ;;  %v4023_v3 = vadd.f32 %v8401_v17, %v8290_v57 }
 0x675   : > { %v6601_v45 = vpop.eup %6600  ;;  %6626 = vrcp.f32 %v4639_v15  ;;  %v4335_v29 = vsub.f32 0.0, %v3910_v41 }
 0x676   : > { %v6603_v47 = vpop.eup %6602  ;;  %v5715_v19 = vpack.c.bf16 %v6601_v45, %v6597_v12  ;;  %6628 = vpow2.f32 %v4489_v48  ;;  %v8481_v37 = vpop.f32.mrf.mxu0  ;;  %v4523_v51 = vmul.f32 1.442695, %v4331_v63 }
 0x677   : > { %v6605_v46 = vpop.eup %6604  ;;  %v5716_v20 = vpack.c.bf16 %v6603_v47, %v6599_v30  ;;  %6630 = vpow2.f32 %v4493_v7  ;;  %v8477_v7 = vpop.f32.mrf.mxu1 }
 0x678   : > { %v6607_v11 = vpop.eup %6606  ;;  %5184 = vst [vmem:[%s8361_s25 + $0x8c] sm:$0xff] %v5715_v19  ;;  %6632 = vpow2.f32 %v4491_v31  ;;  %v8486_v6 = vpop.f32.mrf.mxu0 }
 0x679   : > { %v6609_v25 = vpop.eup %6608  ;;  %5185 = vst [vmem:[%s8361_s25 + $0x94] sm:$0xff] %v5716_v20  ;;  %6634 = vpow2.f32 %v4495_v62  ;;  %v8483_v55 = vpop.f32.mrf.mxu1 }
 0x67a   : > { %v6611_v48 = vpop.eup %6610  ;;  %v5719_v56 = vpack.c.bf16 %v6609_v25, %v6605_v46  ;;  %6636 = vpow2.f32 %v4503_v42  ;;  %v3912_v25 = vadd.f32 %v8404_v24, %v8293_v40  ;;  %v4027_v24 = vadd.f32 %v8411_v16, %v8290_v57 }
 0x67b   : > { %v6613_v1 = vpop.eup %6612  ;;  %v5720_v21 = vpack.c.bf16 %v6611_v48, %v6607_v11  ;;  %6638 = vpow2.f32 %v4507_v14  ;;  %v8490_v47 = vpop.f32.mrf.mxu1 }
 0x67c   : > { %v6615_v60 = vpop.eup %6614  ;;  %5188 = vst [vmem:[%s8361_s25 + $0xa8] sm:$0xff] %v5719_v56  ;;  %6640 = vpow2.f32 %v4505_v53  ;;  %v8495_v11 = vpop.f32.mrf.mxu0  ;;  %v4025_v56 = vadd.f32 %v8406_v35, %v8295_v50  ;;  %v4336_v35 = vsub.f32 0.0, %v3912_v25  ;;  %v4344_v41 = vsub.f32 0.0, %v4027_v24 }
 0x67d   : > { %v6617_v27 = vpop.eup %6616  ;;  %5189 = vst [vmem:[%s8361_s25 + $0xb0] sm:$0xff] %v5720_v21  ;;  %6642 = vpow2.f32 %v4509_v8  ;;  %v8499_v8 = vpop.f32.mrf.mxu1 }
 0x67e   : > { %v6619_v44 = vpop.eup %6618  ;;  %v5723_v13 = vpack.c.bf16 %v6617_v27, %v6613_v1  ;;  %6644 = vpow2.f32 %v4517_v5  ;;  %v3914_v1 = vadd.f32 %v8409_v2, %v8288_v9  ;;  %v4338_v2 = vsub.f32 0.0, %v4025_v56 }
 0x67f   : > { %v6621_v12 = vpop.eup %6620  ;;  %v4643_v15 = vadd.f32 1.0, %v6619_v44  ;;  %6646 = vpow2.f32 %v4521_v49  ;;  %v4531_v44 = vmul.f32 1.442695, %v4335_v29 }
 0x680   : > { %v6623_v61 = vpop.eup %6622  ;;  %5192 = vst [vmem:[%s8361_s25 + $0xc4] sm:$0xff] %v5723_v13  ;;  %v4645_v58 = vadd.f32 1.0, %v6621_v12  ;;  %6648 = vpow2.f32 %v4519_v4  ;;  %v8507_v4 = vpop.f32.mrf.mxu0  ;;  %v4342_v16 = vsub.f32 0.0, %v3914_v1 }
 0x681   : > { %v6625_v30 = vpop.eup %6624  ;;  %6650 = vrcp.f32 %v4643_v15  ;;  %v4644_v31 = vadd.f32 1.0, %v6623_v61  ;;  %v8509_v13 = vpop.f32.mrf.mxu1  ;;  %v3916_v61 = vadd.f32 %v8414_v26, %v8293_v40  ;;  %v3920_v26 = vadd.f32 %v8423_v52, %v8288_v9 }
 0x682   : > { %v6627_v45 = vpop.eup %6626  ;;  %6652 = vrcp.f32 %v4645_v58  ;;  %v4646_v62 = vadd.f32 1.0, %v6625_v30  ;;  %v4545_v29 = vmul.f32 1.442695, %v4342_v16  ;;  %v4549_v52 = vmul.f32 1.442695, %v4344_v41 }
 0x683   : > { %v6629_v19 = vpop.eup %6628  ;;  %v5724_v42 = vpack.c.bf16 %v6627_v45, %v6615_v60  ;;  %6654 = vrcp.f32 %v4644_v31  ;;  %v4337_v60 = vsub.f32 0.0, %v4023_v3  ;;  %v4029_v31 = vadd.f32 %v8418_v54, %v8295_v50 }
 0x684   : > { %v6631_v43 = vpop.eup %6630  ;;  %6656 = vrcp.f32 %v4646_v62  ;;  %v4650_v46 = vadd.f32 1.0, %v6629_v19  ;;  %v8515_v19 = vpop.f32.mrf.mxu0  ;;  %v4537_v3 = vmul.f32 1.442695, %v4338_v2  ;;  %v4343_v54 = vsub.f32 0.0, %v3916_v61 }
 0x685   : > { %v6633_v20 = vpop.eup %6632  ;;  %5193 = vst [vmem:[%s8361_s25 + $0xcc] sm:$0xff] %v5724_v42  ;;  %v4652_v14 = vadd.f32 1.0, %v6631_v43  ;;  %6658 = vpow2.f32 %v4523_v51  ;;  %v4535_v62 = vmul.f32 1.442695, %v4337_v60  ;;  %v4345_v25 = vsub.f32 0.0, %v4029_v31 }
 0x686   : > { %v6635_v53 = vpop.eup %6634  ;;  %6660 = vrcp.f32 %v4650_v46  ;;  %v4651_v59 = vadd.f32 1.0, %v6633_v20  ;;  %v4533_v46 = vmul.f32 1.442695, %v4336_v35  ;;  %v8519_v20 = vpop.f32.mrf.mxu1  ;;  %v3222_v41 = vsub.s32 4, %v8836_v28 }
 0x687   : > { %v6637_v34 = vpop.eup %6636  ;;  %6662 = vrcp.f32 %v4652_v14  ;;  %v4653_v48 = vadd.f32 1.0, %v6635_v53  ;;  %v4033_v53 = vadd.f32 %v8427_v36, %v8290_v57 }
 0x688   : > { %v6639_v5 = vpop.eup %6638  ;;  %6664 = vrcp.f32 %v4651_v59  ;;  %v4657_v17 = vadd.f32 1.0, %v6637_v34  ;;  %v3922_v34 = vadd.f32 %v8435_v18, %v8293_v40  ;;  %v8531_v60 = vpop.f32.mrf.mxu1 }
 0x689   : > { %v6641_v21 = vpop.eup %6640  ;;  %6666 = vrcp.f32 %v4653_v48  ;;  %v4659_v49 = vadd.f32 1.0, %v6639_v5  ;;  %v4035_v5 = vadd.f32 %v8437_v32, %v8295_v50 }
 0x68a   : > { %v6643_v27 = vpop.eup %6642  ;;  %6668 = vrcp.f32 %v4657_v17  ;;  %v4658_v63 = vadd.f32 1.0, %v6641_v21  ;;  %v8527_v17 = vpop.f32.mrf.mxu0  ;;  %v4349_v21 = vsub.f32 0.0, %v3920_v26  ;;  %v4350_v35 = vsub.f32 0.0, %v3922_v34 }
 0x68b   : > { %v6645_v12 = vpop.eup %6644  ;;  %6670 = vrcp.f32 %v4659_v49  ;;  %v4660_v15 = vadd.f32 1.0, %v6643_v27  ;;  %v3924_v49 = vadd.f32 %v8443_v38, %v8288_v9  ;;  %v4351_v27 = vsub.f32 0.0, %v4033_v53 }
 0x68c   : > { %v6647_v58 = vpop.eup %6646  ;;  %6672 = vrcp.f32 %v4658_v63  ;;  %v4664_v30 = vadd.f32 1.0, %v6645_v12  ;;  %v4037_v63 = vadd.f32 %v8447_v10, %v8290_v57  ;;  %v3926_v12 = vadd.f32 %v8455_v39, %v8293_v40  ;;  %v8539_v2 = vpop.f32.mrf.mxu0 }
 0x68d   : > { %v6649_v51 = vpop.eup %6648  ;;  %6674 = vrcp.f32 %v4660_v15  ;;  %v4666_v45 = vadd.f32 1.0, %v6647_v58  ;;  %v4551_v9 = vmul.f32 1.442695, %v4345_v25  ;;  %v4352_v38 = vsub.f32 0.0, %v4035_v5 }
 0x68e   : > { %v6651_v42 = vpop.eup %6650  ;;  %6676 = vrcp.f32 %v4664_v30  ;;  %v4665_v43 = vadd.f32 1.0, %v6649_v51  ;;  %v4559_v57 = vmul.f32 1.442695, %v4349_v21  ;;  %v4356_v10 = vsub.f32 0.0, %v3924_v49  ;;  %v8541_v30 = vpop.f32.mrf.mxu1 }
 0x68f   : > { %v6653_v14 = vpop.eup %6652  ;;  %6678 = vrcp.f32 %v4666_v45  ;;  %v4563_v51 = vmul.f32 1.442695, %v4351_v27  ;;  %v4358_v40 = vsub.f32 0.0, %v4037_v63  ;;  %v4561_v45 = vmul.f32 1.442695, %v4350_v35 }
 0x690   : > { %v6655_v59 = vpop.eup %6654  ;;  %6680 = vrcp.f32 %v4665_v43  ;;  %v4565_v43 = vmul.f32 1.442695, %v4352_v38  ;;  %v3226_v26 = vsub.s32 5, %v8836_v28  ;;  %v4573_v53 = vmul.f32 1.442695, %v4356_v10 }
 0x691   : > { %v6657_v48 = vpop.eup %6656  ;;  %v5727_v56 = vpack.c.bf16 %v6655_v59, %v6651_v42  ;;  %6682 = vpow2.f32 %v4531_v44  ;;  %v4547_v44 = vmul.f32 1.442695, %v4343_v54  ;;  %v8551_v59 = vpop.f32.mrf.mxu1  ;;  %v4577_v34 = vmul.f32 1.442695, %v4358_v40 }
 0x692   : > { %v6659_v1 = vpop.eup %6658  ;;  %v5728_v36 = vpack.c.bf16 %v6657_v48, %v6653_v14  ;;  %6684 = vpow2.f32 %v4535_v62  ;;  %v4357_v62 = vsub.f32 0.0, %v3926_v12  ;;  %v8549_v14 = vpop.f32.mrf.mxu0  ;;  %v3230_v48 = vsub.s32 6, %v8836_v28 }
 0x693   : > { %v6661_v18 = vpop.eup %6660  ;;  %5196 = vst [vmem:[%s8361_s25 + $0xe0] sm:$0xff] %v5727_v56  ;;  %v4667_v24 = vadd.f32 1.0, %v6659_v1  ;;  %6686 = vpow2.f32 %v4533_v46  ;;  %v4039_v46 = vadd.f32 %v8459_v0, %v8295_v50  ;;  %v6940_v0 = vld [vmem:[%s8810_s14] sm:$0x7f]  ;;  %v5889_v12 = vadd.f32 %v8477_v7, %v8469_v33 }
 0x694   : > { %v6663_v32 = vpop.eup %6662  ;;  %5197 = vst [vmem:[%s8361_s25 + $0xe8] sm:$0xff] %v5728_v36  ;;  %6688 = vpow2.f32 %v4537_v3  ;;  %v4575_v50 = vmul.f32 1.442695, %v4357_v62  ;;  %v8561_v36 = vrot.slane %v6940_v0, %v3226_v26  ;;  %v8563_v21 = vpop.f32.mrf.mxu0  ;;  %v8567_v63 = vrot.slane %v6940_v0, %v3230_v48 }
 0x695   : > { %v6665_v15 = vpop.eup %6664  ;;  %6690 = vrcp.f32 %v4667_v24  ;;  %v4359_v1 = vsub.f32 0.0, %v4039_v46  ;;  %v5892_v62 = vadd.f32 %v8490_v47, %v8483_v55 }
 0x696   : > { %v6667_v61 = vpop.eup %6666  ;;  %v5731_v58 = vpack.c.bf16 %v6665_v15, %v6661_v18  ;;  %6692 = vpow2.f32 %v4545_v29  ;;  %v8565_v18 = vpop.f32.mrf.mxu1  ;;  %v4189_v40 = vadd.f32 %v5889_v12, %v8567_v63 }
 0x697   : > { %v6669_v16 = vpop.eup %6668  ;;  %v5732_v31 = vpack.c.bf16 %v6667_v61, %v6663_v32  ;;  %6694 = vpow2.f32 %v4549_v52  ;;  %v8558_v52 = vrot.slane %v6940_v0, %v3222_v41  ;;  %v4579_v38 = vmul.f32 1.442695, %v4359_v1 }
 0x698   : > { %v6671_v39 = vpop.eup %6670  ;;  %5200 = vst [vmem:[%s8361_s25 + $0xfc] sm:$0xff] %v5731_v58  ;;  %6696 = vpow2.f32 %v4547_v44  ;;  %v4078_v61 = vadd.f32 %v8475_v22, %v8561_v36  ;;  %v8576_v58 = vpop.f32.mrf.mxu0  ;;  %v4257_v47 = vsub.f32 0.0, %v4189_v40 }
 0x699   : > { %v6673_v42 = vpop.eup %6672  ;;  %5201 = vst [vmem:[%s8361_s25 + $0x104] sm:$0xff] %v5732_v31  ;;  %6698 = vpow2.f32 %v4551_v9  ;;  %v4076_v35 = vadd.f32 %v8467_v23, %v8558_v52  ;;  %v4080_v46 = vadd.f32 %v8481_v37, %v8558_v52 }
 0x69a   : > { %v6675_v3 = vpop.eup %6674  ;;  %v5735_v54 = vpack.c.bf16 %v6673_v42, %v6669_v16  ;;  %6700 = vpow2.f32 %v4559_v57  ;;  %v8578_v16 = vpop.f32.mrf.mxu1  ;;  %v4256_v22 = vsub.f32 0.0, %v4078_v61  ;;  %v4375_v12 = vmul.f32 1.442695, %v4257_v47 }
 0x69b   : > { %v6677_v29 = vpop.eup %6676  ;;  %v5736_v25 = vpack.c.bf16 %v6675_v3, %v6671_v39  ;;  %6702 = vpow2.f32 %v4563_v51  ;;  %v4255_v7 = vsub.f32 0.0, %v4076_v35  ;;  %v8584_v41 = vpop.f32.mrf.mxu0  ;;  %v4262_v1 = vsub.f32 0.0, %v4080_v46 }
 0x69c   : > { %v6679_v56 = vpop.eup %6678  ;;  %5204 = vst [vmem:[%s8361_s25 + $0x118] sm:$0xff] %v5735_v54  ;;  %6704 = vpow2.f32 %v4561_v45  ;;  %v8588_v26 = vpop.f32.mrf.mxu1 }
 0x69d   : > { %v6681_v5 = vpop.eup %6680  ;;  %5205 = vst [vmem:[%s8361_s25 + $0x120] sm:$0xff] %v5736_v25  ;;  %6706 = vpow2.f32 %v4565_v43  ;;  %v4371_v55 = vmul.f32 1.442695, %v4255_v7  ;;  %v8593_v37 = vpop.f32.mrf.mxu0  ;;  %v4090_v7 = vadd.f32 %v8515_v19, %v8558_v52 }
 0x69e   : > { %v6683_v28 = vpop.eup %6682  ;;  %v5739_v49 = vpack.c.bf16 %v6681_v5, %v6677_v29  ;;  %6708 = vpow2.f32 %v4573_v53  ;;  %v4082_v53 = vadd.f32 %v8486_v6, %v8561_v36  ;;  %v5895_v6 = vadd.f32 %v8509_v13, %v8499_v8 }
 0x69f   : > { %v6685_v24 = vpop.eup %6684  ;;  %v4671_v27 = vadd.f32 1.0, %v6683_v28  ;;  %6710 = vpow2.f32 %v4577_v34  ;;  %v8597_v28 = vpop.f32.mrf.mxu1  ;;  %v5898_v13 = vadd.f32 %v8531_v60, %v8519_v20  ;;  %v4092_v60 = vadd.f32 %v8527_v17, %v8561_v36 }
 0x6a0   : > { %v6687_v32 = vpop.eup %6686  ;;  %5208 = vst [vmem:[%s8361_s25 + $0x134] sm:$0xff] %v5739_v49  ;;  %v4673_v44 = vadd.f32 1.0, %v6685_v24  ;;  %6712 = vpow2.f32 %v4575_v50  ;;  %v4192_v50 = vadd.f32 %v5892_v62, %v8567_v63  ;;  %v8605_v61 = vpop.f32.mrf.mxu0 }
 0x6a1   : > { %v6689_v15 = vpop.eup %6688  ;;  %6714 = vrcp.f32 %v4671_v27  ;;  %v4672_v9 = vadd.f32 1.0, %v6687_v32  ;;  %v4263_v27 = vsub.f32 0.0, %v4082_v53  ;;  %v4086_v32 = vadd.f32 %v8495_v11, %v8558_v52 }
 0x6a2   : > { %v6691_v57 = vpop.eup %6690  ;;  %6716 = vrcp.f32 %v4673_v44  ;;  %v4674_v10 = vadd.f32 1.0, %v6689_v15  ;;  %v4088_v15 = vadd.f32 %v8507_v4, %v8561_v36  ;;  %v4264_v8 = vsub.f32 0.0, %v4192_v50 }
 0x6a3   : > { %v6693_v31 = vpop.eup %6692  ;;  %v5740_v23 = vpack.c.bf16 %v6691_v57, %v6679_v56  ;;  %6718 = vrcp.f32 %v4672_v9  ;;  %v4373_v56 = vmul.f32 1.442695, %v4256_v22  ;;  %v4385_v11 = vmul.f32 1.442695, %v4262_v1 }
 0x6a4   : > { %v6695_v51 = vpop.eup %6694  ;;  %6720 = vrcp.f32 %v4674_v10  ;;  %v4678_v33 = vadd.f32 1.0, %v6693_v31  ;;  %v4197_v31 = vadd.f32 %v5895_v6, %v8567_v63  ;;  %v4387_v4 = vmul.f32 1.442695, %v4263_v27 }
 0x6a5   : > { %v6697_v39 = vpop.eup %6696  ;;  %5209 = vst [vmem:[%s8361_s25 + $0x13c] sm:$0xff] %v5740_v23  ;;  %v4680_v45 = vadd.f32 1.0, %v6695_v51  ;;  %6722 = vpow2.f32 %v4579_v38  ;;  %v8608_v23 = vpop.f32.mrf.mxu1  ;;  %v4270_v20 = vsub.f32 0.0, %v4088_v15  ;;  %v4389_v62 = vmul.f32 1.442695, %v4264_v8 }
 0x6a6   : > { %v6699_v42 = vpop.eup %6698  ;;  %6724 = vrcp.f32 %v4678_v33  ;;  %v4679_v43 = vadd.f32 1.0, %v6697_v39  ;;  %v4269_v33 = vsub.f32 0.0, %v4086_v32  ;;  %v5901_v39 = vadd.f32 %v8551_v59, %v8541_v30 }
 0x6a7   : > { %v6701_v3 = vpop.eup %6700  ;;  %6726 = vrcp.f32 %v4680_v45  ;;  %v4681_v54 = vadd.f32 1.0, %v6699_v42  ;;  %v4200_v42 = vadd.f32 %v5898_v13, %v8567_v63  ;;  %v8621_v17 = vpop.f32.mrf.mxu1  ;;  %v4276_v59 = vsub.f32 0.0, %v4090_v7 }
 0x6a8   : > { %v6703_v29 = vpop.eup %6702  ;;  %6728 = vrcp.f32 %v4679_v43  ;;  %v4685_v25 = vadd.f32 1.0, %v6701_v3  ;;  %v8617_v43 = vpop.f32.mrf.mxu0  ;;  %v4271_v3 = vsub.f32 0.0, %v4197_v31  ;;  %v4277_v47 = vsub.f32 0.0, %v4092_v60 }
 0x6a9   : > { %v6705_v34 = vpop.eup %6704  ;;  %6730 = vrcp.f32 %v4681_v54  ;;  %v4687_v48 = vadd.f32 1.0, %v6703_v29  ;;  %v4096_v54 = vadd.f32 %v8539_v2, %v8558_v52  ;;  %v4098_v29 = vadd.f32 %v8549_v14, %v8561_v36  ;;  %v8630_v6 = vpop.f32.mrf.mxu1 }
 0x6aa   : > { %v6707_v0 = vpop.eup %6706  ;;  %6732 = vrcp.f32 %v4685_v25  ;;  %v4686_v5 = vadd.f32 1.0, %v6705_v34  ;;  %v4205_v34 = vadd.f32 %v5901_v39, %v8567_v63  ;;  %v4401_v2 = vmul.f32 1.442695, %v4270_v20  ;;  %v8628_v50 = vpop.f32.mrf.mxu0 }
 0x6ab   : > { %v6709_v49 = vpop.eup %6708  ;;  %6734 = vrcp.f32 %v4687_v48  ;;  %v4688_v24 = vadd.f32 1.0, %v6707_v0  ;;  %v4403_v1 = vmul.f32 1.442695, %v4271_v3  ;;  %v4283_v14 = vsub.f32 0.0, %v4096_v54 }
 0x6ac   : > { %v6711_v44 = vpop.eup %6710  ;;  %6736 = vrcp.f32 %v4686_v5  ;;  %v4692_v35 = vadd.f32 1.0, %v6709_v49  ;;  %v4413_v27 = vmul.f32 1.442695, %v4276_v59  ;;  %v4284_v32 = vsub.f32 0.0, %v4098_v29  ;;  %v8636_v8 = vpop.f32.mrf.mxu0 }
 0x6ad   : > { %v6713_v9 = vpop.eup %6712  ;;  %6738 = vrcp.f32 %v4688_v24  ;;  %v4694_v38 = vadd.f32 1.0, %v6711_v44 }
 0x6ae   : > { %v6715_v57 = vpop.eup %6714  ;;  %6740 = vrcp.f32 %v4692_v35  ;;  %v4693_v10 = vadd.f32 1.0, %v6713_v9  ;;  %v4415_v35 = vmul.f32 1.442695, %v4277_v47  ;;  %v8642_v20 = vpop.f32.mrf.mxu0 }
 0x6af   : > { %v6717_v51 = vpop.eup %6716  ;;  %6742 = vrcp.f32 %v4694_v38  ;;  %v4100_v38 = vadd.f32 %v8563_v21, %v8558_v52 }
 0x6b0   : > { %v6719_v40 = vpop.eup %6718  ;;  %6744 = vrcp.f32 %v4693_v10  ;;  %v4427_v10 = vmul.f32 1.442695, %v4283_v14  ;;  %v8651_v59 = vpop.f32.mrf.mxu0 }
 0x6b1   : > { %v6721_v45 = vpop.eup %6720  ;;  %v5743_v22 = vpack.c.bf16 %v6719_v40, %v6715_v57  ;;  %6746 = vpow2.f32 %v4371_v55  ;;  %v4399_v55 = vmul.f32 1.442695, %v4269_v33  ;;  %v4290_v21 = vsub.f32 0.0, %v4100_v38 }
 0x6b2   : > { %v6723_v19 = vpop.eup %6722  ;;  %v5744_v46 = vpack.c.bf16 %v6721_v45, %v6717_v51  ;;  %6748 = vpow2.f32 %v4373_v56  ;;  %v4278_v56 = vsub.f32 0.0, %v4200_v42  ;;  %v4102_v42 = vadd.f32 %v8576_v58, %v8561_v36 }
 0x6b3   : > { %v6725_v53 = vpop.eup %6724  ;;  %5212 = vst [vmem:[%s8361_s25 + $0x150] sm:$0xff] %v5743_v22  ;;  %v4695_v30 = vadd.f32 1.0, %v6723_v19  ;;  %6750 = vpow2.f32 %v4375_v12  ;;  %v4285_v12 = vsub.f32 0.0, %v4205_v34  ;;  %v5904_v19 = vadd.f32 %v8578_v16, %v8565_v18 }
 0x6b4   : > { %v6727_v25 = vpop.eup %6726  ;;  %5213 = vst [vmem:[%s8361_s25 + $0x158] sm:$0xff] %v5744_v46  ;;  %6752 = vpow2.f32 %v4385_v11  ;;  %v4417_v9 = vmul.f32 1.442695, %v4278_v56  ;;  %v8638_v11 = vpop.f32.mrf.mxu1  ;;  %v4106_v58 = vadd.f32 %v8584_v41, %v8558_v52  ;;  %v4291_v47 = vsub.f32 0.0, %v4102_v42 }
 0x6b5   : > { %v6729_v48 = vpop.eup %6728  ;;  %6754 = vrcp.f32 %v4695_v30  ;;  %v4431_v7 = vmul.f32 1.442695, %v4285_v12  ;;  %v4441_v30 = vmul.f32 1.442695, %v4290_v21  ;;  %v4208_v34 = vadd.f32 %v5904_v19, %v8567_v63 }
 0x6b6   : > { %v6731_v0 = vpop.eup %6730  ;;  %v5747_v5 = vpack.c.bf16 %v6729_v48, %v6725_v53  ;;  %6756 = vpow2.f32 %v4387_v4  ;;  %v4429_v4 = vmul.f32 1.442695, %v4284_v32  ;;  %v8644_v45 = vpop.f32.mrf.mxu1  ;;  %v5907_v56 = vadd.f32 %v8597_v28, %v8588_v26 }
 0x6b7   : > { %v6733_v49 = vpop.eup %6732  ;;  %v5748_v24 = vpack.c.bf16 %v6731_v0, %v6727_v25  ;;  %6758 = vpow2.f32 %v4389_v62  ;;  %v4108_v41 = vadd.f32 %v8593_v37, %v8561_v36  ;;  %v4292_v26 = vsub.f32 0.0, %v4208_v34 }
 0x6b8   : > { %v6735_v44 = vpop.eup %6734  ;;  %5216 = vst [vmem:[%s8361_s25 + $0x16c] sm:$0xff] %v5747_v5  ;;  %6760 = vpow2.f32 %v4399_v55  ;;  %v8655_v55 = vpop.f32.mrf.mxu1  ;;  %v4110_v37 = vadd.f32 %v8605_v61, %v8558_v52 }
 0x6b9   : > { %v6737_v15 = vpop.eup %6736  ;;  %5217 = vst [vmem:[%s8361_s25 + $0x174] sm:$0xff] %v5748_v24  ;;  %6762 = vpow2.f32 %v4401_v2  ;;  %v4297_v24 = vsub.f32 0.0, %v4106_v58  ;;  %v4445_v21 = vmul.f32 1.442695, %v4292_v26  ;;  %v5916_v58 = vadd.f32 %v8655_v55, %v8644_v45 }
 0x6ba   : > { %v6739_v13 = vpop.eup %6738  ;;  %v5751_v57 = vpack.c.bf16 %v6737_v15, %v6733_v49  ;;  %6764 = vpow2.f32 %v4403_v1  ;;  %v8663_v1 = vpop.f32.mrf.mxu0  ;;  %v4213_v15 = vadd.f32 %v5907_v56, %v8567_v63  ;;  %v4122_v55 = vadd.f32 %v8651_v59, %v8561_v36 }
 0x6bb   : > { %v6741_v31 = vpop.eup %6740  ;;  %v5752_v51 = vpack.c.bf16 %v6739_v13, %v6735_v44  ;;  %6766 = vpow2.f32 %v4413_v27  ;;  %v8665_v27 = vpop.f32.mrf.mxu1  ;;  %v4298_v13 = vsub.f32 0.0, %v4108_v41  ;;  %v4126_v26 = vadd.f32 %v8663_v1, %v8558_v52 }
 0x6bc   : > { %v6743_v33 = vpop.eup %6742  ;;  %5220 = vst [vmem:[%s8361_s25 + $0x188] sm:$0xff] %v5751_v57  ;;  %6768 = vpow2.f32 %v4415_v35  ;;  %v4443_v35 = vmul.f32 1.442695, %v4291_v47  ;;  %v5910_v57 = vadd.f32 %v8621_v17, %v8608_v23  ;;  %v4299_v17 = vsub.f32 0.0, %v4213_v15 }
 0x6bd   : > { %v6745_v40 = vpop.eup %6744  ;;  %5221 = vst [vmem:[%s8361_s25 + $0x190] sm:$0xff] %v5752_v51  ;;  %6770 = vpow2.f32 %v4417_v9  ;;  %v4457_v19 = vmul.f32 1.442695, %v4298_v13 }
 0x6be   : > { %v6747_v60 = vpop.eup %6746  ;;  %v5755_v39 = vpack.c.bf16 %v6745_v40, %v6741_v31  ;;  %6772 = vpow2.f32 %v4427_v10  ;;  %v8672_v10 = vpop.f32.mrf.mxu0  ;;  %v4459_v47 = vmul.f32 1.442695, %v4299_v17 }
 0x6bf   : > { %v6749_v22 = vpop.eup %6748  ;;  %v4591_v62 = vadd.f32 1.0, %v6747_v60  ;;  %6774 = vpow2.f32 %v4429_v4  ;;  %v4455_v4 = vmul.f32 1.442695, %v4297_v24  ;;  %v5913_v60 = vadd.f32 %v8638_v11, %v8630_v6 }
 0x6c0   : > { %v6751_v46 = vpop.eup %6750  ;;  %5224 = vst [vmem:[%s8361_s25 + $0x1a4] sm:$0xff] %v5755_v39  ;;  %v4592_v3 = vadd.f32 1.0, %v6749_v22  ;;  %6776 = vpow2.f32 %v4431_v7  ;;  %v8676_v7 = vpop.f32.mrf.mxu1  ;;  %v4304_v22 = vsub.f32 0.0, %v4110_v37  ;;  %v4118_v6 = vadd.f32 %v8636_v8, %v8561_v36 }
 0x6c1   : > { %v6753_v54 = vpop.eup %6752  ;;  %6778 = vrcp.f32 %v4591_v62  ;;  %v4593_v53 = vadd.f32 1.0, %v6751_v46  ;;  %v8681_v46 = vpop.f32.mrf.mxu0 }
 0x6c2   : > { %v6755_v29 = vpop.eup %6754  ;;  %6780 = vrcp.f32 %v4592_v3  ;;  %v4598_v25 = vadd.f32 1.0, %v6753_v54  ;;  %v8687_v11 = vpop.f32.mrf.mxu1  ;;  %v4312_v45 = vsub.f32 0.0, %v4118_v6 }
 0x6c3   : > { %v6757_v18 = vpop.eup %6756  ;;  %v5756_v16 = vpack.c.bf16 %v6755_v29, %v6743_v33  ;;  %6782 = vrcp.f32 %v4593_v53  ;;  %v4112_v33 = vadd.f32 %v8617_v43, %v8561_v36  ;;  %v4216_v43 = vadd.f32 %v5910_v57, %v8567_v63  ;;  %v8694_v56 = vpop.f32.mrf.mxu0 }
 0x6c4   : > { %v6759_v48 = vpop.eup %6758  ;;  %6784 = vrcp.f32 %v4598_v25  ;;  %v4599_v2 = vadd.f32 1.0, %v6757_v18  ;;  %v4116_v53 = vadd.f32 %v8628_v50, %v8558_v52  ;;  %v4221_v25 = vadd.f32 %v5913_v60, %v8567_v63  ;;  %v8699_v41 = vpop.f32.mrf.mxu1 }
 0x6c5   : > { %v6761_v0 = vpop.eup %6760  ;;  %5225 = vst [vmem:[%s8361_s25 + $0x1ac] sm:$0xff] %v5756_v16  ;;  %v4600_v5 = vadd.f32 1.0, %v6759_v48  ;;  %6786 = vpow2.f32 %v4441_v30  ;;  %v4305_v29 = vsub.f32 0.0, %v4112_v33  ;;  %v4469_v50 = vmul.f32 1.442695, %v4304_v22  ;;  %v8706_v37 = vpop.f32.mrf.mxu0 }
 0x6c6   : > { %v6763_v14 = vpop.eup %6762  ;;  %6788 = vrcp.f32 %v4599_v2  ;;  %v4605_v49 = vadd.f32 1.0, %v6761_v0  ;;  %v4306_v8 = vsub.f32 0.0, %v4216_v43  ;;  %v4120_v2 = vadd.f32 %v8642_v20, %v8558_v52 }
 0x6c7   : > { %v6765_v32 = vpop.eup %6764  ;;  %6790 = vrcp.f32 %v4600_v5  ;;  %v4606_v44 = vadd.f32 1.0, %v6763_v14  ;;  %v4311_v5 = vsub.f32 0.0, %v4116_v53  ;;  %v4313_v24 = vsub.f32 0.0, %v4221_v25  ;;  %v8716_v17 = vpop.f32.mrf.mxu0 }
 0x6c8   : > { %v6767_v28 = vpop.eup %6766  ;;  %6792 = vrcp.f32 %v4605_v49  ;;  %v4607_v12 = vadd.f32 1.0, %v6765_v32  ;;  %v4224_v20 = vadd.f32 %v5916_v58, %v8567_v63  ;;  %v4318_v15 = vsub.f32 0.0, %v4120_v2 }
 0x6c9   : > { %v6769_v9 = vpop.eup %6768  ;;  %6794 = vrcp.f32 %v4606_v44  ;;  %v4612_v38 = vadd.f32 1.0, %v6767_v28  ;;  %v4485_v13 = vmul.f32 1.442695, %v4312_v45  ;;  %v4319_v57 = vsub.f32 0.0, %v4122_v55  ;;  %v8725_v58 = vpop.f32.mrf.mxu0 }
 0x6ca   : > { %v6771_v31 = vpop.eup %6770  ;;  %6796 = vrcp.f32 %v4607_v12  ;;  %v4613_v51 = vadd.f32 1.0, %v6769_v9  ;;  %v4473_v12 = vmul.f32 1.442695, %v4306_v8  ;;  %v4320_v33 = vsub.f32 0.0, %v4224_v20 }
 0x6cb   : > { %v6773_v40 = vpop.eup %6772  ;;  %6798 = vrcp.f32 %v4612_v38  ;;  %v4614_v61 = vadd.f32 1.0, %v6771_v31  ;;  %v4483_v38 = vmul.f32 1.442695, %v4311_v5  ;;  %v8709_v31 = vpop.f32.mrf.mxu1  ;;  %v4128_v60 = vadd.f32 %v8672_v10, %v8561_v36 }
 0x6cc   : > { %v6775_v39 = vpop.eup %6774  ;;  %6800 = vrcp.f32 %v4613_v51  ;;  %v4619_v23 = vadd.f32 1.0, %v6773_v40  ;;  %v4130_v5 = vadd.f32 %v8681_v46, %v8558_v52  ;;  %v5922_v45 = vadd.f32 %v8699_v41, %v8687_v11  ;;  %v4141_v55 = vpop.f32.mrf.mxu0 }
 0x6cd   : > { %v6777_v62 = vpop.eup %6776  ;;  %6802 = vrcp.f32 %v4614_v61  ;;  %v4620_v42 = vadd.f32 1.0, %v6775_v39  ;;  %v4326_v6 = vsub.f32 0.0, %v4128_v60 }
 0x6ce   : > { %v6779_v3 = vpop.eup %6778  ;;  %6804 = vrcp.f32 %v4619_v23  ;;  %v4621_v54 = vadd.f32 1.0, %v6777_v62  ;;  %v4497_v23 = vmul.f32 1.442695, %v4318_v15  ;;  %v4232_v11 = vadd.f32 %v5922_v45, %v8567_v63  ;;  %v4145_v41 = vpop.f32.mrf.mxu0 }
 0x6cf   : > { %v6781_v30 = vpop.eup %6780  ;;  %6806 = vrcp.f32 %v4620_v42  ;;  %v4499_v42 = vmul.f32 1.442695, %v4319_v57 }
 0x6d0   : > { %v6783_v18 = vpop.eup %6782  ;;  %v5697_v16 = vpack.c.bf16 %v6781_v30, %v6779_v3  ;;  %6808 = vrcp.f32 %v4621_v54  ;;  %v4501_v54 = vmul.f32 1.442695, %v4320_v33  ;;  %v5919_v30 = vadd.f32 %v8676_v7, %v8665_v27 }
 0x6d1   : > { %v6785_v34 = vpop.eup %6784  ;;  %v5698_v48 = vpack.c.bf16 %v6783_v18, %v6783_v18  ;;  %6810 = vpow2.f32 %v4443_v35  ;;  %v4471_v35 = vmul.f32 1.442695, %v4305_v29  ;;  %v4513_v7 = vmul.f32 1.442695, %v4326_v6 }
 0x6d2   : > { %v6787_v0 = vpop.eup %6786  ;;  %5165 = vst [vmem:[%s8361_s25 + $0x10] sm:$0xff] %v5697_v16  ;;  %6812 = vpow2.f32 %v4445_v21  ;;  %v4325_v21 = vsub.f32 0.0, %v4126_v26  ;;  %v4229_v8 = vadd.f32 %v5919_v30, %v8567_v63  ;;  %v4140_v6 = vadd.f32 %v8725_v58, %v8558_v52 }
 0x6d3   : > { %v6789_v14 = vpop.eup %6788  ;;  %5167 = vst.msk [vmem:[%s8361_s25 + $0x18] sm:$0xf] %vm5166_vm1, %v5698_v48  ;;  %v4626_v49 = vadd.f32 1.0, %v6787_v0  ;;  %6814 = vpow2.f32 %v4455_v4  ;;  %v4487_v4 = vmul.f32 1.442695, %v4313_v24  ;;  %v4132_v24 = vadd.f32 %v8694_v56, %v8561_v36 }
 0x6d4   : > { %v6791_v32 = vpop.eup %6790  ;;  %v5701_v44 = vpack.c.bf16 %v6789_v14, %v6785_v34  ;;  %6816 = vpow2.f32 %v4457_v19  ;;  %v5924_v19 = vpop.f32.mrf.mxu1  ;;  %v4511_v53 = vmul.f32 1.442695, %v4325_v21  ;;  %v4327_v26 = vsub.f32 0.0, %v4229_v8 }
 0x6d5   : > { %v6793_v59 = vpop.eup %6792  ;;  %v5702_v28 = vpack.c.bf16 %v6791_v32, %v6791_v32  ;;  %6818 = vrcp.f32 %v4626_v49  ;;  %v5925_v56 = vadd.f32 %v5924_v19, %v8709_v31  ;;  %v4147_v31 = vpop.f32.mrf.mxu0 }
 0x6d6   : > { %v6795_v9 = vpop.eup %6794  ;;  %5170 = vst [vmem:[%s8361_s25 + $0x2c] sm:$0xff] %v5701_v44  ;;  %6820 = vpow2.f32 %v4459_v47  ;;  %v8727_v47 = vpop.f32.mrf.mxu1  ;;  %v4515_v33 = vmul.f32 1.442695, %v4327_v26 }
 0x6d7   : > { %v6797_v51 = vpop.eup %6796  ;;  %5171 = vst.msk [vmem:[%s8361_s25 + $0x34] sm:$0xf] %vm5166_vm1, %v5702_v28  ;;  %v5705_v1 = vpack.c.bf16 %v6795_v9, %v6793_v59  ;;  %6822 = vpow2.f32 %v4469_v50  ;;  %v4332_v28 = vsub.f32 0.0, %v4130_v5  ;;  %v4333_v9 = vsub.f32 0.0, %v4132_v24 }
 0x6d8   : > { %v6799_v40 = vpop.eup %6798  ;;  %v5706_v61 = vpack.c.bf16 %v6797_v51, %v6797_v51  ;;  %6824 = vpow2.f32 %v4471_v35  ;;  %v5927_v20 = vpop.f32.mrf.mxu1  ;;  %v4136_v51 = vadd.f32 %v8706_v37, %v8558_v52  ;;  %v4346_v24 = vsub.f32 0.0, %v4140_v6 }
 0x6d9   : > { %v6801_v39 = vpop.eup %6800  ;;  %5174 = vst [vmem:[%s8361_s25 + $0x48] sm:$0xff] %v5705_v1  ;;  %6826 = vpow2.f32 %v4473_v12  ;;  %v4525_v60 = vmul.f32 1.442695, %v4332_v28 }
 0x6da   : > { %v6803_v22 = vpop.eup %6802  ;;  %5175 = vst.msk [vmem:[%s8361_s25 + $0x50] sm:$0xf] %vm5166_vm1, %v5706_v61  ;;  %v5709_v62 = vpack.c.bf16 %v6801_v39, %v6799_v40  ;;  %6828 = vpow2.f32 %v4483_v38  ;;  %v5929_v38 = vpop.f32.mrf.mxu1  ;;  %v4138_v40 = vadd.f32 %v8716_v17, %v8561_v36  ;;  %v4334_v39 = vsub.f32 0.0, %v4232_v11 }
 0x6db   : > { %v6805_v43 = vpop.eup %6804  ;;  %v5710_v3 = vpack.c.bf16 %v6803_v22, %v6803_v22  ;;  %6830 = vpow2.f32 %v4485_v13 }
 0x6dc   : > { %v6807_v10 = vpop.eup %6806  ;;  %5178 = vst [vmem:[%s8361_s25 + $0x64] sm:$0xff] %v5709_v62  ;;  %6832 = vpow2.f32 %v4487_v4  ;;  %v4527_v62 = vmul.f32 1.442695, %v4333_v9  ;;  %v5930_v37 = vpop.f32.mrf.mxu1 }
 0x6dd   : > { %v6809_v29 = vpop.eup %6808  ;;  %5179 = vst.msk [vmem:[%s8361_s25 + $0x6c] sm:$0xf] %vm5166_vm1, %v5710_v3  ;;  %v5713_v25 = vpack.c.bf16 %v6807_v10, %v6805_v43  ;;  %6834 = vpow2.f32 %v4497_v23  ;;  %v4339_v3 = vsub.f32 0.0, %v4136_v51 }
 0x6de   : > { %v6811_v18 = vpop.eup %6810  ;;  %v5714_v16 = vpack.c.bf16 %v6809_v29, %v6809_v29  ;;  %6836 = vpow2.f32 %v4499_v42  ;;  %v4237_v42 = vadd.f32 %v5925_v56, %v8567_v63 }
 0x6df   : > { %v6813_v50 = vpop.eup %6812  ;;  %5182 = vst [vmem:[%s8361_s25 + $0x80] sm:$0xff] %v5713_v25  ;;  %v4627_v34 = vadd.f32 1.0, %v6811_v18  ;;  %6838 = vpow2.f32 %v4501_v54  ;;  %v5928_v54 = vadd.f32 %v5927_v20, %v8727_v47  ;;  %v4529_v25 = vmul.f32 1.442695, %v4334_v39 }
 0x6e0   : > { %v6815_v48 = vpop.eup %6814  ;;  %5183 = vst.msk [vmem:[%s8361_s25 + $0x88] sm:$0xf] %vm5166_vm1, %v5714_v16  ;;  %v4628_v27 = vadd.f32 1.0, %v6813_v50  ;;  %6840 = vpow2.f32 %v4511_v53  ;;  %v4340_v53 = vsub.f32 0.0, %v4138_v40  ;;  %v4142_v18 = vadd.f32 %v4141_v55, %v8561_v36  ;;  %v4149_v16 = vpop.f32.mrf.mxu0 }
 0x6e1   : > { %v6817_v2 = vpop.eup %6816  ;;  %6842 = vrcp.f32 %v4627_v34  ;;  %v4633_v0 = vadd.f32 1.0, %v6815_v48  ;;  %v4341_v48 = vsub.f32 0.0, %v4237_v42  ;;  %v5931_v47 = vadd.f32 %v5930_v37, %v5929_v38 }
 0x6e2   : > { %v8737_v14 = vpop.eup %6818  ;;  %6844 = vrcp.f32 %v4628_v27  ;;  %v4634_v49 = vadd.f32 1.0, %v6817_v2  ;;  %v5932_v27 = vpop.f32.mrf.mxu1  ;;  %v4539_v58 = vmul.f32 1.442695, %v4339_v3  ;;  %v4240_v2 = vadd.f32 %v5928_v54, %v8567_v63 }
 0x6e3   : > { %v6821_v32 = vpop.eup %6820  ;;  %6846 = vrcp.f32 %v4633_v0  ;;  %v4541_v45 = vmul.f32 1.442695, %v4340_v53  ;;  %v4146_v55 = vadd.f32 %v4145_v41, %v8558_v52  ;;  %v4347_v20 = vsub.f32 0.0, %v4142_v18 }
 0x6e4   : > { %v6823_v44 = vpop.eup %6822  ;;  %6848 = vrcp.f32 %v4634_v49  ;;  %v4635_v35 = vadd.f32 1.0, %v6821_v32  ;;  %v4148_v32 = vadd.f32 %v4147_v31, %v8561_v36  ;;  %v4543_v26 = vmul.f32 1.442695, %v4341_v48 }
 0x6e5   : > { %v6825_v59 = vpop.eup %6824  ;;  %v4640_v46 = vadd.f32 1.0, %v6823_v44  ;;  %6850 = vpow2.f32 %v4513_v7  ;;  %v4348_v41 = vsub.f32 0.0, %v4240_v2  ;;  %v4353_v56 = vsub.f32 0.0, %v4146_v55 }
 0x6e6   : > { %v6827_v12 = vpop.eup %6826  ;;  %6852 = vrcp.f32 %v4635_v35  ;;  %v4641_v15 = vadd.f32 1.0, %v6825_v59  ;;  %v4245_v59 = vadd.f32 %v5931_v47, %v8567_v63  ;;  %v4354_v51 = vsub.f32 0.0, %v4148_v32 }
 0x6e7   : > { %v6829_v13 = vpop.eup %6828  ;;  %6854 = vrcp.f32 %v4640_v46  ;;  %v4642_v57 = vadd.f32 1.0, %v6827_v12  ;;  %v5933_v46 = vpop.f32.mrf.mxu1  ;;  %v4150_v12 = vadd.f32 %v4149_v16, %v8558_v52  ;;  %v4555_v52 = vmul.f32 1.442695, %v4347_v20 }
 0x6e8   : > { %v6831_v1 = vpop.eup %6830  ;;  %6856 = vrcp.f32 %v4641_v15  ;;  %v4647_v4 = vadd.f32 1.0, %v6829_v13  ;;  %v4355_v40 = vsub.f32 0.0, %v4245_v59  ;;  %v4567_v31 = vmul.f32 1.442695, %v4353_v56 }
 0x6e9   : > { %v6833_v61 = vpop.eup %6832  ;;  %6858 = vrcp.f32 %v4642_v57  ;;  %v4648_v21 = vadd.f32 1.0, %v6831_v1  ;;  %v4553_v57 = vmul.f32 1.442695, %v4346_v24  ;;  %v5934_v1 = vadd.f32 %v5933_v46, %v5932_v27 }
 0x6ea   : > { %v6835_v23 = vpop.eup %6834  ;;  %6860 = vrcp.f32 %v4647_v4  ;;  %v4649_v22 = vadd.f32 1.0, %v6833_v61  ;;  %v4360_v39 = vsub.f32 0.0, %v4150_v12  ;;  %v4569_v42 = vmul.f32 1.442695, %v4354_v51 }
 0x6eb   : > { %v6837_v19 = vpop.eup %6836  ;;  %6862 = vrcp.f32 %v4648_v21  ;;  %v4654_v43 = vadd.f32 1.0, %v6835_v23  ;;  %v4248_v37 = vadd.f32 %v5934_v1, %v8567_v63  ;;  %v4571_v3 = vmul.f32 1.442695, %v4355_v40 }
 0x6ec   : > { %v6839_v17 = vpop.eup %6838  ;;  %6864 = vrcp.f32 %v4649_v22  ;;  %v4655_v10 = vadd.f32 1.0, %v6837_v19 }
 0x6ed   : > { %v6841_v30 = vpop.eup %6840  ;;  %6866 = vrcp.f32 %v4654_v43  ;;  %v4656_v29 = vadd.f32 1.0, %v6839_v17  ;;  %v4581_v17 = vmul.f32 1.442695, %v4360_v39  ;;  %v4362_v63 = vsub.f32 0.0, %v4248_v37 }
 0x6ee   : > { %v6843_v50 = vpop.eup %6842  ;;  %6868 = vrcp.f32 %v4655_v10  ;;  %v4661_v34 = vadd.f32 1.0, %v6841_v30 }
 0x6ef   : > { %v6845_v7 = vpop.eup %6844  ;;  %v5717_v8 = vpack.c.bf16 %v6843_v50, %v8737_v14  ;;  %6870 = vrcp.f32 %v4656_v29  ;;  %v4151_v14 = vpop.f32.mrf.mxu0  ;;  %v4585_v27 = vmul.f32 1.442695, %v4362_v63 }
 0x6f0   : > { %v6847_v0 = vpop.eup %6846  ;;  %v5718_v5 = vpack.c.bf16 %v6845_v7, %v6845_v7  ;;  %6872 = vrcp.f32 %v4661_v34  ;;  %v4152_v38 = vadd.f32 %v4151_v14, %v8561_v36 }
 0x6f1   : > { %v6849_v49 = vpop.eup %6848  ;;  %5186 = vst [vmem:[%s8361_s25 + $0x9c] sm:$0xff] %v5717_v8  ;;  %6874 = vpow2.f32 %v4515_v33 }
 0x6f2   : > { %v6851_v44 = vpop.eup %6850  ;;  %5187 = vst.msk [vmem:[%s8361_s25 + $0xa4] sm:$0xf] %vm5166_vm1, %v5718_v5  ;;  %v5721_v35 = vpack.c.bf16 %v6849_v49, %v6847_v0  ;;  %6876 = vpow2.f32 %v4525_v60  ;;  %v4557_v60 = vmul.f32 1.442695, %v4348_v41  ;;  %v4361_v23 = vsub.f32 0.0, %v4152_v38 }
 0x6f3   : > { %v6853_v28 = vpop.eup %6852  ;;  %v4662_v11 = vadd.f32 1.0, %v6851_v44  ;;  %6878 = vpow2.f32 %v4527_v62 }
 0x6f4   : > { %v6855_v15 = vpop.eup %6854  ;;  %5190 = vst [vmem:[%s8361_s25 + $0xb8] sm:$0xff] %v5721_v35  ;;  %v5722_v9 = vpack.c.bf16 %v6853_v28, %v6853_v28  ;;  %6880 = vpow2.f32 %v4529_v25  ;;  %v4583_v6 = vmul.f32 1.442695, %v4361_v23 }
 0x6f5   : > { %v6857_v13 = vpop.eup %6856  ;;  %6882 = vrcp.f32 %v4662_v11 }
 0x6f6   : > { %v6859_v4 = vpop.eup %6858  ;;  %5191 = vst.msk [vmem:[%s8361_s25 + $0xc0] sm:$0xf] %vm5166_vm1, %v5722_v9  ;;  %v5725_v33 = vpack.c.bf16 %v6857_v13, %v6855_v15  ;;  %6884 = vpow2.f32 %v4539_v58 }
 0x6f7   : > { %v6861_v61 = vpop.eup %6860  ;;  %v5726_v21 = vpack.c.bf16 %v6859_v4, %v6859_v4  ;;  %6886 = vpow2.f32 %v4541_v45 }
 0x6f8   : > { %v6863_v36 = vpop.eup %6862  ;;  %5194 = vst [vmem:[%s8361_s25 + $0xd4] sm:$0xff] %v5725_v33  ;;  %6888 = vpow2.f32 %v4543_v26 }
 0x6f9   : > { %v6865_v22 = vpop.eup %6864  ;;  %5195 = vst.msk [vmem:[%s8361_s25 + $0xdc] sm:$0xf] %vm5166_vm1, %v5726_v21  ;;  %v5729_v62 = vpack.c.bf16 %v6863_v36, %v6861_v61  ;;  %6890 = vpow2.f32 %v4553_v57 }
 0x6fa   : > { %v6867_v19 = vpop.eup %6866  ;;  %v5730_v43 = vpack.c.bf16 %v6865_v22, %v6865_v22  ;;  %6892 = vpow2.f32 %v4555_v52 }
 0x6fb   : > { %v6869_v54 = vpop.eup %6868  ;;  %5198 = vst [vmem:[%s8361_s25 + $0xf0] sm:$0xff] %v5729_v62  ;;  %6894 = vpow2.f32 %v4557_v60 }
 0x6fc   : > { %v6871_v10 = vpop.eup %6870  ;;  %5199 = vst.msk [vmem:[%s8361_s25 + $0xf8] sm:$0xf] %vm5166_vm1, %v5730_v43  ;;  %v5733_v53 = vpack.c.bf16 %v6869_v54, %v6867_v19  ;;  %6896 = vpow2.f32 %v4567_v31 }
 0x6fd   : > { %v6873_v30 = vpop.eup %6872  ;;  %v5734_v29 = vpack.c.bf16 %v6871_v10, %v6871_v10  ;;  %6898 = vpow2.f32 %v4569_v42 }
 0x6fe   : > { %v6875_v25 = vpop.eup %6874  ;;  %5202 = vst [vmem:[%s8361_s25 + $0x10c] sm:$0xff] %v5733_v53  ;;  %6900 = vpow2.f32 %v4571_v3 }
 0x6ff   : > { %v6877_v18 = vpop.eup %6876  ;;  %5203 = vst.msk [vmem:[%s8361_s25 + $0x114] sm:$0xf] %vm5166_vm1, %v5734_v29  ;;  %v4663_v16 = vadd.f32 1.0, %v6875_v25  ;;  %6902 = vpow2.f32 %v4581_v17 }
 0x700   : > { %v6879_v50 = vpop.eup %6878  ;;  %v4668_v34 = vadd.f32 1.0, %v6877_v18  ;;  %6904 = vpow2.f32 %v4583_v6 }
 0x701   : > { %v6881_v48 = vpop.eup %6880  ;;  %6906 = vrcp.f32 %v4663_v16  ;;  %v4669_v47 = vadd.f32 1.0, %v6879_v50 }
 0x702   : > { %v6883_v7 = vpop.eup %6882  ;;  %6908 = vrcp.f32 %v4668_v34  ;;  %v4670_v8 = vadd.f32 1.0, %v6881_v48 }
 0x703   : > { %v6885_v58 = vpop.eup %6884  ;;  %v5737_v2 = vpack.c.bf16 %v6883_v7, %v6873_v30  ;;  %6910 = vrcp.f32 %v4669_v47 }
 0x704   : > { %v6887_v0 = vpop.eup %6886  ;;  %6912 = vrcp.f32 %v4670_v8  ;;  %v4675_v5 = vadd.f32 1.0, %v6885_v58 }
 0x705   : > { %v6889_v45 = vpop.eup %6888  ;;  %5206 = vst [vmem:[%s8361_s25 + $0x128] sm:$0xff] %v5737_v2  ;;  %v4676_v55 = vadd.f32 1.0, %v6887_v0  ;;  %6914 = vpow2.f32 %v4585_v27 }
 0x706   : > { %v6891_v49 = vpop.eup %6890  ;;  %6916 = vrcp.f32 %v4675_v5  ;;  %v4677_v24 = vadd.f32 1.0, %v6889_v45 }
 0x707   : > { %v6893_v20 = vpop.eup %6892  ;;  %6918 = vrcp.f32 %v4676_v55  ;;  %v4682_v32 = vadd.f32 1.0, %v6891_v49 }
 0x708   : > { %v6895_v14 = vpop.eup %6894  ;;  %6920 = vrcp.f32 %v4677_v24  ;;  %v4683_v44 = vadd.f32 1.0, %v6893_v20 }
 0x709   : > { %v6897_v35 = vpop.eup %6896  ;;  %6922 = vrcp.f32 %v4682_v32  ;;  %v4684_v26 = vadd.f32 1.0, %v6895_v14 }
 0x70a   : > { %v6899_v59 = vpop.eup %6898  ;;  %6924 = vrcp.f32 %v4683_v44  ;;  %v4689_v46 = vadd.f32 1.0, %v6897_v35 }
 0x70b   : > { %v6901_v28 = vpop.eup %6900  ;;  %6926 = vrcp.f32 %v4684_v26  ;;  %v4690_v11 = vadd.f32 1.0, %v6899_v59 }
 0x70c   : > { %v6903_v41 = vpop.eup %6902  ;;  %6928 = vrcp.f32 %v4689_v46  ;;  %v4691_v12 = vadd.f32 1.0, %v6901_v28 }
 0x70d   : > { %v6905_v15 = vpop.eup %6904  ;;  %6930 = vrcp.f32 %v4690_v11  ;;  %v4696_v9 = vadd.f32 1.0, %v6903_v41 }
 0x70e   : > { %v6907_v56 = vpop.eup %6906  ;;  %6932 = vrcp.f32 %v4691_v12  ;;  %v4697_v38 = vadd.f32 1.0, %v6905_v15 }
 0x70f   : > { %v6909_v13 = vpop.eup %6908  ;;  %v5738_v57 = vpack.c.bf16 %v6907_v56, %v6907_v56  ;;  %6934 = vrcp.f32 %v4696_v9 }
 0x710   : > { %v6911_v51 = vpop.eup %6910  ;;  %6936 = vrcp.f32 %v4697_v38 }
 0x711   : > { %v6913_v1 = vpop.eup %6912  ;;  %5207 = vst.msk [vmem:[%s8361_s25 + $0x130] sm:$0xf] %vm5166_vm1, %v5738_v57  ;;  %v5741_v4 = vpack.c.bf16 %v6911_v51, %v6909_v13 }
 0x712   : > { %v6915_v33 = vpop.eup %6914  ;;  %v5742_v52 = vpack.c.bf16 %v6913_v1, %v6913_v1 }
 0x713   : > { %v6917_v40 = vpop.eup %6916  ;;  %5210 = vst [vmem:[%s8361_s25 + $0x144] sm:$0xff] %v5741_v4  ;;  %v4698_v61 = vadd.f32 1.0, %v6915_v33 }
 0x714   : > { %v6919_v21 = vpop.eup %6918  ;;  %5211 = vst.msk [vmem:[%s8361_s25 + $0x14c] sm:$0xf] %vm5166_vm1, %v5742_v52 }
 0x715   : > { %v6921_v60 = vpop.eup %6920  ;;  %v5745_v39 = vpack.c.bf16 %v6919_v21, %v6917_v40  ;;  %6938 = vrcp.f32 %v4698_v61 }
 0x716   : > { %v6923_v36 = vpop.eup %6922  ;;  %v5746_v31 = vpack.c.bf16 %v6921_v60, %v6921_v60 }
 0x717   : > { %v6925_v23 = vpop.eup %6924  ;;  %5214 = vst [vmem:[%s8361_s25 + $0x160] sm:$0xff] %v5745_v39 }
 0x718   : > { %v6927_v22 = vpop.eup %6926  ;;  %5215 = vst.msk [vmem:[%s8361_s25 + $0x168] sm:$0xf] %vm5166_vm1, %v5746_v31  ;;  %v5749_v62 = vpack.c.bf16 %v6925_v23, %v6923_v36 }
 0x719   : > { %v6929_v42 = vpop.eup %6928  ;;  %v5750_v37 = vpack.c.bf16 %v6927_v22, %v6927_v22 }
 0x71a   : > { %v6931_v19 = vpop.eup %6930  ;;  %5218 = vst [vmem:[%s8361_s25 + $0x17c] sm:$0xff] %v5749_v62 }
 0x71b   : > { %v6933_v43 = vpop.eup %6932  ;;  %5219 = vst.msk [vmem:[%s8361_s25 + $0x184] sm:$0xf] %vm5166_vm1, %v5750_v37  ;;  %v5753_v3 = vpack.c.bf16 %v6931_v19, %v6929_v42 }
 0x71c   : > { %v6935_v54 = vpop.eup %6934  ;;  %v5754_v17 = vpack.c.bf16 %v6933_v43, %v6933_v43 }
 0x71d   : > { %v6937_v10 = vpop.eup %6936  ;;  %5222 = vst [vmem:[%s8361_s25 + $0x198] sm:$0xff] %v5753_v3 }
 0x71e   : > { %5223 = vst.msk [vmem:[%s8361_s25 + $0x1a0] sm:$0xf] %vm5166_vm1, %v5754_v17  ;;  %v5757_v53 = vpack.c.bf16 %v6937_v10, %v6935_v54 }
 0x720   : > { %5226 = vst [vmem:[%s8361_s25 + $0x1b4] sm:$0xff] %v5757_v53 }
 0x722   : > { %v6939_v6 = vpop.eup %6938 }
 0x723   : > { %v5758_v30 = vpack.c.bf16 %v6939_v6, %v6939_v6 }
 0x725   : > { %5227 = vst.msk [vmem:[%s8361_s25 + $0x1bc] sm:$0xf] %vm5166_vm1, %v5758_v30 }
 0x726 PF: > { %s25_s18 = sadd.s32 1, %s6947_s18  }
 0x727   : > { %p22_p4 = scmp.ge.s32.totalorder %s25_s18, 6  }
 0x729   :  { %24 = sbr.rel (!%p22_p4) target bundleno = 1 (0x1), region = 110 }

</bundles_post_ra>
